<compile_context>
chip_gen: v5e
topology: v5e:2x2
jax: 0.10.0
libtpu: 0.0.40
codegen_flags: <defaults>
</compile_context>

<pallas_src>
import functools

import jax
import jax.numpy as jnp
from jax.experimental import pallas as pl
from jax.experimental.pallas import tpu as pltpu

_EPS = 1e-5


# ----------------------------------------------------------------------------
# Generation-aware VMEM budget & tile selection
# ----------------------------------------------------------------------------
def _vmem_capacity_bytes():
    """Physical per-core VMEM; falls back to the smallest known (v7x, 64 MiB)."""
    try:
        cap = getattr(pltpu.get_tpu_info(), "vmem_capacity_bytes", None)
        if cap:
            return int(cap)
    except Exception:
        pass
    return 64 * 1024 * 1024


def _vmem_limit_bytes():
    # ~75% of physical: 96 MiB on v5e/v6e (128 MiB), 48 MiB on v7x (64 MiB).
    return min(int(0.75 * _vmem_capacity_bytes()), 100 * 1024 * 1024)


def _conv_tile_bytes(th, w, cin, cout):
    """Rough per-step VMEM footprint of the conv kernel: double-buffered
    BlockSpec transfers + compiler-managed live values (with 2x headroom)."""
    f32, bf16 = 4, 2
    blockspecs = 2 * (th * w * cin * f32          # input row tile (f32 worst case)
                      + 2 * w * cin * f32         # top/bottom halo rows
                      + th * w * cout * bf16      # bf16 conv-output tile
                      + 2 * cout * f32)           # BN partials
    weights = 2 * 9 * cin * cout * bf16
    live = ((th + 2) * (w + 2) * cin * 2 * f32    # padded tile + pre-activation
            + th * w * cin * bf16                 # matmul LHS patch
            + th * w * cout * f32)                # f32 accumulator
    return blockspecs + weights + 2 * live


def _pick_tile_h(h, w, cin, cout, vmem_limit):
    """Largest divisor of H whose conv tile fits in ~60% of the VMEM budget."""
    budget = int(0.6 * vmem_limit)
    best = 1
    for th in range(1, h + 1):
        if h % th == 0 and _conv_tile_bytes(th, w, cin, cout) <= budget:
            best = th
    return best


# ----------------------------------------------------------------------------
# Kernels
# ----------------------------------------------------------------------------
def _conv3x3_kernel(x_ref, top_ref, bot_ref, w_ref, scale_ref, shift_ref,
                    y_ref, stats_ref, *, preact_relu):
    """Per-channel affine [+ ReLU] pre-activation, then zero-padded 3x3 conv
    (stride 1) on one row tile, plus per-tile BatchNorm partial sums.

      x_ref    : (1, TH, W, Cin)   row tile of the input feature map
      top_ref  : (1, 1,  W, Cin)   halo row above (masked to 0 on first tile)
      bot_ref  : (1, 1,  W, Cin)   halo row below (masked to 0 on last tile)
      w_ref    : (9, Cin, Cout)    conv weight, k = ky*3 + kx, bf16
      scale/shift_ref : (1, Cin)   pre-activation affine (f32)
      y_ref    : (1, TH, W, Cout)  conv output tile (bf16)
      stats_ref: (1, 1, 2, Cout)   per-tile [sum, sum_of_squares] of y (f32)
    """
    TH, W, Cin = x_ref.shape[1], x_ref.shape[2], x_ref.shape[3]
    Cout = y_ref.shape[3]
    i = pl.program_id(1)
    last = pl.num_programs(1) - 1

    scale = scale_ref[...]                       # (1, Cin) f32
    shift = shift_ref[...]

    def preact(v):                               # all VPU math stays f32
        v = v.astype(jnp.float32) * scale + shift
        if preact_relu:
            v = jnp.maximum(v, 0.0)
        return v

    xm = preact(x_ref[0])                                        # (TH, W, Cin)
    # Halo rows, zeroed at the image border (conv pads the *activated* map).
    top = preact(top_ref[0]) * (i > 0).astype(jnp.float32)       # (1, W, Cin)
    bot = preact(bot_ref[0]) * (i < last).astype(jnp.float32)    # (1, W, Cin)

    # Zero-padded (TH+2, W+2, Cin) tile assembled as a value: no scratch
    # stores, no im2col buffer; slices stay f32 until the MXU operand cast.
    zcol = jnp.zeros((TH + 2, 1, Cin), jnp.float32)
    xp = jnp.concatenate([top, xm, bot], axis=0)                 # (TH+2, W, Cin)
    xp = jnp.concatenate([zcol, xp, zcol], axis=1)               # (TH+2, W+2, Cin)

    # Nine accumulating MXU matmuls (K = Cin each) over the shifted patches.
    acc = jnp.zeros((TH * W, Cout), jnp.float32)
    for k in range(9):
        dy, dx = divmod(k, 3)
        patch = xp[dy:dy + TH, dx:dx + W, :].astype(jnp.bfloat16)
        acc = acc + jnp.dot(patch.reshape(TH * W, Cin), w_ref[k],
                            preferred_element_type=jnp.float32)

    y_ref[...] = acc.reshape(1, TH, W, Cout).astype(y_ref.dtype)

    # Per-tile BatchNorm partials from the f32 accumulator (NOT the bf16
    # writeback); reduced across tiles outside the kernel.
    # TODO(synk): shifted/Welford accumulation if E[x^2]-E[x]^2 cancellation
    # ever becomes an issue for large activations.
    stats_ref[0, 0, 0:1, :] = jnp.sum(acc, axis=0, keepdims=True)
    stats_ref[0, 0, 1:2, :] = jnp.sum(acc * acc, axis=0, keepdims=True)


def _epilogue_kernel(y_ref, xid_ref, scale_ref, shift_ref, o_ref):
    """out = relu(bn2(y2) + identity) on one row tile (pure VPU, f32)."""
    y = y_ref[...].astype(jnp.float32) * scale_ref[...] + shift_ref[...]
    o = jnp.maximum(y + xid_ref[...].astype(jnp.float32), 0.0)
    o_ref[...] = o.astype(o_ref.dtype)


# ----------------------------------------------------------------------------
# Pallas-call wrappers
# ----------------------------------------------------------------------------
def _conv3x3_bn_stats(x, w9, scale, shift, *, tile_h, vmem_limit, preact_relu):
    """Tiled 3x3 conv (stride 1, pad 1).  Returns the bf16 conv output and the
    global per-channel (sum, sum_of_squares) needed for training-mode BN."""
    N, H, W, Cin = x.shape
    Cout = w9.shape[2]
    TH = tile_h
    nH = H // TH

    kernel = functools.partial(_conv3x3_kernel, preact_relu=preact_relu)
    y, stats = pl.pallas_call(
        kernel,
        grid=(N, nH),
        in_specs=[
            pl.BlockSpec((1, TH, W, Cin), lambda n, i: (n, i, 0, 0)),
            pl.BlockSpec((1, 1, W, Cin),
                         lambda n, i: (n, jnp.maximum(i * TH - 1, 0), 0, 0)),
            pl.BlockSpec((1, 1, W, Cin),
                         lambda n, i: (n, jnp.minimum((i + 1) * TH, H - 1), 0, 0)),
            pl.BlockSpec((9, Cin, Cout), lambda n, i: (0, 0, 0)),
            pl.BlockSpec((1, Cin), lambda n, i: (0, 0)),
            pl.BlockSpec((1, Cin), lambda n, i: (0, 0)),
        ],
        out_specs=[
            pl.BlockSpec((1, TH, W, Cout), lambda n, i: (n, i, 0, 0)),
            pl.BlockSpec((1, 1, 2, Cout), lambda n, i: (n, i, 0, 0)),
        ],
        out_shape=[
            jax.ShapeDtypeStruct((N, H, W, Cout), jnp.bfloat16),   # bf16 y
            jax.ShapeDtypeStruct((N, nH, 2, Cout), jnp.float32),   # BN partials
        ],
        compiler_params=pltpu.CompilerParams(
            dimension_semantics=("parallel", "parallel"),
            vmem_limit_bytes=vmem_limit),
    )(x, x, x, w9, scale, shift)

    return y, jnp.sum(stats, axis=(0, 1))                          # (2, Cout)


def _bn_affine(stats, gamma, beta, count):
    """Fold training-mode BN (batch mean, biased var) into y*scale + shift."""
    mean = stats[0] / count
    var = stats[1] / count - mean * mean
    inv = jax.lax.rsqrt(var + _EPS)
    scale = (gamma * inv).reshape(1, -1).astype(jnp.float32)
    shift = (beta - mean * gamma * inv).reshape(1, -1).astype(jnp.float32)
    return scale, shift


@functools.partial(jax.jit, static_argnames=("tile_h", "vmem_limit"))
def _basic_block_nhwc_impl(x, w1, g1, b1, w2, g2, b2, *, tile_h, vmem_limit):
    N, H, W, C = x.shape
    TH = tile_h
    nH = H // TH
    count = jnp.float32(N * H * W)

    # HWIO conv weights -> (9, Cin, Cout) bf16 MXU operands (k = ky*3 + kx).
    w1f = w1.reshape(9, C, C).astype(jnp.bfloat16)
    w2f = w2.reshape(9, C, C).astype(jnp.bfloat16)

    ident = jnp.ones((1, C), jnp.float32)
    zero = jnp.zeros((1, C), jnp.float32)

    # conv1 (no pre-activation) + BN1 batch statistics.
    y1, s1 = _conv3x3_bn_stats(x, w1f, ident, zero, tile_h=TH,
                               vmem_limit=vmem_limit, preact_relu=False)
    scale1, shift1 = _bn_affine(s1, g1, b1, count)

    # conv2 with BN1 + ReLU fused as its pre-activation, + BN2 statistics.
    y2, s2 = _conv3x3_bn_stats(y1, w2f, scale1, shift1, tile_h=TH,
                               vmem_limit=vmem_limit, preact_relu=True)
    scale2, shift2 = _bn_affine(s2, g2, b2, count)

    # BN2 affine + residual add + ReLU; output aliases the residual buffer.
    out = pl.pallas_call(
        _epilogue_kernel,
        grid=(N, nH),
        in_specs=[
            pl.BlockSpec((1, TH, W, C), lambda n, i: (n, i, 0, 0)),
            pl.BlockSpec((1, TH, W, C), lambda n, i: (n, i, 0, 0)),
            pl.BlockSpec((1, C), lambda n, i: (0, 0)),
            pl.BlockSpec((1, C), lambda n, i: (0, 0)),
        ],
        out_specs=pl.BlockSpec((1, TH, W, C), lambda n, i: (n, i, 0, 0)),
        out_shape=jax.ShapeDtypeStruct((N, H, W, C), jnp.float32),
        input_output_aliases={1: 0},                 # out reuses the x buffer
        compiler_params=pltpu.CompilerParams(
            dimension_semantics=("parallel", "parallel"),
            vmem_limit_bytes=vmem_limit),
    )(y2, x, scale2, shift2)
    return out


def basic_block_nhwc(x_nhwc, w1, g1, b1, w2, g2, b2, tile_h=None):
    """BasicBlock forward (stride=1, no downsample) on NHWC input; conv
    weights in HWIO (3, 3, Cin, Cout); BatchNorm in training mode."""
    x = x_nhwc.astype(jnp.float32)
    N, H, W, C = x.shape
    assert w1.shape[-1] == C and w2.shape[-1] == C, \
        "no-downsample BasicBlock needs inplanes == planes"
    vmem_limit = _vmem_limit_bytes()
    if tile_h is None:
        tile_h = _pick_tile_h(H, W, C, C, vmem_limit)
    assert H % tile_h == 0, "tile_h must divide H"
    return _basic_block_nhwc_impl(x, w1, g1, b1, w2, g2, b2,
                                  tile_h=int(tile_h),
                                  vmem_limit=int(vmem_limit))


def basic_block(x_nchw, w1, g1, b1, w2, g2, b2, tile_h=None):
    """NCHW wrapper for PyTorch-layout parity (adds two HBM transposes; prefer
    basic_block_nhwc when the caller can supply/accept NHWC)."""
    x = jnp.transpose(x_nchw, (0, 2, 3, 1))
    out = basic_block_nhwc(x, w1, g1, b1, w2, g2, b2, tile_h=tile_h)
    return jnp.transpose(out, (0, 3, 1, 2))


# ----------------------------------------------------------------------------
# Pure-JAX reference (mirrors the kernel's precision policy)
# ----------------------------------------------------------------------------
def _reference(x_nchw, w1, g1, b1, w2, g2, b2):
    """bf16 conv operands with f32 accumulation, bf16 inter-stage storage, BN
    statistics taken from the f32 conv output, all other math in f32."""
    x = jnp.transpose(x_nchw, (0, 2, 3, 1)).astype(jnp.float32)

    def conv(y, w):
        return jax.lax.conv_general_dilated(
            y.astype(jnp.bfloat16), w.astype(jnp.bfloat16),
            window_strides=(1, 1), padding=[(1, 1), (1, 1)],
            dimension_numbers=("NHWC", "HWIO", "NHWC"),
            preferred_element_type=jnp.float32)

    def bn_affine(y, g, b):
        mean = y.mean(axis=(0, 1, 2))
        var = (y * y).mean(axis=(0, 1, 2)) - mean * mean
        inv = jax.lax.rsqrt(var + _EPS)
        return g * inv, b - mean * g * inv

    y1 = conv(x, w1)
    sc1, sh1 = bn_affine(y1, g1, b1)
    z1 = jax.nn.relu(y1.astype(jnp.bfloat16).astype(jnp.float32) * sc1 + sh1)
    y2 = conv(z1, w2)
    sc2, sh2 = bn_affine(y2, g2, b2)
    z2 = y2.astype(jnp.bfloat16).astype(jnp.float32) * sc2 + sh2
    out = jax.nn.relu(z2 + x)
    return jnp.transpose(out, (0, 3, 1, 2))


if __name__ == "__main__":
    key = jax.random.PRNGKey(0)
    kx, k1, k2, kg1, kb1, kg2, kb2 = jax.random.split(key, 7)

    # LoFTR-representative channel count (planes >= 128 keeps the channel-last
    # layout lane-dense); small spatial extent keeps the demo fast.
    N, C, H, W = 2, 128, 16, 16
    x = jax.random.normal(kx, (N, C, H, W), jnp.float32)

    # conv weights in HWIO layout (3, 3, Cin, Cout); bias=False in the module.
    w1 = jax.random.normal(k1, (3, 3, C, C), jnp.float32) * 0.1
    w2 = jax.random.normal(k2, (3, 3, C, C), jnp.float32) * 0.1

    # BatchNorm affine parameters.
    g1 = 1.0 + 0.1 * jax.random.normal(kg1, (C,), jnp.float32)
    b1 = 0.1 * jax.random.normal(kb1, (C,), jnp.float32)
    g2 = 1.0 + 0.1 * jax.random.normal(kg2, (C,), jnp.float32)
    b2 = 0.1 * jax.random.normal(kb2, (C,), jnp.float32)

    ref = _reference(x, w1, g1, b1, w2, g2, b2)

    # 1) explicit tile_h=8 -> 2 row tiles per image, exercising the halo path.
    out = jax.block_until_ready(basic_block(x, w1, g1, b1, w2, g2, b2, tile_h=8))
    assert out.shape == (N, C, H, W)
    assert jnp.allclose(out, ref, atol=1e-2, rtol=1e-2), (
        f"mismatch vs reference (tile_h=8): "
        f"max abs diff {jnp.max(jnp.abs(out - ref))}")

    # 2) auto tile selection (whole image per row-tile on this small input).
    out = jax.block_until_ready(basic_block(x, w1, g1, b1, w2, g2, b2))
    assert jnp.allclose(out, ref, atol=1e-2, rtol=1e-2), (
        f"mismatch vs reference (auto tile): "
        f"max abs diff {jnp.max(jnp.abs(out - ref))}")

    print("KERNEL_OK")
</pallas_src>

<mosaic_0001>
module attributes {stable_mosaic.version = 11 : i64} {
  func.func @_conv3x3_kernel(%arg0: i32, %arg1: i32, %arg2: memref<1x8x16x128xf32, #tpu.memory_space<vmem>>, %arg3: memref<1x1x16x128xf32, #tpu.memory_space<vmem>>, %arg4: memref<1x1x16x128xf32, #tpu.memory_space<vmem>>, %arg5: memref<9x128x128xbf16, #tpu.memory_space<vmem>>, %arg6: memref<1x128xf32, #tpu.memory_space<vmem>>, %arg7: memref<1x128xf32, #tpu.memory_space<vmem>>, %arg8: memref<1x8x16x128xbf16, #tpu.memory_space<vmem>>, %arg9: memref<1x1x2x128xf32, #tpu.memory_space<vmem>>) attributes {dimension_semantics = [#tpu.dimension_semantics<parallel>, #tpu.dimension_semantics<parallel>], iteration_bounds = array<i64: 2, 2>, scalar_prefetch = 0 : i64, scratch_operands = 0 : i64, tpu.core_type = #tpu.core_type<tc>, window_params = [{transform_indices = @transform_0, window_bounds = array<i64: 1, 8, 16, 128>}, {transform_indices = @transform_1, window_bounds = array<i64: 1, 1, 16, 128>}, {transform_indices = @transform_2, window_bounds = array<i64: 1, 1, 16, 128>}, {pipeline_mode = #tpu.pipeline_mode<synchronous>, transform_indices = @transform_3, window_bounds = array<i64: 9, 128, 128>}, {pipeline_mode = #tpu.pipeline_mode<synchronous>, transform_indices = @transform_4, window_bounds = array<i64: 1, 128>}, {pipeline_mode = #tpu.pipeline_mode<synchronous>, transform_indices = @transform_5, window_bounds = array<i64: 1, 128>}, {transform_indices = @transform_6, window_bounds = array<i64: 1, 8, 16, 128>}, {transform_indices = @transform_7, window_bounds = array<i64: 1, 1, 2, 128>}]} {
    %c0 = arith.constant 0 : index
    %c0_0 = arith.constant 0 : index
    %0 = vector.load %arg6[%c0, %c0_0] : memref<1x128xf32, #tpu.memory_space<vmem>>, vector<1x128xf32>
    %c0_1 = arith.constant 0 : index
    %c0_2 = arith.constant 0 : index
    %1 = vector.load %arg7[%c0_1, %c0_2] : memref<1x128xf32, #tpu.memory_space<vmem>>, vector<1x128xf32>
    %c0_3 = arith.constant 0 : index
    %c0_4 = arith.constant 0 : index
    %c0_5 = arith.constant 0 : index
    %c0_6 = arith.constant 0 : index
    %2 = vector.load %arg2[%c0_3, %c0_4, %c0_5, %c0_6] : memref<1x8x16x128xf32, #tpu.memory_space<vmem>>, vector<1x8x16x128xf32>
    %3 = vector.shape_cast %2 : vector<1x8x16x128xf32> to vector<8x16x128xf32>
    %4 = vector.shape_cast %0 : vector<1x128xf32> to vector<1x1x128xf32>
    %5 = vector.broadcast %4 : vector<1x1x128xf32> to vector<8x16x128xf32>
    %6 = arith.mulf %3, %5 : vector<8x16x128xf32>
    %7 = vector.shape_cast %1 : vector<1x128xf32> to vector<1x1x128xf32>
    %8 = vector.broadcast %7 : vector<1x1x128xf32> to vector<8x16x128xf32>
    %9 = arith.addf %6, %8 : vector<8x16x128xf32>
    %c0_7 = arith.constant 0 : index
    %c0_8 = arith.constant 0 : index
    %c0_9 = arith.constant 0 : index
    %c0_10 = arith.constant 0 : index
    %10 = vector.load %arg3[%c0_7, %c0_8, %c0_9, %c0_10] : memref<1x1x16x128xf32, #tpu.memory_space<vmem>>, vector<1x1x16x128xf32>
    %11 = vector.shape_cast %10 : vector<1x1x16x128xf32> to vector<1x16x128xf32>
    %12 = vector.shape_cast %0 : vector<1x128xf32> to vector<1x1x128xf32>
    %13 = vector.broadcast %12 : vector<1x1x128xf32> to vector<1x16x128xf32>
    %14 = arith.mulf %11, %13 : vector<1x16x128xf32>
    %15 = vector.shape_cast %1 : vector<1x128xf32> to vector<1x1x128xf32>
    %16 = vector.broadcast %15 : vector<1x1x128xf32> to vector<1x16x128xf32>
    %17 = arith.addf %14, %16 : vector<1x16x128xf32>
    %c0_i32 = arith.constant 0 : i32
    %18 = arith.cmpi sgt, %arg1, %c0_i32 : i32
    %19 = arith.extui %18 : i1 to i32
    %20 = arith.sitofp %19 : i32 to f32
    %21 = vector.broadcast %20 : f32 to vector<1x16x128xf32>
    %22 = arith.mulf %17, %21 : vector<1x16x128xf32>
    %c0_11 = arith.constant 0 : index
    %c0_12 = arith.constant 0 : index
    %c0_13 = arith.constant 0 : index
    %c0_14 = arith.constant 0 : index
    %23 = vector.load %arg4[%c0_11, %c0_12, %c0_13, %c0_14] : memref<1x1x16x128xf32, #tpu.memory_space<vmem>>, vector<1x1x16x128xf32>
    %24 = vector.shape_cast %23 : vector<1x1x16x128xf32> to vector<1x16x128xf32>
    %25 = vector.shape_cast %0 : vector<1x128xf32> to vector<1x1x128xf32>
    %26 = vector.broadcast %25 : vector<1x1x128xf32> to vector<1x16x128xf32>
    %27 = arith.mulf %24, %26 : vector<1x16x128xf32>
    %28 = vector.shape_cast %1 : vector<1x128xf32> to vector<1x1x128xf32>
    %29 = vector.broadcast %28 : vector<1x1x128xf32> to vector<1x16x128xf32>
    %30 = arith.addf %27, %29 : vector<1x16x128xf32>
    %c1_i32 = arith.constant 1 : i32
    %31 = arith.cmpi slt, %arg1, %c1_i32 : i32
    %32 = arith.extui %31 : i1 to i32
    %33 = arith.sitofp %32 : i32 to f32
    %34 = vector.broadcast %33 : f32 to vector<1x16x128xf32>
    %35 = arith.mulf %30, %34 : vector<1x16x128xf32>
    %cst = arith.constant 0.000000e+00 : f32
    %36 = vector.broadcast %cst : f32 to vector<10x1x128xf32>
    %37 = tpu.concatenate %22, %9, %35 in 0 : vector<1x16x128xf32>, vector<8x16x128xf32>, vector<1x16x128xf32> -> vector<10x16x128xf32>
    %38 = tpu.concatenate %36, %37, %36 in 1 : vector<10x1x128xf32>, vector<10x16x128xf32>, vector<10x1x128xf32> -> vector<10x18x128xf32>
    %cst_15 = arith.constant 0.000000e+00 : f32
    %39 = vector.broadcast %cst_15 : f32 to vector<128x128xf32>
    %40 = vector.extract_strided_slice %38 {offsets = [0, 0, 0], sizes = [8, 16, 128], strides = [1, 1, 1]} : vector<10x18x128xf32> to vector<8x16x128xf32>
    %41 = arith.truncf %40 : vector<8x16x128xf32> to vector<8x16x128xbf16>
    %42 = vector.shape_cast %41 : vector<8x16x128xbf16> to vector<128x128xbf16>
    %c0_16 = arith.constant 0 : index
    %c0_17 = arith.constant 0 : index
    %c0_18 = arith.constant 0 : index
    %43 = vector.load %arg5[%c0_16, %c0_17, %c0_18] : memref<9x128x128xbf16, #tpu.memory_space<vmem>>, vector<1x128x128xbf16>
    %44 = vector.shape_cast %43 : vector<1x128x128xbf16> to vector<128x128xbf16>
    %cst_19 = arith.constant dense<0.000000e+00> : vector<128x128xf32>
    %45 = tpu.matmul %42, %44, %cst_19 {dimension_numbers = #tpu.dot_dimension_numbers<[1], [0], [0], [1], [0, 0, 1, 1], [], []>} : vector<128x128xbf16>, vector<128x128xbf16>, vector<128x128xf32> -> vector<128x128xf32>
    %46 = arith.addf %39, %45 : vector<128x128xf32>
    %47 = vector.extract_strided_slice %38 {offsets = [0, 1, 0], sizes = [8, 16, 128], strides = [1, 1, 1]} : vector<10x18x128xf32> to vector<8x16x128xf32>
    %48 = arith.truncf %47 : vector<8x16x128xf32> to vector<8x16x128xbf16>
    %49 = vector.shape_cast %48 : vector<8x16x128xbf16> to vector<128x128xbf16>
    %c1 = arith.constant 1 : index
    %c0_20 = arith.constant 0 : index
    %c0_21 = arith.constant 0 : index
    %50 = vector.load %arg5[%c1, %c0_20, %c0_21] : memref<9x128x128xbf16, #tpu.memory_space<vmem>>, vector<1x128x128xbf16>
    %51 = vector.shape_cast %50 : vector<1x128x128xbf16> to vector<128x128xbf16>
    %cst_22 = arith.constant dense<0.000000e+00> : vector<128x128xf32>
    %52 = tpu.matmul %49, %51, %cst_22 {dimension_numbers = #tpu.dot_dimension_numbers<[1], [0], [0], [1], [0, 0, 1, 1], [], []>} : vector<128x128xbf16>, vector<128x128xbf16>, vector<128x128xf32> -> vector<128x128xf32>
    %53 = arith.addf %46, %52 : vector<128x128xf32>
    %54 = vector.extract_strided_slice %38 {offsets = [0, 2, 0], sizes = [8, 16, 128], strides = [1, 1, 1]} : vector<10x18x128xf32> to vector<8x16x128xf32>
    %55 = arith.truncf %54 : vector<8x16x128xf32> to vector<8x16x128xbf16>
    %56 = vector.shape_cast %55 : vector<8x16x128xbf16> to vector<128x128xbf16>
    %c2 = arith.constant 2 : index
    %c0_23 = arith.constant 0 : index
    %c0_24 = arith.constant 0 : index
    %57 = vector.load %arg5[%c2, %c0_23, %c0_24] : memref<9x128x128xbf16, #tpu.memory_space<vmem>>, vector<1x128x128xbf16>
    %58 = vector.shape_cast %57 : vector<1x128x128xbf16> to vector<128x128xbf16>
    %cst_25 = arith.constant dense<0.000000e+00> : vector<128x128xf32>
    %59 = tpu.matmul %56, %58, %cst_25 {dimension_numbers = #tpu.dot_dimension_numbers<[1], [0], [0], [1], [0, 0, 1, 1], [], []>} : vector<128x128xbf16>, vector<128x128xbf16>, vector<128x128xf32> -> vector<128x128xf32>
    %60 = arith.addf %53, %59 : vector<128x128xf32>
    %61 = vector.extract_strided_slice %38 {offsets = [1, 0, 0], sizes = [8, 16, 128], strides = [1, 1, 1]} : vector<10x18x128xf32> to vector<8x16x128xf32>
    %62 = arith.truncf %61 : vector<8x16x128xf32> to vector<8x16x128xbf16>
    %63 = vector.shape_cast %62 : vector<8x16x128xbf16> to vector<128x128xbf16>
    %c3 = arith.constant 3 : index
    %c0_26 = arith.constant 0 : index
    %c0_27 = arith.constant 0 : index
    %64 = vector.load %arg5[%c3, %c0_26, %c0_27] : memref<9x128x128xbf16, #tpu.memory_space<vmem>>, vector<1x128x128xbf16>
    %65 = vector.shape_cast %64 : vector<1x128x128xbf16> to vector<128x128xbf16>
    %cst_28 = arith.constant dense<0.000000e+00> : vector<128x128xf32>
    %66 = tpu.matmul %63, %65, %cst_28 {dimension_numbers = #tpu.dot_dimension_numbers<[1], [0], [0], [1], [0, 0, 1, 1], [], []>} : vector<128x128xbf16>, vector<128x128xbf16>, vector<128x128xf32> -> vector<128x128xf32>
    %67 = arith.addf %60, %66 : vector<128x128xf32>
    %68 = vector.extract_strided_slice %38 {offsets = [1, 1, 0], sizes = [8, 16, 128], strides = [1, 1, 1]} : vector<10x18x128xf32> to vector<8x16x128xf32>
    %69 = arith.truncf %68 : vector<8x16x128xf32> to vector<8x16x128xbf16>
    %70 = vector.shape_cast %69 : vector<8x16x128xbf16> to vector<128x128xbf16>
    %c4 = arith.constant 4 : index
    %c0_29 = arith.constant 0 : index
    %c0_30 = arith.constant 0 : index
    %71 = vector.load %arg5[%c4, %c0_29, %c0_30] : memref<9x128x128xbf16, #tpu.memory_space<vmem>>, vector<1x128x128xbf16>
    %72 = vector.shape_cast %71 : vector<1x128x128xbf16> to vector<128x128xbf16>
    %cst_31 = arith.constant dense<0.000000e+00> : vector<128x128xf32>
    %73 = tpu.matmul %70, %72, %cst_31 {dimension_numbers = #tpu.dot_dimension_numbers<[1], [0], [0], [1], [0, 0, 1, 1], [], []>} : vector<128x128xbf16>, vector<128x128xbf16>, vector<128x128xf32> -> vector<128x128xf32>
    %74 = arith.addf %67, %73 : vector<128x128xf32>
    %75 = vector.extract_strided_slice %38 {offsets = [1, 2, 0], sizes = [8, 16, 128], strides = [1, 1, 1]} : vector<10x18x128xf32> to vector<8x16x128xf32>
    %76 = arith.truncf %75 : vector<8x16x128xf32> to vector<8x16x128xbf16>
    %77 = vector.shape_cast %76 : vector<8x16x128xbf16> to vector<128x128xbf16>
    %c5 = arith.constant 5 : index
    %c0_32 = arith.constant 0 : index
    %c0_33 = arith.constant 0 : index
    %78 = vector.load %arg5[%c5, %c0_32, %c0_33] : memref<9x128x128xbf16, #tpu.memory_space<vmem>>, vector<1x128x128xbf16>
    %79 = vector.shape_cast %78 : vector<1x128x128xbf16> to vector<128x128xbf16>
    %cst_34 = arith.constant dense<0.000000e+00> : vector<128x128xf32>
    %80 = tpu.matmul %77, %79, %cst_34 {dimension_numbers = #tpu.dot_dimension_numbers<[1], [0], [0], [1], [0, 0, 1, 1], [], []>} : vector<128x128xbf16>, vector<128x128xbf16>, vector<128x128xf32> -> vector<128x128xf32>
    %81 = arith.addf %74, %80 : vector<128x128xf32>
    %82 = vector.extract_strided_slice %38 {offsets = [2, 0, 0], sizes = [8, 16, 128], strides = [1, 1, 1]} : vector<10x18x128xf32> to vector<8x16x128xf32>
    %83 = arith.truncf %82 : vector<8x16x128xf32> to vector<8x16x128xbf16>
    %84 = vector.shape_cast %83 : vector<8x16x128xbf16> to vector<128x128xbf16>
    %c6 = arith.constant 6 : index
    %c0_35 = arith.constant 0 : index
    %c0_36 = arith.constant 0 : index
    %85 = vector.load %arg5[%c6, %c0_35, %c0_36] : memref<9x128x128xbf16, #tpu.memory_space<vmem>>, vector<1x128x128xbf16>
    %86 = vector.shape_cast %85 : vector<1x128x128xbf16> to vector<128x128xbf16>
    %cst_37 = arith.constant dense<0.000000e+00> : vector<128x128xf32>
    %87 = tpu.matmul %84, %86, %cst_37 {dimension_numbers = #tpu.dot_dimension_numbers<[1], [0], [0], [1], [0, 0, 1, 1], [], []>} : vector<128x128xbf16>, vector<128x128xbf16>, vector<128x128xf32> -> vector<128x128xf32>
    %88 = arith.addf %81, %87 : vector<128x128xf32>
    %89 = vector.extract_strided_slice %38 {offsets = [2, 1, 0], sizes = [8, 16, 128], strides = [1, 1, 1]} : vector<10x18x128xf32> to vector<8x16x128xf32>
    %90 = arith.truncf %89 : vector<8x16x128xf32> to vector<8x16x128xbf16>
    %91 = vector.shape_cast %90 : vector<8x16x128xbf16> to vector<128x128xbf16>
    %c7 = arith.constant 7 : index
    %c0_38 = arith.constant 0 : index
    %c0_39 = arith.constant 0 : index
    %92 = vector.load %arg5[%c7, %c0_38, %c0_39] : memref<9x128x128xbf16, #tpu.memory_space<vmem>>, vector<1x128x128xbf16>
    %93 = vector.shape_cast %92 : vector<1x128x128xbf16> to vector<128x128xbf16>
    %cst_40 = arith.constant dense<0.000000e+00> : vector<128x128xf32>
    %94 = tpu.matmul %91, %93, %cst_40 {dimension_numbers = #tpu.dot_dimension_numbers<[1], [0], [0], [1], [0, 0, 1, 1], [], []>} : vector<128x128xbf16>, vector<128x128xbf16>, vector<128x128xf32> -> vector<128x128xf32>
    %95 = arith.addf %88, %94 : vector<128x128xf32>
    %96 = vector.extract_strided_slice %38 {offsets = [2, 2, 0], sizes = [8, 16, 128], strides = [1, 1, 1]} : vector<10x18x128xf32> to vector<8x16x128xf32>
    %97 = arith.truncf %96 : vector<8x16x128xf32> to vector<8x16x128xbf16>
    %98 = vector.shape_cast %97 : vector<8x16x128xbf16> to vector<128x128xbf16>
    %c8 = arith.constant 8 : index
    %c0_41 = arith.constant 0 : index
    %c0_42 = arith.constant 0 : index
    %99 = vector.load %arg5[%c8, %c0_41, %c0_42] : memref<9x128x128xbf16, #tpu.memory_space<vmem>>, vector<1x128x128xbf16>
    %100 = vector.shape_cast %99 : vector<1x128x128xbf16> to vector<128x128xbf16>
    %cst_43 = arith.constant dense<0.000000e+00> : vector<128x128xf32>
    %101 = tpu.matmul %98, %100, %cst_43 {dimension_numbers = #tpu.dot_dimension_numbers<[1], [0], [0], [1], [0, 0, 1, 1], [], []>} : vector<128x128xbf16>, vector<128x128xbf16>, vector<128x128xf32> -> vector<128x128xf32>
    %102 = arith.addf %95, %101 : vector<128x128xf32>
    %103 = vector.shape_cast %102 : vector<128x128xf32> to vector<1x8x16x128xf32>
    %104 = arith.truncf %103 : vector<1x8x16x128xf32> to vector<1x8x16x128xbf16>
    %c0_44 = arith.constant 0 : index
    %c0_45 = arith.constant 0 : index
    %c0_46 = arith.constant 0 : index
    %c0_47 = arith.constant 0 : index
    %105 = vector.load %arg8[%c0_44, %c0_45, %c0_46, %c0_47] : memref<1x8x16x128xbf16, #tpu.memory_space<vmem>>, vector<1x8x16x128xbf16>
    tpu.vector_store %arg8[%c0_44, %c0_45, %c0_46, %c0_47], %104 {strides = array<i32>} : memref<1x8x16x128xbf16, #tpu.memory_space<vmem>>, vector<1x8x16x128xbf16>,
    %cst_48 = arith.constant dense<0.000000e+00> : vector<128xf32>
    %106 = vector.multi_reduction <add>, %102, %cst_48 [0] : vector<128x128xf32> to vector<128xf32>
    %107 = vector.shape_cast %106 : vector<128xf32> to vector<1x128xf32>
    %c0_49 = arith.constant 0 : index
    %c0_50 = arith.constant 0 : index
    %c0_51 = arith.constant 0 : index
    %c0_52 = arith.constant 0 : index
    %108 = vector.load %arg9[%c0_49, %c0_50, %c0_51, %c0_52] : memref<1x1x2x128xf32, #tpu.memory_space<vmem>>, vector<1x1x1x128xf32>
    %109 = vector.shape_cast %108 : vector<1x1x1x128xf32> to vector<1x128xf32>
    %110 = vector.shape_cast %107 : vector<1x128xf32> to vector<1x1x1x128xf32>
    tpu.vector_store %arg9[%c0_49, %c0_50, %c0_51, %c0_52], %110 {strides = array<i32>} : memref<1x1x2x128xf32, #tpu.memory_space<vmem>>, vector<1x1x1x128xf32>,
    %111 = arith.mulf %102, %102 : vector<128x128xf32>
    %cst_53 = arith.constant dense<0.000000e+00> : vector<128xf32>
    %112 = vector.multi_reduction <add>, %111, %cst_53 [0] : vector<128x128xf32> to vector<128xf32>
    %113 = vector.shape_cast %112 : vector<128xf32> to vector<1x128xf32>
    %c0_54 = arith.constant 0 : index
    %c0_55 = arith.constant 0 : index
    %c1_56 = arith.constant 1 : index
    %c0_57 = arith.constant 0 : index
    %114 = vector.load %arg9[%c0_54, %c0_55, %c1_56, %c0_57] : memref<1x1x2x128xf32, #tpu.memory_space<vmem>>, vector<1x1x1x128xf32>
    %115 = vector.shape_cast %114 : vector<1x1x1x128xf32> to vector<1x128xf32>
    %116 = vector.shape_cast %113 : vector<1x128xf32> to vector<1x1x1x128xf32>
    tpu.vector_store %arg9[%c0_54, %c0_55, %c1_56, %c0_57], %116 {strides = array<i32>} : memref<1x1x2x128xf32, #tpu.memory_space<vmem>>, vector<1x1x1x128xf32>,
    return
  }
  func.func @transform_0(%arg0: i32, %arg1: i32) -> (i32, i32, i32, i32) {
    %c0_i32 = arith.constant 0 : i32
    %c0_i32_0 = arith.constant 0 : i32
    %c0_i32_1 = arith.constant 0 : i32
    return %arg0, %arg1, %c0_i32, %c0_i32_0 : i32, i32, i32, i32
  }
  func.func @transform_1(%arg0: i32, %arg1: i32) -> (i32, i32, i32, i32) {
    %c8_i32 = arith.constant 8 : i32
    %0 = arith.muli %arg1, %c8_i32 : i32
    %c1_i32 = arith.constant 1 : i32
    %1 = arith.subi %0, %c1_i32 : i32
    %c0_i32 = arith.constant 0 : i32
    %2 = arith.maxsi %1, %c0_i32 : i32
    %c0_i32_0 = arith.constant 0 : i32
    %c0_i32_1 = arith.constant 0 : i32
    %c0_i32_2 = arith.constant 0 : i32
    return %arg0, %2, %c0_i32_0, %c0_i32_1 : i32, i32, i32, i32
  }
  func.func @transform_2(%arg0: i32, %arg1: i32) -> (i32, i32, i32, i32) {
    %c1_i32 = arith.constant 1 : i32
    %0 = arith.addi %arg1, %c1_i32 : i32
    %c8_i32 = arith.constant 8 : i32
    %1 = arith.muli %0, %c8_i32 : i32
    %c15_i32 = arith.constant 15 : i32
    %2 = arith.minsi %1, %c15_i32 : i32
    %c0_i32 = arith.constant 0 : i32
    %c0_i32_0 = arith.constant 0 : i32
    %c0_i32_1 = arith.constant 0 : i32
    return %arg0, %2, %c0_i32, %c0_i32_0 : i32, i32, i32, i32
  }
  func.func @transform_3(%arg0: i32, %arg1: i32) -> (i32, i32, i32) {
    %c0_i32 = arith.constant 0 : i32
    %c0_i32_0 = arith.constant 0 : i32
    %c0_i32_1 = arith.constant 0 : i32
    %c0_i32_2 = arith.constant 0 : i32
    return %c0_i32, %c0_i32_0, %c0_i32_1 : i32, i32, i32
  }
  func.func @transform_4(%arg0: i32, %arg1: i32) -> (i32, i32) {
    %c0_i32 = arith.constant 0 : i32
    %c0_i32_0 = arith.constant 0 : i32
    %c0_i32_1 = arith.constant 0 : i32
    return %c0_i32, %c0_i32_0 : i32, i32
  }
  func.func @transform_5(%arg0: i32, %arg1: i32) -> (i32, i32) {
    %c0_i32 = arith.constant 0 : i32
    %c0_i32_0 = arith.constant 0 : i32
    %c0_i32_1 = arith.constant 0 : i32
    return %c0_i32, %c0_i32_0 : i32, i32
  }
  func.func @transform_6(%arg0: i32, %arg1: i32) -> (i32, i32, i32, i32) {
    %c0_i32 = arith.constant 0 : i32
    %c0_i32_0 = arith.constant 0 : i32
    %c0_i32_1 = arith.constant 0 : i32
    return %arg0, %arg1, %c0_i32, %c0_i32_0 : i32, i32, i32, i32
  }
  func.func @transform_7(%arg0: i32, %arg1: i32) -> (i32, i32, i32, i32) {
    %c0_i32 = arith.constant 0 : i32
    %c0_i32_0 = arith.constant 0 : i32
    %c0_i32_1 = arith.constant 0 : i32
    return %arg0, %arg1, %c0_i32, %c0_i32_0 : i32, i32, i32, i32
  }
}

module attributes {stable_mosaic.version = 11 : i64} {
  func.func @_conv3x3_kernel(%arg0: i32, %arg1: i32, %arg2: memref<1x8x16x128xbf16, #tpu.memory_space<vmem>>, %arg3: memref<1x1x16x128xbf16, #tpu.memory_space<vmem>>, %arg4: memref<1x1x16x128xbf16, #tpu.memory_space<vmem>>, %arg5: memref<9x128x128xbf16, #tpu.memory_space<vmem>>, %arg6: memref<1x128xf32, #tpu.memory_space<vmem>>, %arg7: memref<1x128xf32, #tpu.memory_space<vmem>>, %arg8: memref<1x8x16x128xbf16, #tpu.memory_space<vmem>>, %arg9: memref<1x1x2x128xf32, #tpu.memory_space<vmem>>) attributes {dimension_semantics = [#tpu.dimension_semantics<parallel>, #tpu.dimension_semantics<parallel>], iteration_bounds = array<i64: 2, 2>, scalar_prefetch = 0 : i64, scratch_operands = 0 : i64, tpu.core_type = #tpu.core_type<tc>, window_params = [{transform_indices = @transform_0, window_bounds = array<i64: 1, 8, 16, 128>}, {transform_indices = @transform_1, window_bounds = array<i64: 1, 1, 16, 128>}, {transform_indices = @transform_2, window_bounds = array<i64: 1, 1, 16, 128>}, {pipeline_mode = #tpu.pipeline_mode<synchronous>, transform_indices = @transform_3, window_bounds = array<i64: 9, 128, 128>}, {pipeline_mode = #tpu.pipeline_mode<synchronous>, transform_indices = @transform_4, window_bounds = array<i64: 1, 128>}, {pipeline_mode = #tpu.pipeline_mode<synchronous>, transform_indices = @transform_5, window_bounds = array<i64: 1, 128>}, {transform_indices = @transform_6, window_bounds = array<i64: 1, 8, 16, 128>}, {transform_indices = @transform_7, window_bounds = array<i64: 1, 1, 2, 128>}]} {
    %c0 = arith.constant 0 : index
    %c0_0 = arith.constant 0 : index
    %0 = vector.load %arg6[%c0, %c0_0] : memref<1x128xf32, #tpu.memory_space<vmem>>, vector<1x128xf32>
    %c0_1 = arith.constant 0 : index
    %c0_2 = arith.constant 0 : index
    %1 = vector.load %arg7[%c0_1, %c0_2] : memref<1x128xf32, #tpu.memory_space<vmem>>, vector<1x128xf32>
    %c0_3 = arith.constant 0 : index
    %c0_4 = arith.constant 0 : index
    %c0_5 = arith.constant 0 : index
    %c0_6 = arith.constant 0 : index
    %2 = vector.load %arg2[%c0_3, %c0_4, %c0_5, %c0_6] : memref<1x8x16x128xbf16, #tpu.memory_space<vmem>>, vector<1x8x16x128xbf16>
    %3 = vector.shape_cast %2 : vector<1x8x16x128xbf16> to vector<8x16x128xbf16>
    %4 = arith.extf %3 : vector<8x16x128xbf16> to vector<8x16x128xf32>
    %5 = vector.shape_cast %0 : vector<1x128xf32> to vector<1x1x128xf32>
    %6 = vector.broadcast %5 : vector<1x1x128xf32> to vector<8x16x128xf32>
    %7 = arith.mulf %4, %6 : vector<8x16x128xf32>
    %8 = vector.shape_cast %1 : vector<1x128xf32> to vector<1x1x128xf32>
    %9 = vector.broadcast %8 : vector<1x1x128xf32> to vector<8x16x128xf32>
    %10 = arith.addf %7, %9 : vector<8x16x128xf32>
    %cst = arith.constant 0.000000e+00 : f32
    %11 = vector.broadcast %cst : f32 to vector<8x16x128xf32>
    %12 = arith.maximumf %10, %11 : vector<8x16x128xf32>
    %c0_7 = arith.constant 0 : index
    %c0_8 = arith.constant 0 : index
    %c0_9 = arith.constant 0 : index
    %c0_10 = arith.constant 0 : index
    %13 = vector.load %arg3[%c0_7, %c0_8, %c0_9, %c0_10] : memref<1x1x16x128xbf16, #tpu.memory_space<vmem>>, vector<1x1x16x128xbf16>
    %14 = vector.shape_cast %13 : vector<1x1x16x128xbf16> to vector<1x16x128xbf16>
    %15 = arith.extf %14 : vector<1x16x128xbf16> to vector<1x16x128xf32>
    %16 = vector.shape_cast %0 : vector<1x128xf32> to vector<1x1x128xf32>
    %17 = vector.broadcast %16 : vector<1x1x128xf32> to vector<1x16x128xf32>
    %18 = arith.mulf %15, %17 : vector<1x16x128xf32>
    %19 = vector.shape_cast %1 : vector<1x128xf32> to vector<1x1x128xf32>
    %20 = vector.broadcast %19 : vector<1x1x128xf32> to vector<1x16x128xf32>
    %21 = arith.addf %18, %20 : vector<1x16x128xf32>
    %cst_11 = arith.constant 0.000000e+00 : f32
    %22 = vector.broadcast %cst_11 : f32 to vector<1x16x128xf32>
    %23 = arith.maximumf %21, %22 : vector<1x16x128xf32>
    %c0_i32 = arith.constant 0 : i32
    %24 = arith.cmpi sgt, %arg1, %c0_i32 : i32
    %25 = arith.extui %24 : i1 to i32
    %26 = arith.sitofp %25 : i32 to f32
    %27 = vector.broadcast %26 : f32 to vector<1x16x128xf32>
    %28 = arith.mulf %23, %27 : vector<1x16x128xf32>
    %c0_12 = arith.constant 0 : index
    %c0_13 = arith.constant 0 : index
    %c0_14 = arith.constant 0 : index
    %c0_15 = arith.constant 0 : index
    %29 = vector.load %arg4[%c0_12, %c0_13, %c0_14, %c0_15] : memref<1x1x16x128xbf16, #tpu.memory_space<vmem>>, vector<1x1x16x128xbf16>
    %30 = vector.shape_cast %29 : vector<1x1x16x128xbf16> to vector<1x16x128xbf16>
    %31 = arith.extf %30 : vector<1x16x128xbf16> to vector<1x16x128xf32>
    %32 = vector.shape_cast %0 : vector<1x128xf32> to vector<1x1x128xf32>
    %33 = vector.broadcast %32 : vector<1x1x128xf32> to vector<1x16x128xf32>
    %34 = arith.mulf %31, %33 : vector<1x16x128xf32>
    %35 = vector.shape_cast %1 : vector<1x128xf32> to vector<1x1x128xf32>
    %36 = vector.broadcast %35 : vector<1x1x128xf32> to vector<1x16x128xf32>
    %37 = arith.addf %34, %36 : vector<1x16x128xf32>
    %cst_16 = arith.constant 0.000000e+00 : f32
    %38 = vector.broadcast %cst_16 : f32 to vector<1x16x128xf32>
    %39 = arith.maximumf %37, %38 : vector<1x16x128xf32>
    %c1_i32 = arith.constant 1 : i32
    %40 = arith.cmpi slt, %arg1, %c1_i32 : i32
    %41 = arith.extui %40 : i1 to i32
    %42 = arith.sitofp %41 : i32 to f32
    %43 = vector.broadcast %42 : f32 to vector<1x16x128xf32>
    %44 = arith.mulf %39, %43 : vector<1x16x128xf32>
    %cst_17 = arith.constant 0.000000e+00 : f32
    %45 = vector.broadcast %cst_17 : f32 to vector<10x1x128xf32>
    %46 = tpu.concatenate %28, %12, %44 in 0 : vector<1x16x128xf32>, vector<8x16x128xf32>, vector<1x16x128xf32> -> vector<10x16x128xf32>
    %47 = tpu.concatenate %45, %46, %45 in 1 : vector<10x1x128xf32>, vector<10x16x128xf32>, vector<10x1x128xf32> -> vector<10x18x128xf32>
    %cst_18 = arith.constant 0.000000e+00 : f32
    %48 = vector.broadcast %cst_18 : f32 to vector<128x128xf32>
    %49 = vector.extract_strided_slice %47 {offsets = [0, 0, 0], sizes = [8, 16, 128], strides = [1, 1, 1]} : vector<10x18x128xf32> to vector<8x16x128xf32>
    %50 = arith.truncf %49 : vector<8x16x128xf32> to vector<8x16x128xbf16>
    %51 = vector.shape_cast %50 : vector<8x16x128xbf16> to vector<128x128xbf16>
    %c0_19 = arith.constant 0 : index
    %c0_20 = arith.constant 0 : index
    %c0_21 = arith.constant 0 : index
    %52 = vector.load %arg5[%c0_19, %c0_20, %c0_21] : memref<9x128x128xbf16, #tpu.memory_space<vmem>>, vector<1x128x128xbf16>
    %53 = vector.shape_cast %52 : vector<1x128x128xbf16> to vector<128x128xbf16>
    %cst_22 = arith.constant dense<0.000000e+00> : vector<128x128xf32>
    %54 = tpu.matmul %51, %53, %cst_22 {dimension_numbers = #tpu.dot_dimension_numbers<[1], [0], [0], [1], [0, 0, 1, 1], [], []>} : vector<128x128xbf16>, vector<128x128xbf16>, vector<128x128xf32> -> vector<128x128xf32>
    %55 = arith.addf %48, %54 : vector<128x128xf32>
    %56 = vector.extract_strided_slice %47 {offsets = [0, 1, 0], sizes = [8, 16, 128], strides = [1, 1, 1]} : vector<10x18x128xf32> to vector<8x16x128xf32>
    %57 = arith.truncf %56 : vector<8x16x128xf32> to vector<8x16x128xbf16>
    %58 = vector.shape_cast %57 : vector<8x16x128xbf16> to vector<128x128xbf16>
    %c1 = arith.constant 1 : index
    %c0_23 = arith.constant 0 : index
    %c0_24 = arith.constant 0 : index
    %59 = vector.load %arg5[%c1, %c0_23, %c0_24] : memref<9x128x128xbf16, #tpu.memory_space<vmem>>, vector<1x128x128xbf16>
    %60 = vector.shape_cast %59 : vector<1x128x128xbf16> to vector<128x128xbf16>
    %cst_25 = arith.constant dense<0.000000e+00> : vector<128x128xf32>
    %61 = tpu.matmul %58, %60, %cst_25 {dimension_numbers = #tpu.dot_dimension_numbers<[1], [0], [0], [1], [0, 0, 1, 1], [], []>} : vector<128x128xbf16>, vector<128x128xbf16>, vector<128x128xf32> -> vector<128x128xf32>
    %62 = arith.addf %55, %61 : vector<128x128xf32>
    %63 = vector.extract_strided_slice %47 {offsets = [0, 2, 0], sizes = [8, 16, 128], strides = [1, 1, 1]} : vector<10x18x128xf32> to vector<8x16x128xf32>
    %64 = arith.truncf %63 : vector<8x16x128xf32> to vector<8x16x128xbf16>
    %65 = vector.shape_cast %64 : vector<8x16x128xbf16> to vector<128x128xbf16>
    %c2 = arith.constant 2 : index
    %c0_26 = arith.constant 0 : index
    %c0_27 = arith.constant 0 : index
    %66 = vector.load %arg5[%c2, %c0_26, %c0_27] : memref<9x128x128xbf16, #tpu.memory_space<vmem>>, vector<1x128x128xbf16>
    %67 = vector.shape_cast %66 : vector<1x128x128xbf16> to vector<128x128xbf16>
    %cst_28 = arith.constant dense<0.000000e+00> : vector<128x128xf32>
    %68 = tpu.matmul %65, %67, %cst_28 {dimension_numbers = #tpu.dot_dimension_numbers<[1], [0], [0], [1], [0, 0, 1, 1], [], []>} : vector<128x128xbf16>, vector<128x128xbf16>, vector<128x128xf32> -> vector<128x128xf32>
    %69 = arith.addf %62, %68 : vector<128x128xf32>
    %70 = vector.extract_strided_slice %47 {offsets = [1, 0, 0], sizes = [8, 16, 128], strides = [1, 1, 1]} : vector<10x18x128xf32> to vector<8x16x128xf32>
    %71 = arith.truncf %70 : vector<8x16x128xf32> to vector<8x16x128xbf16>
    %72 = vector.shape_cast %71 : vector<8x16x128xbf16> to vector<128x128xbf16>
    %c3 = arith.constant 3 : index
    %c0_29 = arith.constant 0 : index
    %c0_30 = arith.constant 0 : index
    %73 = vector.load %arg5[%c3, %c0_29, %c0_30] : memref<9x128x128xbf16, #tpu.memory_space<vmem>>, vector<1x128x128xbf16>
    %74 = vector.shape_cast %73 : vector<1x128x128xbf16> to vector<128x128xbf16>
    %cst_31 = arith.constant dense<0.000000e+00> : vector<128x128xf32>
    %75 = tpu.matmul %72, %74, %cst_31 {dimension_numbers = #tpu.dot_dimension_numbers<[1], [0], [0], [1], [0, 0, 1, 1], [], []>} : vector<128x128xbf16>, vector<128x128xbf16>, vector<128x128xf32> -> vector<128x128xf32>
    %76 = arith.addf %69, %75 : vector<128x128xf32>
    %77 = vector.extract_strided_slice %47 {offsets = [1, 1, 0], sizes = [8, 16, 128], strides = [1, 1, 1]} : vector<10x18x128xf32> to vector<8x16x128xf32>
    %78 = arith.truncf %77 : vector<8x16x128xf32> to vector<8x16x128xbf16>
    %79 = vector.shape_cast %78 : vector<8x16x128xbf16> to vector<128x128xbf16>
    %c4 = arith.constant 4 : index
    %c0_32 = arith.constant 0 : index
    %c0_33 = arith.constant 0 : index
    %80 = vector.load %arg5[%c4, %c0_32, %c0_33] : memref<9x128x128xbf16, #tpu.memory_space<vmem>>, vector<1x128x128xbf16>
    %81 = vector.shape_cast %80 : vector<1x128x128xbf16> to vector<128x128xbf16>
    %cst_34 = arith.constant dense<0.000000e+00> : vector<128x128xf32>
    %82 = tpu.matmul %79, %81, %cst_34 {dimension_numbers = #tpu.dot_dimension_numbers<[1], [0], [0], [1], [0, 0, 1, 1], [], []>} : vector<128x128xbf16>, vector<128x128xbf16>, vector<128x128xf32> -> vector<128x128xf32>
    %83 = arith.addf %76, %82 : vector<128x128xf32>
    %84 = vector.extract_strided_slice %47 {offsets = [1, 2, 0], sizes = [8, 16, 128], strides = [1, 1, 1]} : vector<10x18x128xf32> to vector<8x16x128xf32>
    %85 = arith.truncf %84 : vector<8x16x128xf32> to vector<8x16x128xbf16>
    %86 = vector.shape_cast %85 : vector<8x16x128xbf16> to vector<128x128xbf16>
    %c5 = arith.constant 5 : index
    %c0_35 = arith.constant 0 : index
    %c0_36 = arith.constant 0 : index
    %87 = vector.load %arg5[%c5, %c0_35, %c0_36] : memref<9x128x128xbf16, #tpu.memory_space<vmem>>, vector<1x128x128xbf16>
    %88 = vector.shape_cast %87 : vector<1x128x128xbf16> to vector<128x128xbf16>
    %cst_37 = arith.constant dense<0.000000e+00> : vector<128x128xf32>
    %89 = tpu.matmul %86, %88, %cst_37 {dimension_numbers = #tpu.dot_dimension_numbers<[1], [0], [0], [1], [0, 0, 1, 1], [], []>} : vector<128x128xbf16>, vector<128x128xbf16>, vector<128x128xf32> -> vector<128x128xf32>
    %90 = arith.addf %83, %89 : vector<128x128xf32>
    %91 = vector.extract_strided_slice %47 {offsets = [2, 0, 0], sizes = [8, 16, 128], strides = [1, 1, 1]} : vector<10x18x128xf32> to vector<8x16x128xf32>
    %92 = arith.truncf %91 : vector<8x16x128xf32> to vector<8x16x128xbf16>
    %93 = vector.shape_cast %92 : vector<8x16x128xbf16> to vector<128x128xbf16>
    %c6 = arith.constant 6 : index
    %c0_38 = arith.constant 0 : index
    %c0_39 = arith.constant 0 : index
    %94 = vector.load %arg5[%c6, %c0_38, %c0_39] : memref<9x128x128xbf16, #tpu.memory_space<vmem>>, vector<1x128x128xbf16>
    %95 = vector.shape_cast %94 : vector<1x128x128xbf16> to vector<128x128xbf16>
    %cst_40 = arith.constant dense<0.000000e+00> : vector<128x128xf32>
    %96 = tpu.matmul %93, %95, %cst_40 {dimension_numbers = #tpu.dot_dimension_numbers<[1], [0], [0], [1], [0, 0, 1, 1], [], []>} : vector<128x128xbf16>, vector<128x128xbf16>, vector<128x128xf32> -> vector<128x128xf32>
    %97 = arith.addf %90, %96 : vector<128x128xf32>
    %98 = vector.extract_strided_slice %47 {offsets = [2, 1, 0], sizes = [8, 16, 128], strides = [1, 1, 1]} : vector<10x18x128xf32> to vector<8x16x128xf32>
    %99 = arith.truncf %98 : vector<8x16x128xf32> to vector<8x16x128xbf16>
    %100 = vector.shape_cast %99 : vector<8x16x128xbf16> to vector<128x128xbf16>
    %c7 = arith.constant 7 : index
    %c0_41 = arith.constant 0 : index
    %c0_42 = arith.constant 0 : index
    %101 = vector.load %arg5[%c7, %c0_41, %c0_42] : memref<9x128x128xbf16, #tpu.memory_space<vmem>>, vector<1x128x128xbf16>
    %102 = vector.shape_cast %101 : vector<1x128x128xbf16> to vector<128x128xbf16>
    %cst_43 = arith.constant dense<0.000000e+00> : vector<128x128xf32>
    %103 = tpu.matmul %100, %102, %cst_43 {dimension_numbers = #tpu.dot_dimension_numbers<[1], [0], [0], [1], [0, 0, 1, 1], [], []>} : vector<128x128xbf16>, vector<128x128xbf16>, vector<128x128xf32> -> vector<128x128xf32>
    %104 = arith.addf %97, %103 : vector<128x128xf32>
    %105 = vector.extract_strided_slice %47 {offsets = [2, 2, 0], sizes = [8, 16, 128], strides = [1, 1, 1]} : vector<10x18x128xf32> to vector<8x16x128xf32>
    %106 = arith.truncf %105 : vector<8x16x128xf32> to vector<8x16x128xbf16>
    %107 = vector.shape_cast %106 : vector<8x16x128xbf16> to vector<128x128xbf16>
    %c8 = arith.constant 8 : index
    %c0_44 = arith.constant 0 : index
    %c0_45 = arith.constant 0 : index
    %108 = vector.load %arg5[%c8, %c0_44, %c0_45] : memref<9x128x128xbf16, #tpu.memory_space<vmem>>, vector<1x128x128xbf16>
    %109 = vector.shape_cast %108 : vector<1x128x128xbf16> to vector<128x128xbf16>
    %cst_46 = arith.constant dense<0.000000e+00> : vector<128x128xf32>
    %110 = tpu.matmul %107, %109, %cst_46 {dimension_numbers = #tpu.dot_dimension_numbers<[1], [0], [0], [1], [0, 0, 1, 1], [], []>} : vector<128x128xbf16>, vector<128x128xbf16>, vector<128x128xf32> -> vector<128x128xf32>
    %111 = arith.addf %104, %110 : vector<128x128xf32>
    %112 = vector.shape_cast %111 : vector<128x128xf32> to vector<1x8x16x128xf32>
    %113 = arith.truncf %112 : vector<1x8x16x128xf32> to vector<1x8x16x128xbf16>
    %c0_47 = arith.constant 0 : index
    %c0_48 = arith.constant 0 : index
    %c0_49 = arith.constant 0 : index
    %c0_50 = arith.constant 0 : index
    %114 = vector.load %arg8[%c0_47, %c0_48, %c0_49, %c0_50] : memref<1x8x16x128xbf16, #tpu.memory_space<vmem>>, vector<1x8x16x128xbf16>
    tpu.vector_store %arg8[%c0_47, %c0_48, %c0_49, %c0_50], %113 {strides = array<i32>} : memref<1x8x16x128xbf16, #tpu.memory_space<vmem>>, vector<1x8x16x128xbf16>,
    %cst_51 = arith.constant dense<0.000000e+00> : vector<128xf32>
    %115 = vector.multi_reduction <add>, %111, %cst_51 [0] : vector<128x128xf32> to vector<128xf32>
    %116 = vector.shape_cast %115 : vector<128xf32> to vector<1x128xf32>
    %c0_52 = arith.constant 0 : index
    %c0_53 = arith.constant 0 : index
    %c0_54 = arith.constant 0 : index
    %c0_55 = arith.constant 0 : index
    %117 = vector.load %arg9[%c0_52, %c0_53, %c0_54, %c0_55] : memref<1x1x2x128xf32, #tpu.memory_space<vmem>>, vector<1x1x1x128xf32>
    %118 = vector.shape_cast %117 : vector<1x1x1x128xf32> to vector<1x128xf32>
    %119 = vector.shape_cast %116 : vector<1x128xf32> to vector<1x1x1x128xf32>
    tpu.vector_store %arg9[%c0_52, %c0_53, %c0_54, %c0_55], %119 {strides = array<i32>} : memref<1x1x2x128xf32, #tpu.memory_space<vmem>>, vector<1x1x1x128xf32>,
    %120 = arith.mulf %111, %111 : vector<128x128xf32>
    %cst_56 = arith.constant dense<0.000000e+00> : vector<128xf32>
    %121 = vector.multi_reduction <add>, %120, %cst_56 [0] : vector<128x128xf32> to vector<128xf32>
    %122 = vector.shape_cast %121 : vector<128xf32> to vector<1x128xf32>
    %c0_57 = arith.constant 0 : index
    %c0_58 = arith.constant 0 : index
    %c1_59 = arith.constant 1 : index
    %c0_60 = arith.constant 0 : index
    %123 = vector.load %arg9[%c0_57, %c0_58, %c1_59, %c0_60] : memref<1x1x2x128xf32, #tpu.memory_space<vmem>>, vector<1x1x1x128xf32>
    %124 = vector.shape_cast %123 : vector<1x1x1x128xf32> to vector<1x128xf32>
    %125 = vector.shape_cast %122 : vector<1x128xf32> to vector<1x1x1x128xf32>
    tpu.vector_store %arg9[%c0_57, %c0_58, %c1_59, %c0_60], %125 {strides = array<i32>} : memref<1x1x2x128xf32, #tpu.memory_space<vmem>>, vector<1x1x1x128xf32>,
    return
  }
  func.func @transform_0(%arg0: i32, %arg1: i32) -> (i32, i32, i32, i32) {
    %c0_i32 = arith.constant 0 : i32
    %c0_i32_0 = arith.constant 0 : i32
    %c0_i32_1 = arith.constant 0 : i32
    return %arg0, %arg1, %c0_i32, %c0_i32_0 : i32, i32, i32, i32
  }
  func.func @transform_1(%arg0: i32, %arg1: i32) -> (i32, i32, i32, i32) {
    %c8_i32 = arith.constant 8 : i32
    %0 = arith.muli %arg1, %c8_i32 : i32
    %c1_i32 = arith.constant 1 : i32
    %1 = arith.subi %0, %c1_i32 : i32
    %c0_i32 = arith.constant 0 : i32
    %2 = arith.maxsi %1, %c0_i32 : i32
    %c0_i32_0 = arith.constant 0 : i32
    %c0_i32_1 = arith.constant 0 : i32
    %c0_i32_2 = arith.constant 0 : i32
    return %arg0, %2, %c0_i32_0, %c0_i32_1 : i32, i32, i32, i32
  }
  func.func @transform_2(%arg0: i32, %arg1: i32) -> (i32, i32, i32, i32) {
    %c1_i32 = arith.constant 1 : i32
    %0 = arith.addi %arg1, %c1_i32 : i32
    %c8_i32 = arith.constant 8 : i32
    %1 = arith.muli %0, %c8_i32 : i32
    %c15_i32 = arith.constant 15 : i32
    %2 = arith.minsi %1, %c15_i32 : i32
    %c0_i32 = arith.constant 0 : i32
    %c0_i32_0 = arith.constant 0 : i32
    %c0_i32_1 = arith.constant 0 : i32
    return %arg0, %2, %c0_i32, %c0_i32_0 : i32, i32, i32, i32
  }
  func.func @transform_3(%arg0: i32, %arg1: i32) -> (i32, i32, i32) {
    %c0_i32 = arith.constant 0 : i32
    %c0_i32_0 = arith.constant 0 : i32
    %c0_i32_1 = arith.constant 0 : i32
    %c0_i32_2 = arith.constant 0 : i32
    return %c0_i32, %c0_i32_0, %c0_i32_1 : i32, i32, i32
  }
  func.func @transform_4(%arg0: i32, %arg1: i32) -> (i32, i32) {
    %c0_i32 = arith.constant 0 : i32
    %c0_i32_0 = arith.constant 0 : i32
    %c0_i32_1 = arith.constant 0 : i32
    return %c0_i32, %c0_i32_0 : i32, i32
  }
  func.func @transform_5(%arg0: i32, %arg1: i32) -> (i32, i32) {
    %c0_i32 = arith.constant 0 : i32
    %c0_i32_0 = arith.constant 0 : i32
    %c0_i32_1 = arith.constant 0 : i32
    return %c0_i32, %c0_i32_0 : i32, i32
  }
  func.func @transform_6(%arg0: i32, %arg1: i32) -> (i32, i32, i32, i32) {
    %c0_i32 = arith.constant 0 : i32
    %c0_i32_0 = arith.constant 0 : i32
    %c0_i32_1 = arith.constant 0 : i32
    return %arg0, %arg1, %c0_i32, %c0_i32_0 : i32, i32, i32, i32
  }
  func.func @transform_7(%arg0: i32, %arg1: i32) -> (i32, i32, i32, i32) {
    %c0_i32 = arith.constant 0 : i32
    %c0_i32_0 = arith.constant 0 : i32
    %c0_i32_1 = arith.constant 0 : i32
    return %arg0, %arg1, %c0_i32, %c0_i32_0 : i32, i32, i32, i32
  }
}

module attributes {stable_mosaic.version = 11 : i64} {
  func.func @_epilogue_kernel(%arg0: i32, %arg1: i32, %arg2: memref<1x8x16x128xbf16, #tpu.memory_space<vmem>>, %arg3: memref<1x8x16x128xf32, #tpu.memory_space<vmem>>, %arg4: memref<1x128xf32, #tpu.memory_space<vmem>>, %arg5: memref<1x128xf32, #tpu.memory_space<vmem>>, %arg6: memref<1x8x16x128xf32, #tpu.memory_space<vmem>>) attributes {dimension_semantics = [#tpu.dimension_semantics<parallel>, #tpu.dimension_semantics<parallel>], iteration_bounds = array<i64: 2, 2>, scalar_prefetch = 0 : i64, scratch_operands = 0 : i64, tpu.core_type = #tpu.core_type<tc>, window_params = [{transform_indices = @transform_0, window_bounds = array<i64: 1, 8, 16, 128>}, {transform_indices = @transform_1, window_bounds = array<i64: 1, 8, 16, 128>}, {pipeline_mode = #tpu.pipeline_mode<synchronous>, transform_indices = @transform_2, window_bounds = array<i64: 1, 128>}, {pipeline_mode = #tpu.pipeline_mode<synchronous>, transform_indices = @transform_3, window_bounds = array<i64: 1, 128>}, {transform_indices = @transform_4, window_bounds = array<i64: 1, 8, 16, 128>}]} {
    %c0 = arith.constant 0 : index
    %c0_0 = arith.constant 0 : index
    %c0_1 = arith.constant 0 : index
    %c0_2 = arith.constant 0 : index
    %0 = vector.load %arg2[%c0, %c0_0, %c0_1, %c0_2] : memref<1x8x16x128xbf16, #tpu.memory_space<vmem>>, vector<1x8x16x128xbf16>
    %1 = arith.extf %0 : vector<1x8x16x128xbf16> to vector<1x8x16x128xf32>
    %c0_3 = arith.constant 0 : index
    %c0_4 = arith.constant 0 : index
    %2 = vector.load %arg4[%c0_3, %c0_4] : memref<1x128xf32, #tpu.memory_space<vmem>>, vector<1x128xf32>
    %3 = vector.shape_cast %2 : vector<1x128xf32> to vector<1x1x1x128xf32>
    %4 = vector.broadcast %3 : vector<1x1x1x128xf32> to vector<1x8x16x128xf32>
    %5 = arith.mulf %1, %4 : vector<1x8x16x128xf32>
    %c0_5 = arith.constant 0 : index
    %c0_6 = arith.constant 0 : index
    %6 = vector.load %arg5[%c0_5, %c0_6] : memref<1x128xf32, #tpu.memory_space<vmem>>, vector<1x128xf32>
    %7 = vector.shape_cast %6 : vector<1x128xf32> to vector<1x1x1x128xf32>
    %8 = vector.broadcast %7 : vector<1x1x1x128xf32> to vector<1x8x16x128xf32>
    %9 = arith.addf %5, %8 : vector<1x8x16x128xf32>
    %c0_7 = arith.constant 0 : index
    %c0_8 = arith.constant 0 : index
    %c0_9 = arith.constant 0 : index
    %c0_10 = arith.constant 0 : index
    %10 = vector.load %arg3[%c0_7, %c0_8, %c0_9, %c0_10] : memref<1x8x16x128xf32, #tpu.memory_space<vmem>>, vector<1x8x16x128xf32>
    %11 = arith.addf %9, %10 : vector<1x8x16x128xf32>
    %cst = arith.constant 0.000000e+00 : f32
    %12 = vector.broadcast %cst : f32 to vector<1x8x16x128xf32>
    %13 = arith.maximumf %11, %12 : vector<1x8x16x128xf32>
    %c0_11 = arith.constant 0 : index
    %c0_12 = arith.constant 0 : index
    %c0_13 = arith.constant 0 : index
    %c0_14 = arith.constant 0 : index
    %14 = vector.load %arg6[%c0_11, %c0_12, %c0_13, %c0_14] : memref<1x8x16x128xf32, #tpu.memory_space<vmem>>, vector<1x8x16x128xf32>
    tpu.vector_store %arg6[%c0_11, %c0_12, %c0_13, %c0_14], %13 {strides = array<i32>} : memref<1x8x16x128xf32, #tpu.memory_space<vmem>>, vector<1x8x16x128xf32>,
    return
  }
  func.func @transform_0(%arg0: i32, %arg1: i32) -> (i32, i32, i32, i32) {
    %c0_i32 = arith.constant 0 : i32
    %c0_i32_0 = arith.constant 0 : i32
    %c0_i32_1 = arith.constant 0 : i32
    return %arg0, %arg1, %c0_i32, %c0_i32_0 : i32, i32, i32, i32
  }
  func.func @transform_1(%arg0: i32, %arg1: i32) -> (i32, i32, i32, i32) {
    %c0_i32 = arith.constant 0 : i32
    %c0_i32_0 = arith.constant 0 : i32
    %c0_i32_1 = arith.constant 0 : i32
    return %arg0, %arg1, %c0_i32, %c0_i32_0 : i32, i32, i32, i32
  }
  func.func @transform_2(%arg0: i32, %arg1: i32) -> (i32, i32) {
    %c0_i32 = arith.constant 0 : i32
    %c0_i32_0 = arith.constant 0 : i32
    %c0_i32_1 = arith.constant 0 : i32
    return %c0_i32, %c0_i32_0 : i32, i32
  }
  func.func @transform_3(%arg0: i32, %arg1: i32) -> (i32, i32) {
    %c0_i32 = arith.constant 0 : i32
    %c0_i32_0 = arith.constant 0 : i32
    %c0_i32_1 = arith.constant 0 : i32
    return %c0_i32, %c0_i32_0 : i32, i32
  }
  func.func @transform_4(%arg0: i32, %arg1: i32) -> (i32, i32, i32, i32) {
    %c0_i32 = arith.constant 0 : i32
    %c0_i32_0 = arith.constant 0 : i32
    %c0_i32_1 = arith.constant 0 : i32
    return %arg0, %arg1, %c0_i32, %c0_i32_0 : i32, i32, i32, i32
  }
}

</mosaic_0001>

<bundles_post_ra>
// kernel: _basic_block_nhwc_impl.5
= control target key start
LH: loop header
LB: loop body
LE: loop exit
PB: predicated region body
PF: predicated region fallthrough
CT: control target
= control target key end

     0   :  { %9 = vsyncpa [#allocation3], 0  ;;  %s1095_s0 = inlined_call_operand.vmem [shape: bf16[2,16,16,128], index: 0, kind: input, shape index: {}]   ;;  %s1096_s1 = inlined_call_operand.hbm [shape: f32[2,16,16,128], index: 1, kind: input, shape index: {}, may-alias: {1,4}]   ;;  %s1097_s2 = inlined_call_operand.vmem [shape: f32[1,128], index: 2, kind: input, shape index: {}]   ;;  %s1098_s3 = inlined_call_operand.vmem [shape: f32[1,128], index: 3, kind: input, shape index: {}]   ;;  %s1099_s4 = inlined_call_operand.hbm [shape: f32[2,16,16,128], index: 4, kind: output, shape index: {}, may-alias: {1,4}]  }
   0x1   :  { %11 = vsyncpa [#allocation3 + $0x1], 0 }
   0x2   :  { %12 = vsyncpa [#allocation4], 0 }
   0x3   :  { %14 = vsyncpa [#allocation4 + $0x1], 0  ;;  %s851_s15 = smov 0   ;;  %s853_s16 = smov 0  }
   0x4   :  { %s855_s17 = smov 0   ;;  %s857_s18 = smov 0  }
   0x5   :  { %s859_s19 = smov 0   ;;  %s861_s20 = smov 0  }
   0x6   :  { %s863_s21 = smov 0   ;;  %s865_s22 = smov 0  }
   0x7 LB: > { %1103 = sst [smem:[#allocation8_spill]] %s800_s17  ;;  %s544_s23 = sadd.s32 4294967295, %s820_s22   ;;  %s820_s22 = sphi %s865_s22, %s20_s22   ;;  %s816_s21 = sphi %s863_s21, %s1120_s21   ;;  %s812_s20 = sphi %s861_s20, %s1119_s20   ;;  %s808_s19 = sphi %s859_s19, %s1118_s19   ;;  %s804_s18 = sphi %s857_s18, %s1117_s18   ;;  %s800_s17 = sphi %s855_s17, %s1112_s17   ;;  %s796_s16 = sphi %s853_s16, %s1116_s16   ;;  %s792_s15 = sphi %s851_s15, %s1115_s15  }
   0x8   : > { %s545_s24 = sadd.s32 4294967294, %s820_s22   ;;  %s29_s25 = sadd.s32 1, %s812_s20 }
   0x9   : > { %s32_s26 = sadd.s32 1, %s816_s21  ;;  %p30_p0 = scmp.ge.s32.totalorder %s29_s25, 2 }
   0xa   : > { %s69_s27 = sadd.s32 1, %s800_s17  ;;  %p76_p1 = scmp.ne.s32.totalorder %s800_s17, %s796_s16 }
   0xb   : > { %p77_p2 = scmp.eq.s32.totalorder %s820_s22, 0  ;;  %s1122_s25 = smov (%p30_p0, %s29_s25), 0 }
   0xc   : > { %1104 = sst [smem:[#allocation9_spill]] %s1122_s25  ;;  %s1124_s26 = smov (!%p30_p0, %s32_s26), %s816_s21 }
   0xd   : > { %s65_s28 = ssub.s32 %s812_s20, %s1122_s25  ;;  %p904_p3 = por %p77_p2, %p76_p1 }
   0xe   : > { %p34_p4 = scmp.ge.s32.totalorder %s1124_s26, 2  ;;  %p82_p5 = scmp.ne.s32.totalorder %s796_s16, %s792_s15 }
   0xf   : > { %p83_p6 = scmp.eq.s32.totalorder %s544_s23, 0  ;;  %p150_p7 = scmp.eq.s32.totalorder %s544_s23, 3 }
  0x10   : > { %s1126_s26 = smov (%p34_p4, %s1124_s26), 0  ;;  %p156_p10 = scmp.eq.s32.totalorder %s545_s24, 3 }
  0x11   : > { %1106 = sst [smem:[#allocation10_spill]] %s1126_s26  ;;  %p912_p8 = por %p83_p6, %p82_p5 }
  0x12   : > { %p916_p9 = por %p150_p7, %p76_p1  ;;  %s64_s6 = ssub.s32 %s816_s21, %s1126_s26 }
  0x13   : > { %s66_s7 = sor.u32 %s65_s28, %s64_s6  ;;  %p922_p12 = por %p156_p10, %p82_p5 }
  0x14   : > { %p67_p11 = scmp.eq.s32.totalorder %s66_s7, 0  ;;  %p620_p13 = scmp.lt.s32.totalorder %s820_s22, 4 }
  0x15   : > { %s196_s9 = sand.u32 1, %s800_s17   ;;  %s567_s12 = sshll.u32 %s812_s20, 4 }
  0x16   : > { %s929_s10 = scalar_select %p67_p11, %s800_s17, %s69_s27  }
  0x17   : > { %s548_s11 = sshll.u32 %s196_s9, 7  ;;  %s551_s13 = sshll.u32 %s816_s21, 5 }
  0x18   : > { %1110 = sst [smem:[#allocation11_spill]] %s929_s10  ;;  %s200_s14 = scalar_lea.vmem [#allocation2], %s548_s11 }
  0x19   : > { %s211_s23 = sshll.u32 %s200_s14, 4  ;;  %s206_s26 = sadd.s32 %s567_s12, %s551_s13  ;;  %s212_s23 = int_to_ptr.vmem [resolvable:$true] %s211_s23 }
  0x1a   : > { %s552_s24 = sshll.u32 %s206_s26, 3  ;;  %p613_p0 = pnand %p620_p13, %p904_p3 }
  0x1b   : > { %s208_s7 = scalar_lea.hbm %s1096_s1, %s552_s24  ;;  %s197_s27 = scalar_lea.sflag [#allocation3], %s196_s9 }
  0x1c   : > { %s209_s25 = sshll.u32 %s208_s7, 4  ;;  %s822_s10 = smov 128   ;;  %s210_s25 = int_to_ptr.hbm [resolvable:$true] %s209_s25 }
  0x1d   : > { %s823_s17 = smov 8   ;;  %p553_p1 = scmp.ge.s32.totalorder %s820_s22, 1 }
  0x1e   : > { %615 = dma.hbm_to_vmem [thread:$0]  (!%p613_p0), %s210_s25, 2048, %s212_s23, %s197_s27, %s822_s10, %s822_s10, %s823_s17  }
  0x1f   : > { %p219_p2 = scmp.lt.s32.totalorder %s820_s22, 5 }
  0x21   : > { %p220_p4 = pnand %p553_p1, %p219_p2 }
  0x22   : > { %s941_s11 = sand.u32 (!%p220_p4), 1, %s796_s16  }
  0x23   : > { %223 = sbr.rel (%p220_p4) target bundleno = 81 (0x51), region = 36  ;;  %s554_s26 = sshll.u32 (!%p220_p4), %s941_s11, 7 }
  0x24   : > { %s226_s29 = scalar_lea.sflag (!%p220_p4), [#allocation3], %s941_s11  ;;  %s947_s12 = scalar_lea.vmem (!%p220_p4), [#allocation2], %s554_s26 }
  0x28   : > { %783 = dma.done.wait (%p912_p8), %s226_s29, 2048  }
  0x29   : > { %785 = vsyncadd (%p912_p8), %s226_s29, 4294965248  ;;  %s556_s17 = sshll.u32 %s804_s18, 3  ;;  %p266_p3 = scmp.lt.s32.totalorder %s808_s19, 1  ;;  %v964_v0 = vld [vmem:[%s1097_s2] ss:$0 sm:$0xff]  ;;  %v351_v17 = vld [vmem:[%s947_s12 + $0x8] sm:$0xff] }
  0x2a   : > { %p268_p5 = scmp.lt.s32.totalorder %s556_s17, 15  ;;  %v972_v5 = vld [vmem:[%s1098_s3] ss:$0 sm:$0xff]  ;;  %v352_v20 = vld [vmem:[%s947_s12 + $0x10] sm:$0xff]  ;;  %v353_v21 = vld [vmem:[%s947_s12 + $0x18] sm:$0xff]  ;;  %s568_s29 = sshll.u32 %s804_s18, 4 }
  0x2b   : > { %s267_s25 = scalar_select %p266_p3, %s808_s19, 1  ;;  %v350_v15 = vld [vmem:[%s947_s12] sm:$0xff]  ;;  %v355_v31 = vld [vmem:[%s947_s12 + $0x28] sm:$0xff]  ;;  %v356_v32 = vld [vmem:[%s947_s12 + $0x30] sm:$0xff] }
  0x2c   : > { %s1128_s17 = smov (!%p268_p5, %s556_s17), 15  ;;  %v354_v23 = vld [vmem:[%s947_s12 + $0x20] sm:$0xff]  ;;  %v357_v33 = vld [vmem:[%s947_s12 + $0x38] sm:$0xff]  ;;  %s742_s30 = scalar_lea.hbm %s1099_s4, 512 }
  0x2d   : > { %s558_s9 = sshll.u32 %s267_s25, 5  ;;  %s557_s10 = sshll.u32 %s1128_s17, 1 }
  0x2e   : > { %s272_s13 = sadd.s32 %s558_s9, %s557_s10  ;;  %s563_s17 = sshll.u32 %s808_s19, 5 }
  0x2f   : > { %s559_s14 = sshll.u32 %s272_s13, 2  ;;  %s1007_s25 = scalar_lea.vmem [#allocation5], %s554_s26 }
  0x30   : > { %s959_s28 = scalar_lea.vmem %s1095_s0, %s559_s14  ;;  %s1017_s18 = sadd.s32 %s568_s29, %s563_s17 }
  0x31   : > { %v570_v1 = vld [vmem:[%s959_s28] sm:$0xff]   ;;  %v601_v2 = vld [vmem:[%s959_s28 + $0x8] sm:$0xff]   ;;  %v602_v3 = vld [vmem:[%s959_s28 + $0x10] sm:$0xff]   ;;  %s564_s19 = sshll.u32 %s1017_s18, 3  ;;  %s415_s14 = scalar_lea.sflag [#allocation4], %s941_s11 }
  0x32   : > { %v571_v4 = vunpack.c.l.bf16 %v570_v1  ;;  %v572_v6 = vunpack.c.h.bf16 %v570_v1  ;;  %v575_v7 = vunpack.c.l.bf16 %v601_v2  ;;  %v576_v8 = vunpack.c.h.bf16 %v601_v2  ;;  %v603_v9 = vld [vmem:[%s959_s28 + $0x18] sm:$0xff]   ;;  %v604_v46 = vld [vmem:[%s959_s28 + $0x20] sm:$0xff]   ;;  %v605_v47 = vld [vmem:[%s959_s28 + $0x28] sm:$0xff]   ;;  %s429_s10 = scalar_lea.hbm %s1099_s4, %s564_s19 }
  0x33   : > { %v579_v10 = vunpack.c.l.bf16 %v602_v3  ;;  %v580_v11 = vunpack.c.h.bf16 %v602_v3  ;;  %v583_v12 = vunpack.c.l.bf16 %v603_v9  ;;  %v584_v13 = vunpack.c.h.bf16 %v603_v9  ;;  %v606_v52 = vld [vmem:[%s959_s28 + $0x30] sm:$0xff]   ;;  %v607_v53 = vld [vmem:[%s959_s28 + $0x38] sm:$0xff]   ;;  %v359_v9 = vld [vmem:[%s947_s12 + $0x48] sm:$0xff]  ;;  %s432_s13 = sshll.u32 %s429_s10, 4  ;;  %s433_s13 = int_to_ptr.hbm [resolvable:$true] %s432_s13 }
  0x34   : > { %v314_v14 = vmul.f32 %v964_v0, %v571_v4  ;;  %v315_v16 = vmul.f32 %v964_v0, %v572_v6  ;;  %v316_v18 = vmul.f32 %v964_v0, %v575_v7  ;;  %v317_v19 = vmul.f32 %v964_v0, %v576_v8  ;;  %v358_v4 = vld [vmem:[%s947_s12 + $0x40] sm:$0xff]  ;;  %s736_s23 = sshra.s32 %s433_s13, 4  ;;  %s737_s23 = int_to_ptr.hbm [resolvable:$true] %s736_s23 }
  0x35   : > { %v318_v22 = vmul.f32 %v964_v0, %v579_v10  ;;  %v319_v24 = vmul.f32 %v964_v0, %v580_v11  ;;  %v320_v25 = vmul.f32 %v964_v0, %v583_v12  ;;  %v321_v26 = vmul.f32 %v964_v0, %v584_v13  ;;  %v360_v10 = vld [vmem:[%s947_s12 + $0x50] sm:$0xff]  ;;  %v361_v11 = vld [vmem:[%s947_s12 + $0x58] sm:$0xff]  ;;  %s738_s24 = scalar_lea.hbm %s737_s23, 128  ;;  %p743_p10 = scmp.lt.s32.totalorder %s737_s23, %s1099_s4 }
  0x36   : > { %v334_v27 = vadd.f32 %v972_v5, %v314_v14  ;;  %v335_v28 = vadd.f32 %v972_v5, %v315_v16  ;;  %v336_v29 = vadd.f32 %v972_v5, %v316_v18  ;;  %v337_v30 = vadd.f32 %v972_v5, %v317_v19  ;;  %p739_p6 = scmp.ne.s32.totalorder %s737_s23, %s738_s24  ;;  %p744_p11 = scmp.lt.s32.totalorder %s742_s30, %s738_s24 }
  0x37   : > { %v338_v34 = vadd.f32 %v972_v5, %v318_v22  ;;  %v339_v35 = vadd.f32 %v972_v5, %v319_v24  ;;  %v340_v36 = vadd.f32 %v972_v5, %v320_v25  ;;  %v341_v37 = vadd.f32 %v972_v5, %v321_v26  ;;  %v364_v24 = vld [vmem:[%s947_s12 + $0x70] sm:$0xff] }
  0x38   : > { %v366_v38 = vadd.f32 %v350_v15, %v334_v27  ;;  %v367_v39 = vadd.f32 %v351_v17, %v335_v28  ;;  %v368_v40 = vadd.f32 %v352_v20, %v336_v29  ;;  %v369_v41 = vadd.f32 %v353_v21, %v337_v30  ;;  %v362_v20 = vld [vmem:[%s947_s12 + $0x60] sm:$0xff]  ;;  %v363_v21 = vld [vmem:[%s947_s12 + $0x68] sm:$0xff]  ;;  %v365_v30 = vld [vmem:[%s947_s12 + $0x78] sm:$0xff]  ;;  %s430_s12 = sshll.u32 %s1007_s25, 4  ;;  %p740_p7 = pnand %p739_p6, %p916_p9  ;;  %s431_s12 = int_to_ptr.vmem [resolvable:$true] %s430_s12 }
  0x39   : > { %v370_v42 = vadd.f32 %v354_v23, %v338_v34  ;;  %v371_v43 = vadd.f32 %v355_v31, %v339_v35  ;;  %v372_v44 = vadd.f32 %v356_v32, %v340_v36  ;;  %v373_v45 = vadd.f32 %v357_v33, %v341_v37  ;;  %p745_p13 = por %p744_p11, %p743_p10 }
  0x3a   : > { %v382_v48 = vmax.f32 %v366_v38, 0.0  ;;  %v383_v49 = vmax.f32 %v367_v39, 0.0  ;;  %v384_v50 = vmax.f32 %v368_v40, 0.0  ;;  %v385_v51 = vmax.f32 %v369_v41, 0.0  ;;  %p741_p8 = pneg %p740_p7 }
  0x3b   : > { %v386_v54 = vmax.f32 %v370_v42, 0.0  ;;  %v387_v55 = vmax.f32 %v371_v43, 0.0  ;;  %v388_v56 = vmax.f32 %v372_v44, 0.0  ;;  %v389_v57 = vmax.f32 %v373_v45, 0.0 }
  0x3c   : > { %398 = vst [vmem:[%s1007_s25] sm:$0xff] %v382_v48  ;;  %v587_v58 = vunpack.c.l.bf16 %v604_v46  ;;  %v588_v59 = vunpack.c.h.bf16 %v604_v46  ;;  %v591_v60 = vunpack.c.l.bf16 %v605_v47  ;;  %v592_v61 = vunpack.c.h.bf16 %v605_v47  ;;  %p746_p0 = pnand %p745_p13, %p741_p8 }
  0x3d   : > { %399 = vst [vmem:[%s1007_s25 + $0x8] sm:$0xff] %v383_v49  ;;  %v595_v62 = vunpack.c.l.bf16 %v606_v52  ;;  %v596_v63 = vunpack.c.h.bf16 %v606_v52  ;;  %v599_v1 = vunpack.c.l.bf16 %v607_v53  ;;  %v600_v2 = vunpack.c.h.bf16 %v607_v53 }
  0x3e   : > { %400 = vst [vmem:[%s1007_s25 + $0x10] sm:$0xff] %v384_v50  ;;  %v322_v3 = vmul.f32 %v964_v0, %v587_v58  ;;  %v323_v6 = vmul.f32 %v964_v0, %v588_v59  ;;  %v324_v7 = vmul.f32 %v964_v0, %v591_v60  ;;  %v325_v8 = vmul.f32 %v964_v0, %v592_v61 }
  0x3f   : > { %401 = vst [vmem:[%s1007_s25 + $0x18] sm:$0xff] %v385_v51  ;;  %v326_v12 = vmul.f32 %v964_v0, %v595_v62  ;;  %v327_v13 = vmul.f32 %v964_v0, %v596_v63  ;;  %v328_v14 = vmul.f32 %v964_v0, %v599_v1  ;;  %v329_v15 = vmul.f32 %v964_v0, %v600_v2 }
  0x40   : > { %402 = vst [vmem:[%s1007_s25 + $0x20] sm:$0xff] %v386_v54  ;;  %v342_v16 = vadd.f32 %v972_v5, %v322_v3  ;;  %v343_v17 = vadd.f32 %v972_v5, %v323_v6  ;;  %v344_v18 = vadd.f32 %v972_v5, %v324_v7  ;;  %v345_v19 = vadd.f32 %v972_v5, %v325_v8 }
  0x41   : > { %403 = vst [vmem:[%s1007_s25 + $0x28] sm:$0xff] %v387_v55  ;;  %v346_v22 = vadd.f32 %v972_v5, %v326_v12  ;;  %v347_v23 = vadd.f32 %v972_v5, %v327_v13  ;;  %v348_v0 = vadd.f32 %v972_v5, %v328_v14  ;;  %v349_v25 = vadd.f32 %v972_v5, %v329_v15 }
  0x42   : > { %404 = vst [vmem:[%s1007_s25 + $0x30] sm:$0xff] %v388_v56  ;;  %v374_v26 = vadd.f32 %v358_v4, %v342_v16  ;;  %v375_v27 = vadd.f32 %v359_v9, %v343_v17  ;;  %v376_v28 = vadd.f32 %v360_v10, %v344_v18  ;;  %v377_v29 = vadd.f32 %v361_v11, %v345_v19 }
  0x43   : > { %405 = vst [vmem:[%s1007_s25 + $0x38] sm:$0xff] %v389_v57  ;;  %v378_v31 = vadd.f32 %v362_v20, %v346_v22  ;;  %v379_v32 = vadd.f32 %v363_v21, %v347_v23  ;;  %v380_v5 = vadd.f32 %v364_v24, %v348_v0  ;;  %v381_v37 = vadd.f32 %v365_v30, %v349_v25 }
  0x44   : > { %v390_v33 = vmax.f32 %v374_v26, 0.0  ;;  %v391_v34 = vmax.f32 %v375_v27, 0.0  ;;  %v392_v35 = vmax.f32 %v376_v28, 0.0  ;;  %v393_v36 = vmax.f32 %v377_v29, 0.0 }
  0x45   : > { %v394_v38 = vmax.f32 %v378_v31, 0.0  ;;  %v395_v39 = vmax.f32 %v379_v32, 0.0  ;;  %v396_v40 = vmax.f32 %v380_v5, 0.0  ;;  %v397_v41 = vmax.f32 %v381_v37, 0.0 }
  0x46   : > { %406 = vst [vmem:[%s1007_s25 + $0x40] sm:$0xff] %v390_v33 }
  0x47   : > { %407 = vst [vmem:[%s1007_s25 + $0x48] sm:$0xff] %v391_v34 }
  0x48   : > { %408 = vst [vmem:[%s1007_s25 + $0x50] sm:$0xff] %v392_v35 }
  0x49   : > { %409 = vst [vmem:[%s1007_s25 + $0x58] sm:$0xff] %v393_v36 }
  0x4a   : > { %410 = vst [vmem:[%s1007_s25 + $0x60] sm:$0xff] %v394_v38 }
  0x4b   : > { %411 = vst [vmem:[%s1007_s25 + $0x68] sm:$0xff] %v395_v39 }
  0x4c   : > { %412 = vst [vmem:[%s1007_s25 + $0x70] sm:$0xff] %v396_v40 }
  0x4d   : > { %413 = vst [vmem:[%s1007_s25 + $0x78] sm:$0xff] %v397_v41 }
  0x4e   : > { %749 = shalt.err (!%p746_p0)
}
  0x4f   : > { %s824_s11 = smov 128   ;;  %s825_s29 = smov 8  }
  0x50   : > { %610 = dma.vmem_to_hbm [thread:$0]  (%p916_p9), %s431_s12, 2048, %s433_s13, %s415_s14, %s824_s11, %s824_s11, %s825_s29  }
  0x51 PF: > { %p621_p1 = scmp.ge.s32.totalorder %s820_s22, 2  ;;  %s447_s17 = sand.u32 1, %s792_s15  }
  0x52   : > { %s448_s25 = scalar_lea.sflag [#allocation4], %s447_s17 }
  0x53   : > { %p617_p2 = pnand %p621_p1, %p922_p12 }
  0x55   : > { %p618_p4 = pneg %p617_p2 }
  0x57   : > { %787 = dma.done.wait (%p618_p4), %s448_s25, 2048  }
  0x58   : > { %789 = vsyncadd (%p618_p4), %s448_s25, 4294965248  ;;  %s20_s22 = sadd.s32 1, %s820_s22   ;;  %s1111_s18 = sld [smem:[#allocation8_spill]] }
  0x59   : > { %p17_p3 = scmp.ge.s32.totalorder %s20_s22, 6   ;;  %s1112_s17 = sld [smem:[#allocation11_spill]] }
  0x5a   : > { %s1113_s5 = sld [smem:[#allocation9_spill]]  ;;  %s1115_s15 = smov %s796_s16 }
  0x5b   : > { %s1114_s26 = sld [smem:[#allocation10_spill]]  ;;  %s1118_s19 = smov %s816_s21 }
  0x5d   :  { %19 = sbr.rel (!%p17_p3) target bundleno = 7 (0x7), region = 84 }
  0x5e   : > { %s1116_s16 = smov %s1111_s18  ;;  %s1117_s18 = smov %s812_s20 }
  0x60   : > { %s1119_s20 = smov %s1113_s5 }
  0x61   : > { %s1120_s21 = smov %s1114_s26 }
  0x62   :  { %454 = vsyncpa [#allocation3], 1 }
  0x63   :  { %456 = vsyncpa [#allocation3 + $0x1], 1 }
  0x64   :  { %457 = vsyncpa [#allocation4], 1 }
  0x65   :  { %459 = vsyncpa [#allocation4 + $0x1], 1 }

// kernel: _basic_block_nhwc_impl.3
= control target key start
LH: loop header
LB: loop body
LE: loop exit
PB: predicated region body
PF: predicated region fallthrough
CT: control target
= control target key end

     0   :  { %s3303_s24 = smov 0   ;;  %s3305_s25 = smov 0   ;;  %s4203_s0 = inlined_call_operand.vmem [shape: f32[2,16,16,128], index: 0, kind: input, shape index: {}, may-alias: {0,1,2}]   ;;  %s4204_s1 = inlined_call_operand.vmem [shape: f32[2,16,16,128], index: 1, kind: input, shape index: {}, may-alias: {0,1,2}]   ;;  %s4205_s2 = inlined_call_operand.vmem [shape: f32[2,16,16,128], index: 2, kind: input, shape index: {}, may-alias: {0,1,2}]   ;;  %s4206_s3 = inlined_call_operand.vmem [shape: bf16[9,128,128], index: 3, kind: input, shape index: {}]   ;;  %s4207_s4 = inlined_call_operand.vmem [shape: f32[1,128], index: 4, kind: input, shape index: {}]   ;;  %s4208_s5 = inlined_call_operand.vmem [shape: f32[1,128], index: 5, kind: input, shape index: {}]   ;;  %s4209_s6 = inlined_call_operand.vmem [shape: bf16[2,16,16,128], index: 6, kind: output, shape index: {0}]   ;;  %s4210_s7 = inlined_call_operand.vmem [shape: f32[2,2,2,128], index: 7, kind: output, shape index: {1}]  }
   0x1   :  { %s3307_s26 = smov 0   ;;  %s3309_s27 = smov 0  }
   0x2   :  { %s3311_s28 = smov 0  }
   0x3 LB: > { %s27_s29 = sadd.s32 1, %s3253_s26  ;;  %s30_s30 = sadd.s32 1, %s3257_s27  ;;  %s3261_s28 = sphi %s3311_s28, %s18_s28   ;;  %s3257_s27 = sphi %s3309_s27, %s4219_s27   ;;  %s3253_s26 = sphi %s3307_s26, %s4218_s26   ;;  %s3249_s25 = sphi %s3305_s25, %s4217_s25   ;;  %s3245_s24 = sphi %s3303_s24, %s4216_s24  }
   0x4   : > { %p28_p0 = scmp.ge.s32.totalorder %s27_s29, 2  ;;  %p2572_p1 = scmp.ge.s32.totalorder %s3261_s28, 1 }
   0x5   : > { %p328_p2 = scmp.lt.s32.totalorder %s3261_s28, 5 }
   0x6   : > { %s4221_s29 = smov (%p28_p0, %s27_s29), 0  ;;  %s4223_s30 = smov (!%p28_p0, %s30_s30), %s3257_s27 }
   0x7   : > { %p329_p3 = pnand %p2572_p1, %p328_p2  ;;  %p32_p4 = scmp.ge.s32.totalorder %s4223_s30, 2 }
   0x8   : > { %s3339_s10 = sshll.u32 (!%p329_p3), %s3245_s24, 3  ;;  %p405_p5 = scmp.lt.s32.totalorder (!%p329_p3), %s3249_s25, 1 }
   0x9   : > { %s4225_s30 = smov (%p32_p4, %s4223_s30), 0  ;;  %332 = sbr.rel (%p329_p3) target bundleno = 507 (0x1fb), region = 44 }
   0xa   : > { %p407_p6 = scmp.lt.s32.totalorder (!%p329_p3), %s3339_s10, 15  ;;  %s3352_s15 = sadd.s32 (!%p329_p3), 4294967295, %s3339_s10 }
   0xb   : > { %p417_p7 = scmp.gt.s32.totalorder (!%p329_p3), %s3352_s15, 0  ;;  %p2579_p8 = scmp.lt.s32.totalorder (!%p329_p3), %s3352_s15, 15 }
   0xc   : > { %p530_p9 = scmp.gt.s32.totalorder (!%p329_p3), %s3245_s24, 0  ;;  %s3035_s21 = sadd.s32 (!%p329_p3), 8, %s3339_s10 }
   0xd   : > { %p4054_p10 = scmp.lt.s32.totalorder (!%p329_p3), %s3035_s21, 15  ;;  %p462_p11 = scmp.lt.s32.totalorder (!%p329_p3), %s3245_s24, 1 }
   0xe   : > { %v3051_v0 = vld [vmem:[%s4206_s3 + $0x78] sm:$0xff]  ;;  %v3050_v1 = vld [vmem:[%s4206_s3 + $0x70] sm:$0xff]  ;;  %s4227_s25 = smov (!%p405_p5, %s3249_s25), 1  ;;  %v3049_v2 = vld [vmem:[%s4206_s3 + $0x68] sm:$0xff]  ;;  %vm568_vm0 = vcmask 1040384   ;;  %vm1183_vm4 = vcmask 1042432  }
   0xf   : > { %3155 = vmatpush.bf16.msra.mxu1 %v3051_v0  ;;  %3156 = vmatpush.bf16.msra.mxu2 %v3051_v0  ;;  %s408_s13 = scalar_select %p407_p6, %s3339_s10, 15  ;;  %v3364_v3 = vld [vmem:[%s4207_s4] ss:$0 sm:$0xff]  ;;  %v3047_v24 = vld [vmem:[%s4206_s3 + $0x58] sm:$0xff]  ;;  %vm689_vm1 = vsmask.f32 3328 }
  0x10   : > { %3157 = vmatpush.bf16.msra.mxu3 %v3051_v0  ;;  %981 = vmatpush.bf16.msra.mxu0 %v3051_v0  ;;  %s3349_s14 = sshll.u32 %s4227_s25, 5  ;;  %v3048_v4 = vld [vmem:[%s4206_s3 + $0x60] sm:$0xff]  ;;  %vm690_vm2 = vsmask.f32 7440  ;;  %v3046_v39 = vld [vmem:[%s4206_s3 + $0x50] sm:$0xff]  ;;  %v3045_v52 = vld [vmem:[%s4206_s3 + $0x48] sm:$0xff] }
  0x11   : > { %s2574_s16 = sshll.u32 %s408_s13, 1  ;;  %v3378_v5 = vld [vmem:[%s4208_s5] ss:$0 sm:$0xff]  ;;  %vm3459_vm3 = vmor %vm689_vm1, %vm690_vm2  ;;  %vm1184_vm5 = vcmask 1046532   ;;  %s4231_s21 = smov (!%p4054_p10, %s3035_s21), 15 }
  0x12   : > { %s3359_s19 = sadd.s32 %s3349_s14, %s2574_s16  ;;  %vm3749_vm6 = vmor %vm1183_vm4, %vm1184_vm5  ;;  %s4233_s21 = smov (!%p4054_p10, %s4231_s21), 15 }
  0x13   : > { %3158 = vmatpush.bf16.msra.mxu1 %v3050_v1  ;;  %3159 = vmatpush.bf16.msra.mxu2 %v3050_v1  ;;  %s2576_s22 = sshll.u32 %s3359_s19, 3  ;;  %s2591_s10 = sshll.u32 %s4233_s21, 1 }
  0x14   : > { %3160 = vmatpush.bf16.msra.mxu3 %v3050_v1  ;;  %982 = vmatpush.bf16.msra.mxu0 %v3050_v1  ;;  %s3373_s12 = scalar_lea.vmem %s4203_s0, %s2576_s22  ;;  %s442_s22 = sadd.s32 %s2591_s10, %s3349_s14 }
  0x15   : > { %v472_v6 = vld [vmem:[%s3373_s12 + $0x10] sm:$0xff]  ;;  %v473_v7 = vld [vmem:[%s3373_s12 + $0x18] sm:$0xff]  ;;  %s418_s17 = scalar_select %p417_p7, %s3352_s15, 0  ;;  %v474_v61 = vld [vmem:[%s3373_s12 + $0x20] sm:$0xff] }
  0x16   : > { %v476_v8 = vld [vmem:[%s3373_s12 + $0x30] sm:$0xff]  ;;  %v491_v9 = vmul.f32 %v3364_v3, %v472_v6  ;;  %v492_v10 = vmul.f32 %v3364_v3, %v473_v7  ;;  %v477_v11 = vld [vmem:[%s3373_s12 + $0x38] sm:$0xff]  ;;  %s3467_s13 = scalar_select %p530_p9, 1, 0 }
  0x17   : > { %3161 = vmatpush.bf16.msra.mxu1 %v3049_v2  ;;  %3162 = vmatpush.bf16.msra.mxu2 %v3049_v2  ;;  %v495_v12 = vmul.f32 %v3364_v3, %v476_v8  ;;  %v480_v13 = vld [vmem:[%s3373_s12 + $0x50] sm:$0xff]  ;;  %v481_v14 = vld [vmem:[%s3373_s12 + $0x58] sm:$0xff]  ;;  %v496_v15 = vmul.f32 %v3364_v3, %v477_v11  ;;  %s4229_s17 = smov (!%p2579_p8, %s418_s17), 15  ;;  %s4235_s24 = smov (!%p462_p11, %s3245_s24), 1 }
  0x18   : > { %3163 = vmatpush.bf16.msra.mxu3 %v3049_v2  ;;  %983 = vmatpush.bf16.msra.mxu0 %v3049_v2  ;;  %v499_v16 = vmul.f32 %v3364_v3, %v480_v13  ;;  %v500_v17 = vmul.f32 %v3364_v3, %v481_v14  ;;  %v510_v18 = vadd.f32 %v3378_v5, %v491_v9  ;;  %s2584_s15 = sshll.u32 %s4229_s17, 1  ;;  %v3044_v13 = vld [vmem:[%s4206_s3 + $0x40] sm:$0xff]  ;;  %s532_s9 = scvt.s32.f32 %s3467_s13 }
  0x19   : > { %v511_v19 = vadd.f32 %v3378_v5, %v492_v10  ;;  %v514_v20 = vadd.f32 %v3378_v5, %v495_v12  ;;  %v515_v21 = vadd.f32 %v3378_v5, %v496_v15  ;;  %s3441_s23 = sadd.s32 %s2584_s15, %s3349_s14  ;;  %v3473_v12 = vmul.f32 %v3364_v3, %v474_v61  ;;  %v3066_v61 = vld [vmem:[%s4206_s3 + $0xf0] sm:$0xff]  ;;  %s2597_s13 = sshll.u32 %s3359_s19, 2 }
  0x1a   : > { %v3405_v22 = vadd.f32 %v3378_v5, %v499_v16  ;;  %v3408_v23 = vadd.f32 %v3378_v5, %v500_v17  ;;  %v575_v25 = vrot.slane %v510_v18, 7  ;;  %s2586_s11 = sshll.u32 %s3441_s23, 3  ;;  %s2593_s23 = sshll.u32 %s442_s22, 3 }
  0x1b   : > { %3164 = vmatpush.bf16.msra.mxu1 %v3048_v4  ;;  %3165 = vmatpush.bf16.msra.mxu2 %v3048_v4  ;;  %v576_v26 = vrot.slane %v511_v19, 7  ;;  %v581_v27 = vrot.slane %v514_v20, 7  ;;  %v582_v28 = vrot.slane %v515_v21, 7  ;;  %s427_s18 = scalar_lea.vmem %s4204_s1, %s2586_s11  ;;  %s444_s11 = scalar_lea.vmem %s4205_s2, %s2593_s23 }
  0x1c   : > { %3166 = vmatpush.bf16.msra.mxu3 %v3048_v4  ;;  %984 = vmatpush.bf16.msra.mxu0 %v3048_v4  ;;  %v587_v29 = vrot.slane %v3405_v22, 7  ;;  %v588_v30 = vrot.slane %v3408_v23, 7  ;;  %v631_v32 = vsel %vm568_vm0, 0.0, %v575_v25  ;;  %s543_s14 = scalar_select %p462_p11, 1, 0 }
  0x1d   : > { %v577_v31 = vsel %vm568_vm0, %v575_v25, %v576_v26  ;;  %v641_v33 = vsel %vm568_vm0, %v576_v26, 0.0  ;;  %v633_v34 = vsel %vm568_vm0, 0.0, %v581_v27  ;;  %v3420_v35 = vpack.c.bf16 %v631_v32, %v631_v32  ;;  %v3059_v26 = vld [vmem:[%s4206_s3 + $0xb8] sm:$0xff]  ;;  %s4158_s20 = scalar_lea.vmem %s4209_s6, %s2597_s13  ;;  %s2598_s19 = sshll.u32 %s4227_s25, 1 }
  0x1e   : > { %v3422_v36 = vpack.c.bf16 %v577_v31, %v577_v31  ;;  %v3424_v37 = vpack.c.bf16 %v641_v33, %v641_v33  ;;  %v583_v38 = vsel %vm568_vm0, %v581_v27, %v582_v28  ;;  %v643_v40 = vsel %vm568_vm0, %v582_v28, 0.0  ;;  %v3043_v27 = vld [vmem:[%s4206_s3 + $0x38] sm:$0xff]  ;;  %v524_v28 = vld [vmem:[%s427_s18] sm:$0xff]  ;;  %s544_s16 = scvt.s32.f32 %s543_s14  ;;  %s465_s15 = sadd.s32 %s2598_s19, %s4235_s24 }
  0x1f   : > { %3167 = vmatpush.bf16.msra.mxu1 %v3047_v24  ;;  %3168 = vmatpush.bf16.msra.mxu2 %v3047_v24  ;;  %v3431_v41 = vpack.c.bf16 %v633_v34, %v633_v34  ;;  %v3433_v42 = vpack.c.bf16 %v583_v38, %v583_v38  ;;  %v589_v43 = vsel %vm568_vm0, %v587_v29, %v588_v30  ;;  %v741_v44 = vshrl.u32 %v3420_v35, 16  ;;  %v3067_v33 = vld [vmem:[%s4206_s3 + $0xf8] sm:$0xff]  ;;  %v525_v34 = vld [vmem:[%s427_s18 + $0x8] sm:$0xff]  ;;  %s2599_s21 = sshll.u32 %s465_s15, 1 }
  0x20   : > { %3169 = vmatpush.bf16.msra.mxu3 %v3047_v24  ;;  %985 = vmatpush.bf16.msra.mxu0 %v3047_v24  ;;  %v744_v45 = vshll.u32 %v3420_v35, 16  ;;  %v750_v46 = vshll.u32 %v3422_v36, 16  ;;  %v754_v47 = vshrl.u32 %v3422_v36, 16  ;;  %v760_v48 = vshll.u32 %v3424_v37, 16  ;;  %s467_s22 = scalar_lea.vmem %s4210_s7, %s2599_s21 }
  0x21   : > { %v3444_v49 = vpack.c.bf16 %v643_v40, %v643_v40  ;;  %v789_v50 = vshrl.u32 %v3431_v41, 16  ;;  %v792_v51 = vshll.u32 %v3431_v41, 16  ;;  %v743_v53 = vrot.slane %v741_v44, 4  ;;  %v3075_v44 = vld [vmem:[%s4206_s3 + $0x138] sm:$0xff] }
  0x22   : > { %v746_v54 = vrot.slane %v744_v45, 5  ;;  %v752_v55 = vrot.slane %v750_v46, 5  ;;  %v756_v56 = vrot.slane %v754_v47, 4  ;;  %v762_v57 = vrot.slane %v760_v48, 5  ;;  %v475_v45 = vld [vmem:[%s3373_s12 + $0x28] sm:$0xff] }
  0x23   : > { %3170 = vmatpush.bf16.msra.mxu1 %v3046_v39  ;;  %3171 = vmatpush.bf16.msra.mxu2 %v3046_v39  ;;  %v791_v58 = vrot.slane %v789_v50, 4  ;;  %v794_v59 = vrot.slane %v792_v51, 5  ;;  %v798_v60 = vshll.u32 %v3433_v42, 16  ;;  %v802_v0 = vshrl.u32 %v3433_v42, 16 }
  0x24   : > { %3172 = vmatpush.bf16.msra.mxu3 %v3046_v39  ;;  %986 = vmatpush.bf16.msra.mxu0 %v3046_v39  ;;  %v747_v62 = vor.u32 %v746_v54, %v743_v53  ;;  %v757_v63 = vor.u32 %v756_v56, %v752_v55  ;;  %v808_v1 = vshll.u32 %v3444_v49, 16  ;;  %v635_v7 = vsel %vm568_vm0, 0.0, %v587_v29  ;;  %v478_v56 = vld [vmem:[%s3373_s12 + $0x40] sm:$0xff] }
  0x25   : > { %v795_v4 = vor.u32 %v794_v59, %v791_v58  ;;  %v800_v6 = vrot.slane %v798_v60, 5  ;;  %v645_v8 = vsel %vm568_vm0, %v588_v30, 0.0  ;;  %v804_v11 = vrot.slane %v802_v0, 4  ;;  %v3058_v60 = vld [vmem:[%s4206_s3 + $0xb0] sm:$0xff] }
  0x26   : > { %v748_v9 = vrot.slane %v747_v62, 4  ;;  %v758_v10 = vrot.slane %v757_v63, 4  ;;  %v3478_v15 = vpack.c.bf16 %v635_v7, %v635_v7  ;;  %v3480_v16 = vpack.c.bf16 %v589_v43, %v589_v43  ;;  %v479_v63 = vld [vmem:[%s3373_s12 + $0x48] sm:$0xff] }
  0x27   : > { %3173 = vmatpush.bf16.msra.mxu1 %v3045_v52  ;;  %3174 = vmatpush.bf16.msra.mxu2 %v3045_v52  ;;  %v796_v14 = vrot.slane %v795_v4, 4  ;;  %v3482_v17 = vpack.c.bf16 %v645_v8, %v645_v8  ;;  %v805_v20 = vor.u32 %v804_v11, %v800_v6  ;;  %v810_v21 = vrot.slane %v808_v1, 5 }
  0x28   : > { %3175 = vmatpush.bf16.msra.mxu3 %v3045_v52  ;;  %987 = vmatpush.bf16.msra.mxu0 %v3045_v52  ;;  %v753_v18 = vsel %vm3459_vm3, %v748_v9, %v752_v55  ;;  %v763_v19 = vsel %vm3459_vm3, %v758_v10, %v762_v57  ;;  %v837_v25 = vshrl.u32 %v3478_v15, 16  ;;  %v840_v31 = vshll.u32 %v3478_v15, 16  ;;  %v3042_v55 = vld [vmem:[%s4206_s3 + $0x30] sm:$0xff] }
  0x29   : > { %v905_v22 = vunpack.c.l.b16 %v753_v18  ;;  %v906_v23 = vunpack.c.l.b16 %v763_v19  ;;  %v801_v24 = vsel %vm3459_vm3, %v796_v14, %v800_v6  ;;  %v806_v29 = vrot.slane %v805_v20, 4  ;;  %v3074_v6 = vld [vmem:[%s4206_s3 + $0x130] sm:$0xff]  ;;  %v3041_v18 = vld [vmem:[%s4206_s3 + $0x28] sm:$0xff] }
  0x2a   : > { %v909_v30 = vunpack.c.l.b16 %v801_v24  ;;  %v846_v32 = vshll.u32 %v3480_v16, 16  ;;  %v839_v39 = vrot.slane %v837_v25, 4  ;;  %v850_v40 = vshrl.u32 %v3480_v16, 16 }
  0x2b   : > { %3176 = vmatpush.bf16.msra.mxu1 %v3044_v13  ;;  %3177 = vmatpush.bf16.msra.mxu2 %v3044_v13  ;;  %v3503_v38 = vpack.c.b16 %v906_v23, %v905_v22  ;;  %v856_v43 = vshll.u32 %v3482_v17, 16  ;;  %v811_v46 = vsel %vm3459_vm3, %v806_v29, %v810_v21  ;;  %v842_v47 = vrot.slane %v840_v31, 5  ;;  %v3057_v22 = vld [vmem:[%s4206_s3 + $0xa8] sm:$0xff] }
  0x2c   : > { %3178 = vmatpush.bf16.msra.mxu3 %v3044_v13  ;;  %988 = vmatpush.bf16.msra.mxu0 %v3044_v13  ;;  %v848_v48 = vrot.slane %v846_v32, 5  ;;  %v526_v50 = vmul.f32 %v3364_v3, %v524_v28  ;;  %v910_v51 = vunpack.c.l.b16 %v811_v46  ;;  %v852_v52 = vrot.slane %v850_v40, 4  ;;  %v3065_v23 = vld [vmem:[%s4206_s3 + $0xe8] sm:$0xff] }
  0x2d   : > { %v527_v53 = vmul.f32 %v3364_v3, %v525_v34  ;;  %v533_v54 = vstv %s532_s9  ;;  %v843_v57 = vor.u32 %v842_v47, %v839_v39  ;;  %v858_v58 = vrot.slane %v856_v43, 5  ;;  %v3073_v29 = vld [vmem:[%s4206_s3 + $0x128] sm:$0xff] }
  0x2e   : > { %999 = vmatmul.bf16.vlgmr.msra.gmra.mxu1 %v3503_v38  ;;  %v528_v59 = vadd.f32 %v3378_v5, %v526_v50  ;;  %v494_v62 = vmul.f32 %v3364_v3, %v475_v45  ;;  %v3529_v0 = vpack.c.b16 %v910_v51, %v909_v30  ;;  %v853_v1 = vor.u32 %v852_v52, %v848_v48  ;;  %v3056_v50 = vld [vmem:[%s4206_s3 + $0xa0] sm:$0xff] }
  0x2f   : > { %1339 = vmatpush.bf16.msrb.mxu2 %v3059_v26  ;;  %1126 = vmatpush.bf16.msrb.mxu1 %v3043_v27  ;;  %v529_v4 = vadd.f32 %v3378_v5, %v527_v53  ;;  %v512_v7 = vadd.f32 %v3378_v5, %v3473_v12  ;;  %v844_v8 = vrot.slane %v843_v57, 4  ;;  %v497_v11 = vmul.f32 %v3364_v3, %v478_v56  ;;  %v3064_v51 = vld [vmem:[%s4206_s3 + $0xe0] sm:$0xff] }
  0x30   : > { %1477 = vmatpush.bf16.msrb.mxu3 %v3067_v33  ;;  %1636 = vmatpush.bf16.msrb.mxu0 %v3075_v44  ;;  %v534_v9 = vmul.f32 %v533_v54, %v528_v59  ;;  %v513_v10 = vadd.f32 %v3378_v5, %v494_v62  ;;  %v854_v13 = vrot.slane %v853_v1, 4  ;;  %v3544_v20 = vmul.f32 %v3364_v3, %v479_v63  ;;  %v3040_v44 = vld [vmem:[%s4206_s3 + $0x20] sm:$0xff] }
  0x31   : > { %1009 = vmatmul.bf16.vlgmr.msra.gmra.mxu2 %v3529_v0  ;;  %v535_v14 = vmul.f32 %v533_v54, %v529_v4  ;;  %v578_v19 = vrot.slane %v512_v7, 7  ;;  %v849_v12 = vsel %vm3459_vm3, %v844_v8, %v848_v48  ;;  %v3555_v25 = vadd.f32 %v3378_v5, %v497_v11  ;;  %v3055_v4 = vld [vmem:[%s4206_s3 + $0x98] sm:$0xff] }
  0x32   : > { %v569_v21 = vrot.slane %v534_v9, 7  ;;  %v579_v24 = vrot.slane %v513_v10, 7  ;;  %v859_v26 = vsel %vm3459_vm3, %v854_v13, %v858_v58  ;;  %v913_v27 = vunpack.c.l.b16 %v849_v12  ;;  %v3039_v11 = vld [vmem:[%s4206_s3 + $0x18] sm:$0xff] }
  0x33   : > { %1127 = vmatpush.bf16.msrb.mxu1 %v3042_v55  ;;  %1340 = vmatpush.bf16.msrb.mxu2 %v3058_v60  ;;  %v570_v28 = vrot.slane %v535_v14, 7  ;;  %v632_v30 = vsel %vm568_vm0, 0.0, %v578_v19  ;;  %v914_v31 = vunpack.c.l.b16 %v859_v26  ;;  %v584_v52 = vrot.slane %v3555_v25, 7  ;;  %v3063_v13 = vld [vmem:[%s4206_s3 + $0xd8] sm:$0xff] }
  0x34   : > { %1478 = vmatpush.bf16.msrb.mxu3 %v3066_v61  ;;  %1637 = vmatpush.bf16.msrb.mxu0 %v3074_v6  ;;  %v629_v32 = vsel %vm568_vm0, 0.0, %v569_v21  ;;  %v580_v33 = vsel %vm568_vm0, %v578_v19, %v579_v24  ;;  %v642_v34 = vsel %vm568_vm0, %v579_v24, 0.0  ;;  %v3573_v45 = vpack.c.bf16 %v632_v30, %v632_v30  ;;  %v3072_v6 = vld [vmem:[%s4206_s3 + $0x120] sm:$0xff] }
  0x35   : > { %v571_v39 = vsel %vm568_vm0, %v569_v21, %v570_v28  ;;  %v639_v40 = vsel %vm568_vm0, %v570_v28, 0.0  ;;  %v3568_v43 = vpack.c.bf16 %v629_v32, %v629_v32  ;;  %v3575_v46 = vpack.c.b16 %v914_v31, %v913_v27  ;;  %v482_v21 = vld [vmem:[%s3373_s12 + $0x60] sm:$0xff] }
  0x36   : > { %v3577_v47 = vpack.c.bf16 %v571_v39, %v571_v39  ;;  %v3579_v48 = vpack.c.bf16 %v639_v40, %v639_v40  ;;  %v3590_v55 = vpack.c.bf16 %v580_v33, %v580_v33  ;;  %v3592_v56 = vpack.c.bf16 %v642_v34, %v642_v34 }
  0x37   : > { %1128 = vmatpush.bf16.msrb.mxu1 %v3041_v18  ;;  %1341 = vmatpush.bf16.msrb.mxu2 %v3057_v22  ;;  %v693_v53 = vshrl.u32 %v3568_v43, 16  ;;  %v696_v54 = vshll.u32 %v3568_v43, 16  ;;  %v765_v60 = vshrl.u32 %v3573_v45, 16  ;;  %v768_v63 = vshll.u32 %v3573_v45, 16 }
  0x38   : > { %1479 = vmatpush.bf16.msrb.mxu3 %v3065_v23  ;;  %1638 = vmatpush.bf16.msrb.mxu0 %v3073_v29  ;;  %v702_v57 = vshll.u32 %v3577_v47, 16  ;;  %v706_v58 = vshrl.u32 %v3577_v47, 16  ;;  %v712_v59 = vshll.u32 %v3579_v48, 16  ;;  %v774_v1 = vshll.u32 %v3590_v55, 16 }
  0x39   : > { %1019 = vmatmul.bf16.vlgmr.msra.gmra.mxu3 %v3575_v46  ;;  %v695_v61 = vrot.slane %v693_v53, 4  ;;  %v698_v62 = vrot.slane %v696_v54, 5  ;;  %v767_v10 = vrot.slane %v765_v60, 4  ;;  %v770_v18 = vrot.slane %v768_v63, 5 }
  0x3a   : > { %v704_v7 = vrot.slane %v702_v57, 5  ;;  %v708_v8 = vrot.slane %v706_v58, 4  ;;  %v714_v9 = vrot.slane %v712_v59, 5  ;;  %v776_v19 = vrot.slane %v774_v1, 5  ;;  %v3062_v59 = vld [vmem:[%s4206_s3 + $0xd0] sm:$0xff]  ;;  %v483_v1 = vld [vmem:[%s3373_s12 + $0x68] sm:$0xff] }
  0x3b   : > { %1129 = vmatpush.bf16.msrb.mxu1 %v3040_v44  ;;  %1342 = vmatpush.bf16.msrb.mxu2 %v3056_v50  ;;  %v699_v14 = vor.u32 %v698_v62, %v695_v61  ;;  %v778_v12 = vshrl.u32 %v3590_v55, 16  ;;  %v784_v23 = vshll.u32 %v3592_v56, 16  ;;  %v517_v24 = vadd.f32 %v3378_v5, %v3544_v20  ;;  %v3054_v44 = vld [vmem:[%s4206_s3 + $0x90] sm:$0xff]  ;;  %v3071_v50 = vld [vmem:[%s4206_s3 + $0x118] sm:$0xff] }
  0x3c   : > { %1480 = vmatpush.bf16.msrb.mxu3 %v3064_v51  ;;  %1639 = vmatpush.bf16.msrb.mxu0 %v3072_v6  ;;  %v709_v22 = vor.u32 %v708_v8, %v704_v7  ;;  %v634_v25 = vsel %vm568_vm0, 0.0, %v584_v52  ;;  %v771_v27 = vor.u32 %v770_v18, %v767_v10  ;;  %v501_v33 = vmul.f32 %v3364_v3, %v482_v21  ;;  %v3038_v51 = vld [vmem:[%s4206_s3 + $0x10] sm:$0xff]  ;;  %v3053_v10 = vld [vmem:[%s4206_s3 + $0x88] sm:$0xff] }
  0x3d   : > { %v700_v26 = vrot.slane %v699_v14, 4  ;;  %v780_v28 = vrot.slane %v778_v12, 4  ;;  %v3619_v29 = vpack.c.bf16 %v634_v25, %v634_v25  ;;  %v786_v31 = vrot.slane %v784_v23, 5  ;;  %v3061_v12 = vld [vmem:[%s4206_s3 + $0xc8] sm:$0xff] }
  0x3e   : > { %v710_v30 = vrot.slane %v709_v22, 4  ;;  %v585_v32 = vrot.slane %v517_v24, 7  ;;  %v772_v20 = vrot.slane %v771_v27, 4  ;;  %v502_v24 = vmul.f32 %v3364_v3, %v483_v1  ;;  %v471_v25 = vld [vmem:[%s3373_s12 + $0x8] sm:$0xff] }
  0x3f   : > { %1130 = vmatpush.bf16.msrb.mxu1 %v3039_v11  ;;  %1343 = vmatpush.bf16.msrb.mxu2 %v3055_v4  ;;  %v705_v34 = vsel %vm3459_vm3, %v700_v26, %v704_v7  ;;  %v781_v39 = vor.u32 %v780_v28, %v776_v19  ;;  %v813_v40 = vshrl.u32 %v3619_v29, 16  ;;  %v816_v8 = vshll.u32 %v3619_v29, 16  ;;  %v3070_v11 = vld [vmem:[%s4206_s3 + $0x110] sm:$0xff] }
  0x40   : > { %1481 = vmatpush.bf16.msrb.mxu3 %v3063_v13  ;;  %v715_v53 = vsel %vm3459_vm3, %v710_v30, %v714_v9  ;;  %v901_v54 = vunpack.c.l.b16 %v705_v34  ;;  %v586_v57 = vsel %vm568_vm0, %v584_v52, %v585_v32  ;;  %v644_v58 = vsel %vm568_vm0, %v585_v32, 0.0  ;;  %1640 = vmatpush.bf16.msrb.mxu0 %v3071_v50  ;;  %v3037_v52 = vld [vmem:[%s4206_s3 + $0x8] sm:$0xff]  ;;  %v470_v9 = vld [vmem:[%s3373_s12] sm:$0xff] }
  0x41   : > { %v902_v60 = vunpack.c.l.b16 %v715_v53  ;;  %v777_v61 = vsel %vm3459_vm3, %v772_v20, %v776_v19  ;;  %v782_v62 = vrot.slane %v781_v39, 4  ;;  %v3643_v63 = vpack.c.bf16 %v586_v57, %v586_v57 }
  0x42   : > { %v907_v4 = vunpack.c.l.b16 %v777_v61  ;;  %v3649_v6 = vpack.c.bf16 %v644_v58, %v644_v58  ;;  %v815_v7 = vrot.slane %v813_v40, 4  ;;  %v818_v22 = vrot.slane %v816_v8, 5  ;;  %v3052_v40 = vld [vmem:[%s4206_s3 + $0x80] sm:$0xff] }
  0x43   : > { %1131 = vmatpush.bf16.msrb.mxu1 %v3038_v51  ;;  %1344 = vmatpush.bf16.msrb.mxu2 %v3054_v44  ;;  %v917_v13 = vpack.c.b16 %v902_v60, %v901_v54  ;;  %v787_v14 = vsel %vm3459_vm3, %v782_v62, %v786_v31  ;;  %v822_v18 = vshll.u32 %v3643_v63, 16  ;;  %v826_v19 = vshrl.u32 %v3643_v63, 16  ;;  %v3036_v31 = vld [vmem:[%s4206_s3] sm:$0xff] }
  0x44   : > { %1482 = vmatpush.bf16.msrb.mxu3 %v3062_v59  ;;  %v908_v21 = vunpack.c.l.b16 %v787_v14  ;;  %v832_v23 = vshll.u32 %v3649_v6, 16  ;;  %v520_v28 = vadd.f32 %v3378_v5, %v501_v33  ;;  %v489_v30 = vmul.f32 %v3364_v3, %v470_v9  ;;  %1641 = vmatpush.bf16.msrb.mxu0 %v3070_v11  ;;  %v3069_v33 = vld [vmem:[%s4206_s3 + $0x108] sm:$0xff]  ;;  %v3060_v54 = vld [vmem:[%s4206_s3 + $0xc0] sm:$0xff] }
  0x45   : > { %989 = vmatmul.bf16.vlgmr.msra.gmra.mxu0 %v917_v13  ;;  %v824_v26 = vrot.slane %v822_v18, 5  ;;  %v828_v27 = vrot.slane %v826_v19, 4  ;;  %v819_v34 = vor.u32 %v818_v22, %v815_v7  ;;  %v521_v39 = vadd.f32 %v3378_v5, %v502_v24  ;;  %v3068_v9 = vld [vmem:[%s4206_s3 + $0x100] sm:$0xff] }
  0x46   : > { %v3674_v32 = vpack.c.b16 %v908_v21, %v907_v4  ;;  %v834_v20 = vrot.slane %v832_v23, 5  ;;  %v590_v50 = vrot.slane %v520_v28, 7  ;;  %v490_v51 = vmul.f32 %v3364_v3, %v471_v25 }
  0x47   : > { %1132 = vmatpush.bf16.msrb.mxu1 %v3037_v52  ;;  %1345 = vmatpush.bf16.msrb.mxu2 %v3053_v10  ;;  %v829_v44 = vor.u32 %v828_v27, %v824_v26  ;;  %v508_v53 = vadd.f32 %v3378_v5, %v489_v30  ;;  %v820_v57 = vrot.slane %v819_v34, 4  ;;  %v591_v58 = vrot.slane %v521_v39, 7  ;;  %v3099_v10 = vld [vmem:[%s4206_s3 + $0x1f8] sm:$0xff] }
  0x48   : > { %1483 = vmatpush.bf16.msrb.mxu3 %v3061_v12  ;;  %1004 = vmatmul.bf16.gmra.mxu1 %v3674_v32  ;;  %v1046_v59 = vunpack.c.l.b16 %v3568_v43  ;;  %v1047_v60 = vunpack.c.l.b16 %v3577_v47  ;;  %v636_v62 = vsel %vm568_vm0, 0.0, %v590_v50  ;;  %v509_v3 = vadd.f32 %v3378_v5, %v490_v51  ;;  %v3091_v5 = vld [vmem:[%s4206_s3 + $0x1b8] sm:$0xff] }
  0x49   : > { %v830_v61 = vrot.slane %v829_v44, 4  ;;  %v572_v1 = vrot.slane %v508_v53, 7  ;;  %v825_v52 = vsel %vm3459_vm3, %v820_v57, %v824_v26  ;;  %v592_v4 = vsel %vm568_vm0, %v590_v50, %v591_v58  ;;  %1642 = vmatpush.bf16.msrb.mxu0 %v3069_v33  ;;  %v3083_v53 = vld [vmem:[%s4206_s3 + $0x178] sm:$0xff] }
  0x4a   : > { %v646_v7 = vsel %vm568_vm0, %v591_v58, 0.0  ;;  %v3697_v8 = vpack.c.bf16 %v636_v62, %v636_v62  ;;  %v911_v13 = vunpack.c.l.b16 %v825_v52  ;;  %v3710_v14 = vpack.c.bf16 %v592_v4, %v592_v4 }
  0x4b   : > { %1133 = vmatpush.bf16.msrb.mxu1 %v3036_v31  ;;  %1346 = vmatpush.bf16.msrb.mxu2 %v3052_v40  ;;  %v835_v11 = vsel %vm3459_vm3, %v830_v61, %v834_v20  ;;  %v3712_v18 = vpack.c.bf16 %v646_v7, %v646_v7  ;;  %v573_v22 = vrot.slane %v509_v3, 7  ;;  %v630_v26 = vsel %vm568_vm0, 0.0, %v572_v1 }
  0x4c   : > { %1484 = vmatpush.bf16.msrb.mxu3 %v3060_v54  ;;  %v912_v19 = vunpack.c.l.b16 %v835_v11  ;;  %v861_v12 = vshrl.u32 %v3697_v8, 16  ;;  %v864_v21 = vshll.u32 %v3697_v8, 16  ;;  %v870_v23 = vshll.u32 %v3710_v14, 16  ;;  %v3107_v54 = vld [vmem:[%s4206_s3 + $0x238] sm:$0xff] }
  0x4d   : > { %v874_v24 = vshrl.u32 %v3710_v14, 16  ;;  %v880_v25 = vshll.u32 %v3712_v18, 16  ;;  %v574_v31 = vsel %vm568_vm0, %v572_v1, %v573_v22  ;;  %1643 = vmatpush.bf16.msrb.mxu0 %v3068_v9  ;;  %v640_v40 = vsel %vm568_vm0, %v573_v22, 0.0 }
  0x4e   : > { %v3720_v27 = vpack.c.b16 %v912_v19, %v911_v13  ;;  %v863_v28 = vrot.slane %v861_v12, 4  ;;  %v866_v30 = vrot.slane %v864_v21, 5  ;;  %v872_v34 = vrot.slane %v870_v23, 5 }
  0x4f   : > { %1916 = vmatpush.bf16.msra.mxu2 %v3091_v5  ;;  %v876_v20 = vrot.slane %v874_v24, 4  ;;  %v882_v39 = vrot.slane %v880_v25, 5  ;;  %v3725_v44 = vpack.c.bf16 %v630_v26, %v630_v26  ;;  %v3727_v50 = vpack.c.bf16 %v574_v31, %v574_v31  ;;  %1778 = vmatpush.bf16.msra.mxu1 %v3083_v53 }
  0x50   : > { %2075 = vmatpush.bf16.msra.mxu3 %v3099_v10  ;;  %1014 = vmatmul.bf16.gmra.mxu2 %v3720_v27  ;;  %v867_v33 = vor.u32 %v866_v30, %v863_v28  ;;  %v3729_v51 = vpack.c.bf16 %v640_v40, %v640_v40  ;;  %v1062_v58 = vpack.c.b16 %v1047_v60, %v1046_v59  ;;  %v2680_v9 = vrot.slane %v3568_v43, 9  ;;  %v3090_v40 = vld [vmem:[%s4206_s3 + $0x1b0] sm:$0xff] }
  0x51   : > { %v877_v57 = vor.u32 %v876_v20, %v872_v34  ;;  %v717_v62 = vshrl.u32 %v3725_v44, 16  ;;  %v720_v3 = vshll.u32 %v3725_v44, 16  ;;  %v726_v1 = vshll.u32 %v3727_v50, 16  ;;  %2217 = vmatpush.bf16.msra.mxu0 %v3107_v54 }
  0x52   : > { %v868_v61 = vrot.slane %v867_v33, 4  ;;  %v730_v4 = vshrl.u32 %v3727_v50, 16  ;;  %v736_v7 = vshll.u32 %v3729_v51, 16  ;;  %v1188_v43 = vrot.slane %v3577_v47, 5  ;;  %v3098_v33 = vld [vmem:[%s4206_s3 + $0x1f0] sm:$0xff] }
  0x53   : > { %v878_v52 = vrot.slane %v877_v57, 4  ;;  %v719_v60 = vrot.slane %v717_v62, 4  ;;  %v722_v5 = vrot.slane %v720_v3, 5  ;;  %v728_v10 = vrot.slane %v726_v1, 5  ;;  %1917 = vmatpush.bf16.msra.mxu2 %v3090_v40 }
  0x54   : > { %v873_v59 = vsel %vm3459_vm3, %v868_v61, %v872_v34  ;;  %v732_v19 = vrot.slane %v730_v4, 4  ;;  %v1191_v23 = vrot.slane %v3579_v48, 5  ;;  %v738_v25 = vrot.slane %v736_v7, 5  ;;  %2076 = vmatpush.bf16.msra.mxu3 %v3098_v33  ;;  %v3082_v4 = vld [vmem:[%s4206_s3 + $0x170] sm:$0xff] }
  0x55   : > { %v883_v11 = vsel %vm3459_vm3, %v878_v52, %v882_v39  ;;  %v915_v13 = vunpack.c.l.b16 %v873_v59  ;;  %v723_v22 = vor.u32 %v722_v5, %v719_v60  ;;  %v1189_v30 = vsel %vm3749_vm6, %v2680_v9, %v1188_v43  ;;  %v3106_v7 = vld [vmem:[%s4206_s3 + $0x230] sm:$0xff]  ;;  %1779 = vmatpush.bf16.msra.mxu1 %v3082_v4  ;;  %v3095_v4 = vld [vmem:[%s4206_s3 + $0x1d8] sm:$0xff] }
  0x56   : > { %v916_v21 = vunpack.c.l.b16 %v883_v11  ;;  %v733_v24 = vor.u32 %v732_v19, %v728_v10  ;;  %v1190_v31 = vrot.slane %v1188_v43, 4  ;;  %v1259_v20 = vunpack.c.l.b16 %v1189_v30  ;;  %2218 = vmatpush.bf16.msra.mxu0 %v3106_v7 }
  0x57   : > { %v724_v28 = vrot.slane %v723_v22, 4  ;;  %v1050_v48 = vunpack.c.l.b16 %v3420_v35  ;;  %v1051_v61 = vunpack.c.l.b16 %v3422_v36  ;;  %v1195_v3 = vrot.slane %v3727_v50, 5 }
  0x58   : > { %v3755_v26 = vpack.c.b16 %v916_v21, %v915_v13  ;;  %1134 = vmatmul.bf16.vlgmr.msrb.gmra.mxu1 %v1062_v58  ;;  %v734_v34 = vrot.slane %v733_v24, 4  ;;  %v1192_v47 = vsel %vm3749_vm6, %v1190_v31, %v1191_v23  ;;  %v2682_v9 = vrot.slane %v3420_v35, 9  ;;  %v3089_v31 = vld [vmem:[%s4206_s3 + $0x1a8] sm:$0xff] }
  0x59   : > { %v729_v39 = vsel %vm3459_vm3, %v724_v28, %v728_v10  ;;  %v1260_v57 = vunpack.c.l.b16 %v1192_v47  ;;  %v3775_v52 = vpack.c.b16 %v1051_v61, %v1050_v48  ;;  %v1202_v59 = vrot.slane %v3422_v36, 5  ;;  %1918 = vmatpush.bf16.msra.mxu2 %v3089_v31  ;;  %v3105_v47 = vld [vmem:[%s4206_s3 + $0x228] sm:$0xff] }
  0x5a   : > { %1024 = vmatmul.bf16.gmra.mxu3 %v3755_v26  ;;  %v739_v53 = vsel %vm3459_vm3, %v734_v34, %v738_v25  ;;  %v903_v54 = vunpack.c.l.b16 %v729_v39  ;;  %v1205_v60 = vrot.slane %v3424_v37, 5  ;;  %v1052_v5 = vunpack.c.l.b16 %v3573_v45  ;;  %v3097_v34 = vld [vmem:[%s4206_s3 + $0x1e8] sm:$0xff]  ;;  %2219 = vmatpush.bf16.msra.mxu0 %v3105_v47 }
  0x5b   : > { %v904_v58 = vunpack.c.l.b16 %v739_v53  ;;  %v1275_v62 = vpack.c.b16 %v1260_v57, %v1259_v20  ;;  %v2681_v10 = vrot.slane %v3725_v44, 9  ;;  %v1197_v11 = vrot.slane %v1195_v3, 4  ;;  %2077 = vmatpush.bf16.msra.mxu3 %v3097_v34  ;;  %v3081_v39 = vld [vmem:[%s4206_s3 + $0x168] sm:$0xff] }
  0x5c   : > { %v1198_v13 = vrot.slane %v3729_v51, 5  ;;  %v1053_v19 = vunpack.c.l.b16 %v3590_v55  ;;  %v1048_v21 = vunpack.c.l.b16 %v3725_v44  ;;  %v1049_v22 = vunpack.c.l.b16 %v3727_v50  ;;  %1780 = vmatpush.bf16.msra.mxu1 %v3081_v39 }
  0x5d   : > { %v918_v1 = vpack.c.b16 %v904_v58, %v903_v54  ;;  %v1203_v35 = vsel %vm3749_vm6, %v2682_v9, %v1202_v59  ;;  %v1204_v36 = vrot.slane %v1202_v59, 4  ;;  %v1196_v51 = vsel %vm3749_vm6, %v2681_v10, %v1195_v3  ;;  %v3104_v3 = vld [vmem:[%s4206_s3 + $0x220] sm:$0xff]  ;;  %v3079_v9 = vld [vmem:[%s4206_s3 + $0x158] sm:$0xff] }
  0x5e   : > { %v1263_v37 = vunpack.c.l.b16 %v1203_v35  ;;  %v3794_v43 = vpack.c.b16 %v1053_v19, %v1052_v5  ;;  %v1199_v44 = vsel %vm3749_vm6, %v1197_v11, %v1198_v13  ;;  %v1063_v50 = vpack.c.b16 %v1049_v22, %v1048_v21  ;;  %2220 = vmatpush.bf16.msra.mxu0 %v3104_v3  ;;  %v3103_v59 = vld [vmem:[%s4206_s3 + $0x218] sm:$0xff] }
  0x5f   : > { %994 = vmatmul.bf16.gmra.mxu0 %v918_v1  ;;  %v1206_v23 = vsel %vm3749_vm6, %v1204_v36, %v1205_v60  ;;  %v1261_v28 = vunpack.c.l.b16 %v1196_v51  ;;  %v1262_v30 = vunpack.c.l.b16 %v1199_v44  ;;  %v2683_v48 = vrot.slane %v3573_v45, 9  ;;  %v3088_v45 = vld [vmem:[%s4206_s3 + $0x1a0] sm:$0xff]  ;;  %v3102_v51 = vld [vmem:[%s4206_s3 + $0x210] sm:$0xff] }
  0x60   : > { %1347 = vmatmul.bf16.vlgmr.msrb.gmra.mxu2 %v1275_v62  ;;  %v1264_v24 = vunpack.c.l.b16 %v1206_v23  ;;  %v1209_v40 = vrot.slane %v3590_v55, 5  ;;  %v1212_v33 = vrot.slane %v3592_v56, 5  ;;  %v3096_v55 = vld [vmem:[%s4206_s3 + $0x1e0] sm:$0xff]  ;;  %v1216_v7 = vrot.slane %v3433_v42, 5  ;;  %v3078_v23 = vld [vmem:[%s4206_s3 + $0x150] sm:$0xff] }
  0x61   : > { %v3810_v20 = vpack.c.b16 %v1262_v30, %v1261_v28  ;;  %1919 = vmatpush.bf16.msra.mxu2 %v3088_v45  ;;  %2078 = vmatpush.bf16.msra.mxu3 %v3096_v55  ;;  %v3080_v56 = vld [vmem:[%s4206_s3 + $0x160] sm:$0xff]  ;;  %v2684_v60 = vrot.slane %v3431_v41, 9  ;;  %v1219_v10 = vrot.slane %v3444_v49, 5  ;;  %v1054_v11 = vunpack.c.l.b16 %v3431_v41  ;;  %v3086_v41 = vld [vmem:[%s4206_s3 + $0x190] sm:$0xff] }
  0x62   : > { %v3802_v25 = vpack.c.b16 %v1264_v24, %v1263_v37  ;;  %v1210_v53 = vsel %vm3749_vm6, %v2683_v48, %v1209_v40  ;;  %v1211_v54 = vrot.slane %v1209_v40, 4  ;;  %1781 = vmatpush.bf16.msra.mxu1 %v3080_v56  ;;  %v1218_v5 = vrot.slane %v1216_v7, 4  ;;  %2221 = vmatpush.bf16.msra.mxu0 %v3103_v59  ;;  %v3928_v56 = vld [vmem:[%s4207_s4] ss:$0 sm:$0xff] }
  0x63   : > { %v1265_v57 = vunpack.c.l.b16 %v1210_v53  ;;  %v1055_v13 = vunpack.c.l.b16 %v3433_v42  ;;  %v1217_v19 = vsel %vm3749_vm6, %v2684_v60, %v1216_v7  ;;  %v3094_v42 = vld [vmem:[%s4206_s3 + $0x1d0] sm:$0xff]  ;;  %v1223_v37 = vrot.slane %v3643_v63, 5  ;;  %v485_v53 = vld [vmem:[%s3373_s12 + $0x78] sm:$0xff]  ;;  %v3941_v59 = vld [vmem:[%s4208_s5] ss:$0 sm:$0xff] }
  0x64   : > { %v1213_v58 = vsel %vm3749_vm6, %v1211_v54, %v1212_v33  ;;  %v1220_v21 = vsel %vm3749_vm6, %v1218_v5, %v1219_v10  ;;  %v1267_v35 = vunpack.c.l.b16 %v1217_v19  ;;  %v2685_v44 = vrot.slane %v3619_v29, 9  ;;  %v484_v33 = vld [vmem:[%s3373_s12 + $0x70] sm:$0xff] }
  0x65   : > { %v1266_v61 = vunpack.c.l.b16 %v1213_v58  ;;  %2079 = vmatpush.bf16.msra.mxu3 %v3095_v4  ;;  %v3869_v22 = vpack.c.b16 %v1055_v13, %v1054_v11  ;;  %v1268_v36 = vunpack.c.l.b16 %v1220_v21  ;;  %v1225_v24 = vrot.slane %v1223_v37, 4  ;;  %v3101_v58 = vld [vmem:[%s4206_s3 + $0x208] sm:$0xff] }
  0x66   : > { %1782 = vmatpush.bf16.msra.mxu1 %v3079_v9  ;;  %v1056_v28 = vunpack.c.l.b16 %v3619_v29  ;;  %v1057_v30 = vunpack.c.l.b16 %v3643_v63  ;;  %2222 = vmatpush.bf16.msra.mxu0 %v3102_v51  ;;  %v1224_v31 = vsel %vm3749_vm6, %v2685_v44, %v1223_v37  ;;  %v3085_v29 = vld [vmem:[%s4206_s3 + $0x188] sm:$0xff]  ;;  %v1230_v40 = vrot.slane %v3480_v16, 5  ;;  %v3092_v37 = vld [vmem:[%s4206_s3 + $0x1c0] sm:$0xff] }
  0x67   : > { %v3826_v62 = vpack.c.b16 %v1266_v61, %v1265_v57  ;;  %v3879_v49 = vpack.c.b16 %v1268_v36, %v1267_v35  ;;  %v1269_v47 = vunpack.c.l.b16 %v1224_v31  ;;  %v3093_v63 = vld [vmem:[%s4206_s3 + $0x1c8] sm:$0xff]  ;;  %v2686_v54 = vrot.slane %v3478_v15, 9 }
  0x68   : > { %1139 = vmatmul.bf16.gmra.mxu1 %v1063_v50  ;;  %v3898_v39 = vpack.c.b16 %v1057_v30, %v1056_v28  ;;  %v3077_v57 = vld [vmem:[%s4206_s3 + $0x148] sm:$0xff]  ;;  %v1232_v45 = vrot.slane %v1230_v40, 4  ;;  %v1233_v55 = vrot.slane %v3482_v17, 5  ;;  %v503_v3 = vmul.f32 %v3928_v56, %v484_v33 }
  0x69   : > { %2080 = vmatpush.bf16.msra.mxu3 %v3094_v42  ;;  %v1058_v4 = vunpack.c.l.b16 %v3478_v15  ;;  %v1059_v7 = vunpack.c.l.b16 %v3480_v16  ;;  %v1231_v9 = vsel %vm3749_vm6, %v2686_v54, %v1230_v40  ;;  %v1237_v35 = vrot.slane %v3710_v14, 5  ;;  %v3084_v42 = vld [vmem:[%s4206_s3 + $0x180] sm:$0xff] }
  0x6a   : > { %1485 = vmatmul.bf16.vlgmr.msrb.gmra.mxu3 %v1063_v50  ;;  %v1226_v50 = vrot.slane %v3649_v6, 5  ;;  %1783 = vmatpush.bf16.msra.mxu1 %v3078_v23  ;;  %v1234_v17 = vsel %vm3749_vm6, %v1232_v45, %v1233_v55  ;;  %v522_v60 = vadd.f32 %v3941_v59, %v503_v3  ;;  %v1271_v16 = vunpack.c.l.b16 %v1231_v9 }
  0x6b   : > { %2223 = vmatpush.bf16.msra.mxu0 %v3101_v58  ;;  %v3945_v15 = vpack.c.b16 %v1059_v7, %v1058_v4  ;;  %v1272_v10 = vunpack.c.l.b16 %v1234_v17  ;;  %v1239_v28 = vrot.slane %v1237_v35, 4  ;;  %v1240_v30 = vrot.slane %v3712_v18, 5 }
  0x6c   : > { %v1227_v34 = vsel %vm3749_vm6, %v1225_v24, %v1226_v50  ;;  %v593_v11 = vrot.slane %v522_v60, 7  ;;  %v3076_v24 = vld [vmem:[%s4206_s3 + $0x140] sm:$0xff]  ;;  %v2687_v50 = vrot.slane %v3697_v8, 9  ;;  %v1060_v31 = vunpack.c.l.b16 %v3697_v8 }
  0x6d   : > { %v1270_v6 = vunpack.c.l.b16 %v1227_v34  ;;  %2081 = vmatpush.bf16.msra.mxu3 %v3093_v63  ;;  %v3951_v21 = vpack.c.b16 %v1272_v10, %v1271_v16  ;;  %v1061_v34 = vunpack.c.l.b16 %v3710_v14  ;;  %v1241_v33 = vsel %vm3749_vm6, %v1239_v28, %v1240_v30  ;;  %v3100_v14 = vld [vmem:[%s4206_s3 + $0x200] sm:$0xff] }
  0x6e   : > { %1784 = vmatpush.bf16.msra.mxu1 %v3077_v57  ;;  %v1238_v40 = vsel %vm3749_vm6, %v2687_v50, %v1237_v35  ;;  %v1274_v58 = vunpack.c.l.b16 %v1241_v33 }
  0x6f   : > { %1644 = vmatmul.bf16.vlgmr.msrb.gmra.mxu0 %v918_v1  ;;  %v3087_v1 = vld [vmem:[%s4206_s3 + $0x198] sm:$0xff]  ;;  %v3908_v48 = vpack.c.b16 %v1270_v6, %v1269_v47  ;;  %v1273_v57 = vunpack.c.l.b16 %v1238_v40 }
  0x70   : > { %1352 = vmatmul.bf16.gmra.mxu2 %v3810_v20  ;;  %2224 = vmatpush.bf16.msra.mxu0 %v3100_v14 }
  0x71   : > { %1920 = vmatpush.bf16.msra.mxu2 %v3087_v1  ;;  %v504_v1 = vmul.f32 %v3928_v56, %v485_v53  ;;  %2082 = vmatpush.bf16.msra.mxu3 %v3092_v37  ;;  %v3991_v53 = vpack.c.b16 %v1061_v34, %v1060_v31  ;;  %v4001_v17 = vpack.c.b16 %v1274_v58, %v1273_v57 }
  0x72   : > { %1785 = vmatpush.bf16.msra.mxu1 %v3076_v24 }
  0x73   : > { %v523_v5 = vadd.f32 %v3941_v59, %v504_v1 }
  0x75   : > { %1921 = vmatpush.bf16.msra.mxu2 %v3086_v41  ;;  %v594_v13 = vrot.slane %v523_v5, 7  ;;  %v637_v41 = vsel %vm568_vm0, 0.0, %v593_v11 }
  0x76   : > { %v3966_v51 = vpack.c.bf16 %v637_v41, %v637_v41 }
  0x77   : > { %v595_v36 = vsel %vm568_vm0, %v593_v11, %v594_v13  ;;  %v647_v18 = vsel %vm568_vm0, %v594_v13, 0.0 }
  0x78   : > { %1144 = vmatmul.bf16.gmra.mxu1 %v3775_v52  ;;  %v3968_v44 = vpack.c.bf16 %v595_v36, %v595_v36  ;;  %v1544_v47 = vshrl.u32 %v3966_v51, 16  ;;  %v1547_v6 = vshll.u32 %v3966_v51, 16  ;;  %v3996_v45 = vpack.c.bf16 %v647_v18, %v647_v18 }
  0x79   : > { %1922 = vmatpush.bf16.msra.mxu2 %v3085_v29  ;;  %v1425_v41 = vunpack.c.l.b16 %v3966_v51 }
  0x7a   : > { %1490 = vmatmul.bf16.gmra.mxu3 %v3775_v52  ;;  %v1553_v29 = vshll.u32 %v3968_v44, 16  ;;  %v1557_v8 = vshrl.u32 %v3968_v44, 16  ;;  %v1546_v1 = vrot.slane %v1544_v47, 4  ;;  %v1549_v4 = vrot.slane %v1547_v6, 5 }
  0x7b   : > { %v1563_v16 = vshll.u32 %v3996_v45, 16 }
  0x7c   : > { %v1555_v7 = vrot.slane %v1553_v29, 5  ;;  %v1559_v9 = vrot.slane %v1557_v8, 4  ;;  %v1550_v60 = vor.u32 %v1549_v4, %v1546_v1 }
  0x7d   : > { %1923 = vmatpush.bf16.msra.mxu2 %v3084_v42  ;;  %v1565_v35 = vrot.slane %v1563_v16, 5  ;;  %v1426_v42 = vunpack.c.l.b16 %v3968_v44 }
  0x7e   : > { %v1560_v5 = vor.u32 %v1559_v9, %v1555_v7  ;;  %v1551_v11 = vrot.slane %v1550_v60, 4 }
  0x7f   : > { %1649 = vmatmul.bf16.gmra.mxu0 %v3503_v38  ;;  %v4018_v31 = vpack.c.b16 %v1426_v42, %v1425_v41 }
  0x80   : > { %1357 = vmatmul.bf16.gmra.mxu2 %v3802_v25  ;;  %v1561_v13 = vrot.slane %v1560_v5, 4  ;;  %v1556_v50 = vsel %vm3459_vm3, %v1551_v11, %v1555_v7 }
  0x81   : > { %v1584_v47 = vunpack.c.l.b16 %v1556_v50 }
  0x82   : > { %v1566_v28 = vsel %vm3459_vm3, %v1561_v13, %v1565_v35 }
  0x83   : > { %v1585_v6 = vunpack.c.l.b16 %v1566_v28 }
  0x85   : > { %v4024_v40 = vpack.c.b16 %v1585_v6, %v1584_v47 }
  0x88   : > { %1149 = vmatmul.bf16.gmra.mxu1 %v3794_v43 }
  0x8a   : > { %1495 = vmatmul.bf16.gmra.mxu3 %v3794_v43 }
  0x8f   : > { %1654 = vmatmul.bf16.gmra.mxu0 %v3674_v32 }
  0x90   : > { %1362 = vmatmul.bf16.gmra.mxu2 %v3826_v62 }
  0x98   : > { %1154 = vmatmul.bf16.gmra.mxu1 %v3869_v22 }
  0x9a   : > { %1500 = vmatmul.bf16.gmra.mxu3 %v3869_v22 }
  0x9f   : > { %1659 = vmatmul.bf16.gmra.mxu0 %v3529_v0 }
  0xa0   : > { %1367 = vmatmul.bf16.gmra.mxu2 %v3879_v49 }
  0xa8   : > { %1159 = vmatmul.bf16.gmra.mxu1 %v3898_v39 }
  0xaa   : > { %1505 = vmatmul.bf16.gmra.mxu3 %v3898_v39 }
  0xab   : > { %v3922_v61 = vpop.f32.mrf.mxu1 }
  0xaf   : > { %1664 = vmatmul.bf16.gmra.mxu0 %v3720_v27 }
  0xb0   : > { %1372 = vmatmul.bf16.gmra.mxu2 %v3908_v48 }
  0xb3   : > { %v3949_v19 = vpop.f32.mrf.mxu1 }
  0xb4   : > { %v3962_v23 = vpop.f32.mrf.mxu2 }
  0xb8   : > { %1164 = vmatmul.bf16.gmra.mxu1 %v3945_v15 }
  0xba   : > { %1510 = vmatmul.bf16.gmra.mxu3 %v3945_v15 }
  0xbc   : > { %v3993_v54 = vpop.f32.mrf.mxu3  ;;  %v3998_v3 = vpop.f32.mrf.mxu2 }
  0xbf   : > { %1669 = vmatmul.bf16.gmra.mxu0 %v3575_v46 }
  0xc0   : > { %1377 = vmatmul.bf16.gmra.mxu2 %v3951_v21 }
  0xc2   : > { %v990_v55 = vpop.f32.mrf.mxu0 }
  0xc4   : > { %v4008_v36 = vpop.f32.mrf.mxu3 }
  0xc5   : > { %v3980_v63 = vpop.f32.mrf.mxu1 }
  0xc8   : > { %1169 = vmatmul.bf16.gmra.mxu1 %v3991_v53 }
  0xca   : > { %1515 = vmatmul.bf16.gmra.mxu3 %v3991_v53  ;;  %v992_v37 = vpop.f32.mrf.mxu0 }
  0xcd   : > { %v4004_v10 = vpop.f32.mrf.mxu1 }
  0xcf   : > { %1674 = vmatmul.bf16.gmra.mxu0 %v3755_v26 }
  0xd0   : > { %1382 = vmatmul.bf16.gmra.mxu2 %v4001_v17 }
  0xd3   : > { %v4012_v24 = vpop.f32.mrf.mxu2 }
  0xd5   : > { %v1135_v30 = vpop.f32.mrf.mxu1 }
  0xd6   : > { %v1136_v34 = vadd.f32 %v1135_v30, %v990_v55 }
  0xd8   : > { %1786 = vmatmul.bf16.vlgmr.msra.gmra.mxu1 %v3810_v20 }
  0xda   : > { %1520 = vmatmul.bf16.gmra.mxu3 %v4018_v31 }
  0xdb   : > { %v4022_v29 = vpop.f32.mrf.mxu2 }
  0xdc   : > { %v995_v33 = vpop.f32.mrf.mxu0 }
  0xdd   : > { %v4026_v18 = vpop.f32.mrf.mxu3  ;;  %v1137_v8 = vpop.f32.mrf.mxu1 }
  0xde   : > { %v1138_v14 = vadd.f32 %v1137_v8, %v992_v37 }
  0xdf   : > { %1679 = vmatmul.bf16.gmra.mxu0 %v4024_v40 }
  0xe0   : > { %1924 = vmatmul.bf16.vlgmr.msra.gmra.mxu2 %v3775_v52 }
  0xe3   : > { %v1348_v57 = vpop.f32.mrf.mxu2 }
  0xe4   : > { %v1388_v58 = vadd.f32 %v1348_v57, %v1136_v34  ;;  %v997_v55 = vpop.f32.mrf.mxu0 }
  0xe5   : > { %v4030_v1 = vpop.f32.mrf.mxu3  ;;  %v1140_v20 = vpop.f32.mrf.mxu1 }
  0xe6   : > { %v1141_v4 = vadd.f32 %v1140_v20, %v995_v33 }
  0xe8   : > { %1791 = vmatmul.bf16.gmra.mxu1 %v3802_v25 }
  0xea   : > { %2083 = vmatmul.bf16.vlgmr.msra.gmra.mxu3 %v3503_v38 }
  0xeb   : > { %v1350_v7 = vpop.f32.mrf.mxu2 }
  0xec   : > { %v1389_v9 = vadd.f32 %v1350_v7, %v1138_v14  ;;  %v1645_v60 = vpop.f32.mrf.mxu0 }
  0xed   : > { %v1486_v5 = vpop.f32.mrf.mxu3  ;;  %v1142_v11 = vpop.f32.mrf.mxu1 }
  0xee   : > { %v1526_v16 = vadd.f32 %v1486_v5, %v1388_v58  ;;  %v1143_v13 = vadd.f32 %v1142_v11, %v997_v55 }
  0xef   : > { %2225 = vmatmul.bf16.vlgmr.msra.gmra.mxu0 %v3802_v25 }
  0xf0   : > { %1929 = vmatmul.bf16.gmra.mxu2 %v3794_v43  ;;  %v4036_v52 = vadd.f32 %v1645_v60, %v1526_v16 }
  0xf3   : > { %v1353_v35 = vpop.f32.mrf.mxu2 }
  0xf4   : > { %v1390_v41 = vadd.f32 %v1353_v35, %v1141_v4  ;;  %v1647_v42 = vpop.f32.mrf.mxu0 }
  0xf5   : > { %v1488_v37 = vpop.f32.mrf.mxu3  ;;  %v1145_v28 = vpop.f32.mrf.mxu1 }
  0xf6   : > { %v1527_v50 = vadd.f32 %v1488_v37, %v1389_v9  ;;  %v1146_v14 = vadd.f32 %v1145_v28, %v3922_v61 }
  0xf8   : > { %1796 = vmatmul.bf16.gmra.mxu1 %v3826_v62  ;;  %v4039_v38 = vadd.f32 %v1647_v42, %v1527_v50 }
  0xfa   : > { %2088 = vmatmul.bf16.gmra.mxu3 %v3674_v32 }
  0xfb   : > { %v1355_v30 = vpop.f32.mrf.mxu2 }
  0xfc   : > { %v1391_v34 = vadd.f32 %v1355_v30, %v1143_v13  ;;  %v1650_v47 = vpop.f32.mrf.mxu0 }
  0xfd   : > { %v1491_v25 = vpop.f32.mrf.mxu3  ;;  %v1147_v43 = vpop.f32.mrf.mxu1 }
  0xfe   : > { %v1528_v6 = vadd.f32 %v1491_v25, %v1390_v41  ;;  %v1148_v33 = vadd.f32 %v1147_v43, %v3949_v19  ;;  %v537_v43 = vld [vmem:[%s444_s11 + $0x8] sm:$0xff] }
  0xff   : > { %2230 = vmatmul.bf16.gmra.mxu0 %v3826_v62 }
 0x100   : > { %1934 = vmatmul.bf16.gmra.mxu2 %v3869_v22  ;;  %v4045_v8 = vadd.f32 %v1650_v47, %v1528_v6  ;;  %v536_v6 = vld [vmem:[%s444_s11] sm:$0xff] }
 0x103   : > { %v1358_v57 = vpop.f32.mrf.mxu2 }
 0x104   : > { %v1392_v58 = vadd.f32 %v1358_v57, %v1146_v14  ;;  %v1652_v32 = vpop.f32.mrf.mxu0 }
 0x105   : > { %v1493_v55 = vpop.f32.mrf.mxu3  ;;  %v1150_v4 = vpop.f32.mrf.mxu1 }
 0x106   : > { %v1529_v20 = vadd.f32 %v1493_v55, %v1391_v34  ;;  %v1151_v7 = vadd.f32 %v1150_v4, %v3980_v63 }
 0x108   : > { %1801 = vmatmul.bf16.gmra.mxu1 %v3879_v49  ;;  %v4050_v9 = vadd.f32 %v1652_v32, %v1529_v20 }
 0x10a   : > { %2093 = vmatmul.bf16.gmra.mxu3 %v3529_v0 }
 0x10b   : > { %v1360_v62 = vpop.f32.mrf.mxu2 }
 0x10c   : > { %v1393_v22 = vadd.f32 %v1360_v62, %v1148_v33  ;;  %v1655_v61 = vpop.f32.mrf.mxu0  ;;  %v545_v62 = vstv %s544_s16 }
 0x10d   : > { %v1496_v19 = vpop.f32.mrf.mxu3  ;;  %v1152_v5 = vpop.f32.mrf.mxu1 }
 0x10e   : > { %v1530_v60 = vadd.f32 %v1496_v19, %v1392_v58  ;;  %v1153_v63 = vadd.f32 %v1152_v5, %v4004_v10  ;;  %v539_v58 = vmul.f32 %v3928_v56, %v537_v43 }
 0x10f   : > { %2235 = vmatmul.bf16.gmra.mxu0 %v3879_v49 }
 0x110   : > { %1939 = vmatmul.bf16.gmra.mxu2 %v3898_v39  ;;  %v4063_v0 = vadd.f32 %v1655_v61, %v1530_v60  ;;  %v541_v4 = vadd.f32 %v3941_v59, %v539_v58 }
 0x112   : > { %v547_v5 = vmul.f32 %v545_v62, %v541_v4 }
 0x113   : > { %v1363_v16 = vpop.f32.mrf.mxu2 }
 0x114   : > { %v1394_v11 = vadd.f32 %v1363_v16, %v1151_v7  ;;  %v1657_v13 = vpop.f32.mrf.mxu0 }
 0x115   : > { %v1498_v35 = vpop.f32.mrf.mxu3  ;;  %v1155_v42 = vpop.f32.mrf.mxu1 }
 0x116   : > { %v1531_v41 = vadd.f32 %v1498_v35, %v1393_v22 }
 0x118   : > { %1806 = vmatmul.bf16.gmra.mxu1 %v3908_v48  ;;  %v4068_v49 = vadd.f32 %v1657_v13, %v1531_v41  ;;  %v1704_v41 = vrot.slane %v3968_v44, 5 }
 0x11a   : > { %2098 = vmatmul.bf16.gmra.mxu3 %v3720_v27  ;;  %v1156_v27 = vadd.f32 %v1155_v42, %v3962_v23 }
 0x11b   : > { %v1365_v39 = vpop.f32.mrf.mxu2 }
 0x11c   : > { %v1395_v10 = vadd.f32 %v1365_v39, %v1153_v63  ;;  %v1660_v37 = vpop.f32.mrf.mxu0 }
 0x11d   : > { %v1501_v50 = vpop.f32.mrf.mxu3  ;;  %v1157_v30 = vpop.f32.mrf.mxu1 }
 0x11e   : > { %v1532_v28 = vadd.f32 %v1501_v50, %v1394_v11  ;;  %v1158_v23 = vadd.f32 %v1157_v30, %v3998_v3  ;;  %v597_v11 = vrot.slane %v547_v5, 7  ;;  %v1707_v50 = vrot.slane %v3996_v45, 5 }
 0x11f   : > { %2240 = vmatmul.bf16.gmra.mxu0 %v3908_v48 }
 0x120   : > { %1944 = vmatmul.bf16.gmra.mxu2 %v3945_v15  ;;  %v4075_v34 = vadd.f32 %v1660_v37, %v1532_v28  ;;  %v538_v15 = vmul.f32 %v3928_v56, %v536_v6  ;;  %v1706_v37 = vrot.slane %v1704_v41, 4 }
 0x122   : > { %v540_v20 = vadd.f32 %v3941_v59, %v538_v15 }
 0x123   : > { %v1368_v47 = vpop.f32.mrf.mxu2 }
 0x124   : > { %v1396_v25 = vadd.f32 %v1368_v47, %v1156_v27  ;;  %v1662_v33 = vpop.f32.mrf.mxu0  ;;  %v546_v60 = vmul.f32 %v545_v62, %v540_v20 }
 0x125   : > { %v1503_v14 = vpop.f32.mrf.mxu3  ;;  %v1160_v57 = vpop.f32.mrf.mxu1 }
 0x126   : > { %v1533_v48 = vadd.f32 %v1503_v14, %v1395_v10  ;;  %v1161_v3 = vadd.f32 %v1160_v57, %v4012_v24  ;;  %v596_v16 = vrot.slane %v546_v60, 7 }
 0x128   : > { %1811 = vmatmul.bf16.gmra.mxu1 %v3951_v21  ;;  %v4086_v32 = vadd.f32 %v1662_v33, %v1533_v48  ;;  %v598_v10 = vsel %vm568_vm0, %v596_v16, %v597_v11  ;;  %v648_v33 = vsel %vm568_vm0, %v597_v11, 0.0 }
 0x129   : > { %v4105_v28 = vpack.c.bf16 %v598_v10, %v598_v10  ;;  %v1981_v20 = vpack.c.bf16 %v648_v33, %v648_v33 }
 0x12a   : > { %2103 = vmatmul.bf16.gmra.mxu3 %v3575_v46 }
 0x12b   : > { %v1370_v55 = vpop.f32.mrf.mxu2  ;;  %v1992_v45 = vshll.u32 %v4105_v28, 16  ;;  %v1996_v57 = vshrl.u32 %v4105_v28, 16  ;;  %v1865_v11 = vunpack.c.l.b16 %v4105_v28 }
 0x12c   : > { %v1397_v7 = vadd.f32 %v1370_v55, %v1158_v23  ;;  %v1665_v22 = vpop.f32.mrf.mxu0 }
 0x12d   : > { %v1506_v61 = vpop.f32.mrf.mxu3  ;;  %v1162_v56 = vpop.f32.mrf.mxu1 }
 0x12e   : > { %v1534_v19 = vadd.f32 %v1506_v61, %v1396_v25  ;;  %v1163_v24 = vadd.f32 %v1162_v56, %v4022_v29  ;;  %v1998_v61 = vrot.slane %v1996_v57, 4 }
 0x12f   : > { %2245 = vmatmul.bf16.gmra.mxu0 %v3951_v21  ;;  %v638_v21 = vsel %vm568_vm0, 0.0, %v596_v16  ;;  %v2002_v16 = vshll.u32 %v1981_v20, 16 }
 0x130   : > { %1949 = vmatmul.bf16.gmra.mxu2 %v3991_v53  ;;  %v4094_v46 = vadd.f32 %v1665_v22, %v1534_v19  ;;  %v2832_v53 = vrot.slane %v3966_v51, 9  ;;  %v4109_v27 = vpack.c.bf16 %v638_v21, %v638_v21  ;;  %v1994_v22 = vrot.slane %v1992_v45, 5 }
 0x132   : > { %v1705_v51 = vsel %vm3749_vm6, %v2832_v53, %v1704_v41  ;;  %v1983_v14 = vshrl.u32 %v4109_v27, 16  ;;  %v1986_v48 = vshll.u32 %v4109_v27, 16 }
 0x133   : > { %v1373_v63 = vpop.f32.mrf.mxu2  ;;  %v1726_v23 = vunpack.c.l.b16 %v1705_v51 }
 0x134   : > { %v1398_v59 = vadd.f32 %v1373_v63, %v1161_v3  ;;  %v1667_v13 = vpop.f32.mrf.mxu0  ;;  %v1988_v62 = vrot.slane %v1986_v48, 5 }
 0x135   : > { %v1508_v35 = vpop.f32.mrf.mxu3  ;;  %v1165_v39 = vpop.f32.mrf.mxu1 }
 0x136   : > { %v1535_v42 = vadd.f32 %v1508_v35, %v1397_v7  ;;  %v1166_v58 = vadd.f32 %v1165_v39, %v3993_v54  ;;  %v1985_v7 = vrot.slane %v1983_v14, 4  ;;  %v1864_v54 = vunpack.c.l.b16 %v4109_v27 }
 0x137   : > { %v2004_v39 = vrot.slane %v2002_v16, 5 }
 0x138   : > { %1816 = vmatmul.bf16.gmra.mxu1 %v4001_v17  ;;  %v4107_v44 = vadd.f32 %v1667_v13, %v1535_v42  ;;  %v1989_v63 = vor.u32 %v1988_v62, %v1985_v7  ;;  %v1866_v21 = vpack.c.b16 %v1865_v11, %v1864_v54 }
 0x13a   : > { %2108 = vmatmul.bf16.gmra.mxu3 %v3755_v26  ;;  %v1708_v26 = vsel %vm3749_vm6, %v1706_v37, %v1707_v50  ;;  %v1990_v41 = vrot.slane %v1989_v63, 4 }
 0x13b   : > { %v1375_v30 = vpop.f32.mrf.mxu2  ;;  %v1727_v55 = vunpack.c.l.b16 %v1708_v26 }
 0x13c   : > { %v1399_v47 = vadd.f32 %v1375_v30, %v1163_v24  ;;  %v1670_v25 = vpop.f32.mrf.mxu0  ;;  %v2143_v24 = vrot.slane %v4105_v28, 5 }
 0x13d   : > { %v1511_v6 = vpop.f32.mrf.mxu3  ;;  %v1167_v29 = vpop.f32.mrf.mxu1  ;;  %v1728_v3 = vpack.c.b16 %v1727_v55, %v1726_v23 }
 0x13e   : > { %v1536_v43 = vadd.f32 %v1511_v6, %v1398_v59  ;;  %v1168_v13 = vadd.f32 %v1167_v29, %v4008_v36  ;;  %v2145_v6 = vrot.slane %v2143_v24, 4 }
 0x13f   : > { %2250 = vmatmul.bf16.gmra.mxu0 %v4001_v17 }
 0x140   : > { %1954 = vmatmul.bf16.gmra.mxu2 %v4018_v31  ;;  %v4122_v15 = vadd.f32 %v1670_v25, %v1536_v43  ;;  %v1999_v31 = vor.u32 %v1998_v61, %v1994_v22  ;;  %v2977_v25 = vrot.slane %v4109_v27, 9  ;;  %v2146_v43 = vrot.slane %v1981_v20, 5 }
 0x142   : > { %v2000_v42 = vrot.slane %v1999_v31, 4  ;;  %v2144_v2 = vsel %vm3749_vm6, %v2977_v25, %v2143_v24  ;;  %v2147_v48 = vsel %vm3749_vm6, %v2145_v6, %v2146_v43 }
 0x143   : > { %v1378_v4 = vpop.f32.mrf.mxu2  ;;  %v2165_v27 = vunpack.c.l.b16 %v2144_v2  ;;  %v2166_v55 = vunpack.c.l.b16 %v2147_v48 }
 0x144   : > { %v1400_v19 = vadd.f32 %v1378_v4, %v1166_v58  ;;  %v1672_v56 = vpop.f32.mrf.mxu0 }
 0x145   : > { %v1513_v60 = vpop.f32.mrf.mxu3  ;;  %v1170_v17 = vpop.f32.mrf.mxu1  ;;  %v2167_v7 = vpack.c.b16 %v2166_v55, %v2165_v27 }
 0x146   : > { %v1537_v5 = vadd.f32 %v1513_v60, %v1399_v47  ;;  %v1995_v47 = vsel %vm3459_vm3, %v1990_v41, %v1994_v22  ;;  %v1171_v51 = vadd.f32 %v1170_v17, %v4026_v18 }
 0x147   : > { %v2023_v26 = vunpack.c.l.b16 %v1995_v47 }
 0x148   : > { %1821 = vmatmul.bf16.gmra.mxu1 %v1728_v3  ;;  %v4127_v59 = vadd.f32 %v1672_v56, %v1537_v5 }
 0x14a   : > { %2113 = vmatmul.bf16.gmra.mxu3 %v4024_v40  ;;  %v2005_v40 = vsel %vm3459_vm3, %v2000_v42, %v2004_v39 }
 0x14b   : > { %v1380_v35 = vpop.f32.mrf.mxu2  ;;  %v2024_v28 = vunpack.c.l.b16 %v2005_v40 }
 0x14c   : > { %v1401_v10 = vadd.f32 %v1380_v35, %v1168_v13  ;;  %v1675_v53 = vpop.f32.mrf.mxu0 }
 0x14d   : > { %v1516_v37 = vpop.f32.mrf.mxu3  ;;  %v1172_v30 = vpop.f32.mrf.mxu1  ;;  %v2025_v58 = vpack.c.b16 %v2024_v28, %v2023_v26 }
 0x14e   : > { %v1538_v50 = vadd.f32 %v1516_v37, %v1400_v19  ;;  %v1173_v18 = vadd.f32 %v1172_v30, %v4030_v1 }
 0x14f   : > { %2255 = vmatmul.bf16.gmra.mxu0 %v1728_v3 }
 0x150   : > { %1959 = vmatmul.bf16.gmra.mxu2 %v1866_v21  ;;  %v4136_v36 = vadd.f32 %v1675_v53, %v1538_v50 }
 0x153   : > { %v1383_v29 = vpop.f32.mrf.mxu2 }
 0x154   : > { %v1402_v45 = vadd.f32 %v1383_v29, %v1171_v51  ;;  %v1677_v33 = vpop.f32.mrf.mxu0 }
 0x155   : > { %v1518_v14 = vpop.f32.mrf.mxu3  ;;  %v1787_v23 = vpop.f32.mrf.mxu1 }
 0x156   : > { %v1539_v57 = vadd.f32 %v1518_v14, %v1401_v10  ;;  %v1827_v1 = vadd.f32 %v1787_v23, %v4036_v52 }
 0x158   : > { %v4144_v20 = vadd.f32 %v1677_v33, %v1539_v57 }
 0x15a   : > { %2118 = vmatmul.bf16.gmra.mxu3 %v2025_v58 }
 0x15b   : > { %v1385_v4 = vpop.f32.mrf.mxu2 }
 0x15c   : > { %v1403_v62 = vadd.f32 %v1385_v4, %v1173_v18  ;;  %v1680_v22 = vpop.f32.mrf.mxu0 }
 0x15d   : > { %v1521_v61 = vpop.f32.mrf.mxu3  ;;  %v1789_v56 = vpop.f32.mrf.mxu1 }
 0x15e   : > { %v1540_v19 = vadd.f32 %v1521_v61, %v1402_v45  ;;  %v1828_v41 = vadd.f32 %v1789_v56, %v4039_v38 }
 0x15f   : > { %2260 = vmatmul.bf16.gmra.mxu0 %v2167_v7 }
 0x160   : > { %v4147_v12 = vadd.f32 %v1680_v22, %v1540_v19 }
 0x163   : > { %v1925_v60 = vpop.f32.mrf.mxu2 }
 0x164   : > { %v1682_v5 = vpop.f32.mrf.mxu0  ;;  %v1965_v11 = vadd.f32 %v1925_v60, %v1827_v1 }
 0x165   : > { %v1523_v3 = vpop.f32.mrf.mxu3  ;;  %v1792_v63 = vpop.f32.mrf.mxu1 }
 0x166   : > { %v1541_v17 = vadd.f32 %v1523_v3, %v1403_v62  ;;  %v1829_v47 = vadd.f32 %v1792_v63, %v4045_v8 }
 0x168   : > { %v4149_v31 = vadd.f32 %v1682_v5, %v1541_v17 }
 0x16b   : > { %v1927_v16 = vpop.f32.mrf.mxu2 }
 0x16c   : > { %v2226_v54 = vpop.f32.mrf.mxu0  ;;  %v1966_v39 = vadd.f32 %v1927_v16, %v1828_v41 }
 0x16d   : > { %v2084_v13 = vpop.f32.mrf.mxu3  ;;  %v1794_v35 = vpop.f32.mrf.mxu1 }
 0x16e   : > { %v2124_v42 = vadd.f32 %v2084_v13, %v1965_v11  ;;  %v1830_v8 = vadd.f32 %v1794_v35, %v4050_v9 }
 0x170   : > { %v2266_v21 = vadd.f32 %v2226_v54, %v2124_v42 }
 0x172   : > { %v2336_v52 = vmul.f32 %v2266_v21, %v2266_v21 }
 0x173   : > { %v1930_v10 = vpop.f32.mrf.mxu2 }
 0x174   : > { %v2228_v53 = vpop.f32.mrf.mxu0  ;;  %v1967_v6 = vadd.f32 %v1930_v10, %v1829_v47 }
 0x175   : > { %v2086_v37 = vpop.f32.mrf.mxu3  ;;  %v1797_v50 = vpop.f32.mrf.mxu1 }
 0x176   : > { %v2125_v24 = vadd.f32 %v2086_v37, %v1966_v39  ;;  %v1831_v7 = vadd.f32 %v1797_v50, %v4063_v0 }
 0x178   : > { %v2267_v30 = vadd.f32 %v2228_v53, %v2125_v24 }
 0x17a   : > { %v3111_v38 = vpack.c.bf16 %v2267_v30, %v2266_v21  ;;  %v2314_v40 = vadd.f32 %v2267_v30, %v2266_v21  ;;  %v2337_v25 = vmul.f32 %v2267_v30, %v2267_v30 }
 0x17b   : > { %v1932_v43 = vpop.f32.mrf.mxu2 }
 0x17c   : > { %3112 = vst [vmem:[%s4158_s20] sm:$0xff] %v3111_v38   ;;  %v2352_v51 = vadd.f32 %v2337_v25, %v2336_v52  ;;  %v2231_v26 = vpop.f32.mrf.mxu0  ;;  %v1968_v48 = vadd.f32 %v1932_v43, %v1830_v8 }
 0x17d   : > { %v2089_v28 = vpop.f32.mrf.mxu3  ;;  %v1799_v45 = vpop.f32.mrf.mxu1 }
 0x17e   : > { %v2126_v29 = vadd.f32 %v2089_v28, %v1967_v6  ;;  %v1832_v1 = vadd.f32 %v1799_v45, %v4068_v49 }
 0x180   : > { %v2268_v33 = vadd.f32 %v2231_v26, %v2126_v29 }
 0x182   : > { %v2315_v14 = vadd.f32 %v2314_v40, %v2268_v33  ;;  %v2338_v2 = vmul.f32 %v2268_v33, %v2268_v33 }
 0x183   : > { %v1935_v57 = vpop.f32.mrf.mxu2 }
 0x184   : > { %v2353_v58 = vadd.f32 %v2352_v51, %v2338_v2  ;;  %v2233_v23 = vpop.f32.mrf.mxu0  ;;  %v1969_v19 = vadd.f32 %v1935_v57, %v1831_v7 }
 0x185   : > { %v2091_v27 = vpop.f32.mrf.mxu3  ;;  %v1802_v18 = vpop.f32.mrf.mxu1 }
 0x186   : > { %v2127_v55 = vadd.f32 %v2091_v27, %v1968_v48  ;;  %v1833_v21 = vadd.f32 %v1802_v18, %v4075_v34 }
 0x188   : > { %v2269_v4 = vadd.f32 %v2233_v23, %v2127_v55 }
 0x18a   : > { %v3116_v62 = vpack.c.bf16 %v2269_v4, %v2268_v33  ;;  %v2316_v22 = vadd.f32 %v2315_v14, %v2269_v4  ;;  %v2339_v61 = vmul.f32 %v2269_v4, %v2269_v4 }
 0x18b   : > { %v1937_v56 = vpop.f32.mrf.mxu2 }
 0x18c   : > { %3148 = vst [vmem:[%s4158_s20 + $0x8] sm:$0xff] %v3116_v62   ;;  %v2354_v9 = vadd.f32 %v2353_v58, %v2339_v61  ;;  %v2236_v60 = vpop.f32.mrf.mxu0  ;;  %v1970_v11 = vadd.f32 %v1937_v56, %v1832_v1 }
 0x18d   : > { %v2094_v5 = vpop.f32.mrf.mxu3  ;;  %v1804_v17 = vpop.f32.mrf.mxu1 }
 0x18e   : > { %v2128_v3 = vadd.f32 %v2094_v5, %v1969_v19  ;;  %v1834_v25 = vadd.f32 %v1804_v17, %v4086_v32 }
 0x190   : > { %v2270_v63 = vadd.f32 %v2236_v60, %v2128_v3 }
 0x192   : > { %v2317_v16 = vadd.f32 %v2316_v22, %v2270_v63  ;;  %v2340_v54 = vmul.f32 %v2270_v63, %v2270_v63 }
 0x193   : > { %v1940_v13 = vpop.f32.mrf.mxu2 }
 0x194   : > { %v2355_v0 = vadd.f32 %v2354_v9, %v2340_v54  ;;  %v2238_v35 = vpop.f32.mrf.mxu0  ;;  %v1971_v50 = vadd.f32 %v1940_v13, %v1833_v21 }
 0x195   : > { %v2096_v41 = vpop.f32.mrf.mxu3  ;;  %v1807_v39 = vpop.f32.mrf.mxu1 }
 0x196   : > { %v2129_v42 = vadd.f32 %v2096_v41, %v1970_v11  ;;  %v1835_v14 = vadd.f32 %v1807_v39, %v4094_v46 }
 0x198   : > { %v2271_v10 = vadd.f32 %v2238_v35, %v2129_v42 }
 0x19a   : > { %v3121_v53 = vpack.c.bf16 %v2271_v10, %v2270_v63  ;;  %v2318_v37 = vadd.f32 %v2317_v16, %v2271_v10  ;;  %v2341_v24 = vmul.f32 %v2271_v10, %v2271_v10 }
 0x19b   : > { %v1942_v30 = vpop.f32.mrf.mxu2 }
 0x19c   : > { %3149 = vst [vmem:[%s4158_s20 + $0x10] sm:$0xff] %v3121_v53   ;;  %v2356_v49 = vadd.f32 %v2355_v0, %v2341_v24  ;;  %v2241_v47 = vpop.f32.mrf.mxu0  ;;  %v1972_v26 = vadd.f32 %v1942_v30, %v1834_v25 }
 0x19d   : > { %v2099_v52 = vpop.f32.mrf.mxu3  ;;  %v1809_v6 = vpop.f32.mrf.mxu1 }
 0x19e   : > { %v2130_v38 = vadd.f32 %v2099_v52, %v1971_v50  ;;  %v1836_v62 = vadd.f32 %v1809_v6, %v4107_v44 }
 0x1a0   : > { %v2272_v40 = vadd.f32 %v2241_v47, %v2130_v38 }
 0x1a2   : > { %v2319_v43 = vadd.f32 %v2318_v37, %v2272_v40  ;;  %v2342_v51 = vmul.f32 %v2272_v40, %v2272_v40 }
 0x1a3   : > { %v1945_v28 = vpop.f32.mrf.mxu2 }
 0x1a4   : > { %v2357_v34 = vadd.f32 %v2356_v49, %v2342_v51  ;;  %v2243_v29 = vpop.f32.mrf.mxu0  ;;  %v1973_v58 = vadd.f32 %v1945_v28, %v1835_v14 }
 0x1a5   : > { %v2101_v45 = vpop.f32.mrf.mxu3  ;;  %v1812_v23 = vpop.f32.mrf.mxu1 }
 0x1a6   : > { %v2131_v33 = vadd.f32 %v2101_v45, %v1972_v26  ;;  %v1837_v63 = vadd.f32 %v1812_v23, %v4122_v15 }
 0x1a8   : > { %v2273_v8 = vadd.f32 %v2243_v29, %v2131_v33 }
 0x1aa   : > { %v3126_v2 = vpack.c.bf16 %v2273_v8, %v2272_v40  ;;  %v2320_v48 = vadd.f32 %v2319_v43, %v2273_v8  ;;  %v2343_v57 = vmul.f32 %v2273_v8, %v2273_v8 }
 0x1ab   : > { %v1947_v27 = vpop.f32.mrf.mxu2 }
 0x1ac   : > { %3150 = vst [vmem:[%s4158_s20 + $0x18] sm:$0xff] %v3126_v2   ;;  %v2358_v32 = vadd.f32 %v2357_v34, %v2343_v57  ;;  %v2246_v55 = vpop.f32.mrf.mxu0  ;;  %v1974_v19 = vadd.f32 %v1947_v27, %v1836_v62 }
 0x1ad   : > { %v2104_v18 = vpop.f32.mrf.mxu3  ;;  %v1814_v9 = vpop.f32.mrf.mxu1 }
 0x1ae   : > { %v2132_v4 = vadd.f32 %v2104_v18, %v1973_v58  ;;  %v1838_v10 = vadd.f32 %v1814_v9, %v4127_v59 }
 0x1b0   : > { %v2274_v7 = vadd.f32 %v2246_v55, %v2132_v4 }
 0x1b2   : > { %v2321_v22 = vadd.f32 %v2320_v48, %v2274_v7  ;;  %v2344_v61 = vmul.f32 %v2274_v7, %v2274_v7 }
 0x1b3   : > { %v1950_v56 = vpop.f32.mrf.mxu2 }
 0x1b4   : > { %v2359_v46 = vadd.f32 %v2358_v32, %v2344_v61  ;;  %v2248_v60 = vpop.f32.mrf.mxu0  ;;  %v1975_v11 = vadd.f32 %v1950_v56, %v1837_v63 }
 0x1b5   : > { %v2106_v5 = vpop.f32.mrf.mxu3  ;;  %v1817_v42 = vpop.f32.mrf.mxu1 }
 0x1b6   : > { %v2133_v3 = vadd.f32 %v2106_v5, %v1974_v19  ;;  %v1839_v52 = vadd.f32 %v1817_v42, %v4136_v36 }
 0x1b8   : > { %v2275_v17 = vadd.f32 %v2248_v60, %v2133_v3 }
 0x1ba   : > { %v3131_v1 = vpack.c.bf16 %v2275_v17, %v2274_v7  ;;  %v2322_v16 = vadd.f32 %v2321_v22, %v2275_v17  ;;  %v2345_v54 = vmul.f32 %v2275_v17, %v2275_v17 }
 0x1bb   : > { %v1952_v13 = vpop.f32.mrf.mxu2 }
 0x1bc   : > { %3151 = vst [vmem:[%s4158_s20 + $0x20] sm:$0xff] %v3131_v1   ;;  %v2360_v44 = vadd.f32 %v2359_v46, %v2345_v54  ;;  %v2251_v0 = vpop.f32.mrf.mxu0  ;;  %v1976_v37 = vadd.f32 %v1952_v13, %v1838_v10 }
 0x1bd   : > { %v2109_v35 = vpop.f32.mrf.mxu3  ;;  %v1819_v38 = vpop.f32.mrf.mxu1 }
 0x1be   : > { %v2134_v41 = vadd.f32 %v2109_v35, %v1975_v11  ;;  %v1840_v45 = vadd.f32 %v1819_v38, %v4144_v20 }
 0x1c0   : > { %v2276_v39 = vadd.f32 %v2251_v0, %v2134_v41 }
 0x1c2   : > { %v2323_v21 = vadd.f32 %v2322_v16, %v2276_v39  ;;  %v2346_v53 = vmul.f32 %v2276_v39, %v2276_v39 }
 0x1c3   : > { %v1955_v24 = vpop.f32.mrf.mxu2 }
 0x1c4   : > { %v2361_v15 = vadd.f32 %v2360_v44, %v2346_v53  ;;  %v2253_v50 = vpop.f32.mrf.mxu0  ;;  %v1977_v43 = vadd.f32 %v1955_v24, %v1839_v52 }
 0x1c5   : > { %v2111_v30 = vpop.f32.mrf.mxu3  ;;  %v1822_v2 = vpop.f32.mrf.mxu1 }
 0x1c6   : > { %v2135_v49 = vadd.f32 %v2111_v30, %v1976_v37  ;;  %v1841_v32 = vadd.f32 %v1822_v2, %v4147_v12 }
 0x1c8   : > { %v2277_v47 = vadd.f32 %v2253_v50, %v2135_v49 }
 0x1ca   : > { %v3136_v40 = vpack.c.bf16 %v2277_v47, %v2276_v39  ;;  %v2324_v25 = vadd.f32 %v2323_v21, %v2277_v47  ;;  %v2347_v6 = vmul.f32 %v2277_v47, %v2277_v47 }
 0x1cb   : > { %v1957_v51 = vpop.f32.mrf.mxu2 }
 0x1cc   : > { %3152 = vst [vmem:[%s4158_s20 + $0x28] sm:$0xff] %v3136_v40   ;;  %v2362_v59 = vadd.f32 %v2361_v15, %v2347_v6  ;;  %v2256_v26 = vpop.f32.mrf.mxu0  ;;  %v1978_v14 = vadd.f32 %v1957_v51, %v1840_v45 }
 0x1cd   : > { %v2114_v28 = vpop.f32.mrf.mxu3  ;;  %v1824_v20 = vpop.f32.mrf.mxu1 }
 0x1ce   : > { %v2136_v34 = vadd.f32 %v2114_v28, %v1977_v43  ;;  %v1842_v9 = vadd.f32 %v1824_v20, %v4149_v31 }
 0x1d0   : > { %v2278_v29 = vadd.f32 %v2256_v26, %v2136_v34 }
 0x1d2   : > { %v2325_v33 = vadd.f32 %v2324_v25, %v2278_v29  ;;  %v2348_v8 = vmul.f32 %v2278_v29, %v2278_v29 }
 0x1d3   : > { %v1960_v48 = vpop.f32.mrf.mxu2 }
 0x1d4   : > { %v2363_v36 = vadd.f32 %v2362_v59, %v2348_v8  ;;  %v2258_v57 = vpop.f32.mrf.mxu0  ;;  %v1979_v7 = vadd.f32 %v1960_v48, %v1841_v32 }
 0x1d5   : > { %v2116_v58 = vpop.f32.mrf.mxu3 }
 0x1d6   : > { %v2137_v23 = vadd.f32 %v2116_v58, %v1978_v14 }
 0x1d8   : > { %v2279_v27 = vadd.f32 %v2258_v57, %v2137_v23 }
 0x1da   : > { %v3141_v55 = vpack.c.bf16 %v2279_v27, %v2278_v29  ;;  %v2326_v18 = vadd.f32 %v2325_v33, %v2279_v27  ;;  %v2349_v4 = vmul.f32 %v2279_v27, %v2279_v27 }
 0x1db   : > { %v1962_v56 = vpop.f32.mrf.mxu2 }
 0x1dc   : > { %3153 = vst [vmem:[%s4158_s20 + $0x30] sm:$0xff] %v3141_v55   ;;  %v2364_v62 = vadd.f32 %v2363_v36, %v2349_v4  ;;  %v2261_v22 = vpop.f32.mrf.mxu0  ;;  %v1980_v5 = vadd.f32 %v1962_v56, %v1842_v9 }
 0x1dd   : > { %v2119_v61 = vpop.f32.mrf.mxu3 }
 0x1de   : > { %v2138_v19 = vadd.f32 %v2119_v61, %v1979_v7 }
 0x1e0   : > { %v2280_v46 = vadd.f32 %v2261_v22, %v2138_v19 }
 0x1e2   : > { %v2327_v60 = vadd.f32 %v2326_v18, %v2280_v46  ;;  %v2350_v12 = vmul.f32 %v2280_v46, %v2280_v46 }
 0x1e4   : > { %v2365_v3 = vadd.f32 %v2364_v62, %v2350_v12  ;;  %v2263_v1 = vpop.f32.mrf.mxu0 }
 0x1e5   : > { %v2121_v17 = vpop.f32.mrf.mxu3 }
 0x1e6   : > { %v2139_v63 = vadd.f32 %v2121_v17, %v1980_v5 }
 0x1e8   : > { %v2281_v16 = vadd.f32 %v2263_v1, %v2139_v63 }
 0x1ea   : > { %v3146_v54 = vpack.c.bf16 %v2281_v16, %v2280_v46  ;;  %v2328_v11 = vadd.f32 %v2327_v60, %v2281_v16  ;;  %v2351_v13 = vmul.f32 %v2281_v16, %v2281_v16 }
 0x1ec   : > { %3154 = vst [vmem:[%s4158_s20 + $0x38] sm:$0xff] %v3146_v54   ;;  %v2329_v44 = vrot.slane %v2328_v11, 4  ;;  %v2366_v0 = vadd.f32 %v2365_v3, %v2351_v13 }
 0x1ee   : > { %v2330_v35 = vadd.f32 %v2329_v44, %v2328_v11  ;;  %v2367_v41 = vrot.slane %v2366_v0, 4 }
 0x1f0   : > { %v2331_v31 = vrot.slane %v2330_v35, 2  ;;  %v2368_v42 = vadd.f32 %v2367_v41, %v2366_v0 }
 0x1f2   : > { %v2332_v39 = vadd.f32 %v2331_v31, %v2330_v35  ;;  %v2369_v10 = vrot.slane %v2368_v42, 2 }
 0x1f4   : > { %v2333_v21 = vrot.slane %v2332_v39, 1  ;;  %v2370_v53 = vadd.f32 %v2369_v10, %v2368_v42 }
 0x1f6   : > { %v2334_v37 = vadd.f32 %v2333_v21, %v2332_v39  ;;  %v2371_v24 = vrot.slane %v2370_v53, 1 }
 0x1f8   : > { %2335 = vst [vmem:[%s467_s22] sm:$0x1] %v2334_v37  ;;  %v2372_v15 = vadd.f32 %v2371_v24, %v2370_v53 }
 0x1fa   : > { %2373 = vst [vmem:[%s467_s22 + $0x1] sm:$0x1] %v2372_v15 }
 0x1fb PF: > { %s18_s28 = sadd.s32 1, %s3261_s28   ;;  %s4216_s24 = smov %s3253_s26 }
 0x1fc   : > { %p15_p12 = scmp.ge.s32.totalorder %s18_s28, 6   ;;  %s4217_s25 = smov %s3257_s27 }
 0x1fd   : > { %s4218_s26 = smov %s4221_s29  ;;  %s4219_s27 = smov %s4225_s30 }
 0x1fe   :  { %17 = sbr.rel (!%p15_p12) target bundleno = 3 (0x3), region = 100 }

// kernel: _basic_block_nhwc_impl.4
= control target key start
LH: loop header
LB: loop body
LE: loop exit
PB: predicated region body
PF: predicated region fallthrough
CT: control target
= control target key end

     0   :  { %s3390_s24 = smov 0   ;;  %s3392_s25 = smov 0   ;;  %s4275_s0 = inlined_call_operand.vmem [shape: bf16[2,16,16,128], index: 0, kind: input, shape index: {}, may-alias: {0,1,2}]   ;;  %s4276_s1 = inlined_call_operand.vmem [shape: bf16[2,16,16,128], index: 1, kind: input, shape index: {}, may-alias: {0,1,2}]   ;;  %s4277_s2 = inlined_call_operand.vmem [shape: bf16[2,16,16,128], index: 2, kind: input, shape index: {}, may-alias: {0,1,2}]   ;;  %s4278_s3 = inlined_call_operand.vmem [shape: bf16[9,128,128], index: 3, kind: input, shape index: {}]   ;;  %s4279_s4 = inlined_call_operand.vmem [shape: f32[1,128], index: 4, kind: input, shape index: {}]   ;;  %s4280_s5 = inlined_call_operand.vmem [shape: f32[1,128], index: 5, kind: input, shape index: {}]   ;;  %s4281_s6 = inlined_call_operand.vmem [shape: bf16[2,16,16,128], index: 6, kind: output, shape index: {0}]   ;;  %s4282_s7 = inlined_call_operand.vmem [shape: f32[2,2,2,128], index: 7, kind: output, shape index: {1}]  }
   0x1   :  { %s3394_s26 = smov 0   ;;  %s3396_s27 = smov 0  }
   0x2   :  { %s3398_s28 = smov 0  }
   0x3 LB: > { %s27_s29 = sadd.s32 1, %s3340_s26  ;;  %s30_s30 = sadd.s32 1, %s3344_s27  ;;  %s3348_s28 = sphi %s3398_s28, %s18_s28   ;;  %s3344_s27 = sphi %s3396_s27, %s4291_s27   ;;  %s3340_s26 = sphi %s3394_s26, %s4290_s26   ;;  %s3336_s25 = sphi %s3392_s25, %s4289_s25   ;;  %s3332_s24 = sphi %s3390_s24, %s4288_s24  }
   0x4   : > { %p28_p0 = scmp.ge.s32.totalorder %s27_s29, 2  ;;  %p2612_p1 = scmp.ge.s32.totalorder %s3348_s28, 1 }
   0x5   : > { %p328_p2 = scmp.lt.s32.totalorder %s3348_s28, 5 }
   0x6   : > { %s4293_s29 = smov (%p28_p0, %s27_s29), 0  ;;  %s4295_s30 = smov (!%p28_p0, %s30_s30), %s3344_s27 }
   0x7   : > { %p329_p3 = pnand %p2612_p1, %p328_p2  ;;  %p32_p4 = scmp.ge.s32.totalorder %s4295_s30, 2 }
   0x8   : > { %s3426_s10 = sshll.u32 (!%p329_p3), %s3332_s24, 3  ;;  %p405_p5 = scmp.lt.s32.totalorder (!%p329_p3), %s3336_s25, 1 }
   0x9   : > { %s4297_s30 = smov (%p32_p4, %s4295_s30), 0  ;;  %332 = sbr.rel (%p329_p3) target bundleno = 515 (0x203), region = 44 }
   0xa   : > { %p407_p6 = scmp.lt.s32.totalorder (!%p329_p3), %s3426_s10, 15  ;;  %s3439_s15 = sadd.s32 (!%p329_p3), 4294967295, %s3426_s10 }
   0xb   : > { %p417_p7 = scmp.gt.s32.totalorder (!%p329_p3), %s3439_s15, 0  ;;  %p2619_p8 = scmp.lt.s32.totalorder (!%p329_p3), %s3439_s15, 15 }
   0xc   : > { %p566_p9 = scmp.gt.s32.totalorder (!%p329_p3), %s3332_s24, 0  ;;  %p462_p11 = scmp.lt.s32.totalorder (!%p329_p3), %s3332_s24, 1 }
   0xe   : > { %v3091_v0 = vld [vmem:[%s4278_s3 + $0x78] sm:$0xff]  ;;  %v3090_v1 = vld [vmem:[%s4278_s3 + $0x70] sm:$0xff]  ;;  %s4299_s25 = smov (!%p405_p5, %s3336_s25), 1  ;;  %v3089_v2 = vld [vmem:[%s4278_s3 + $0x68] sm:$0xff]  ;;  %vm608_vm0 = vcmask 1040384   ;;  %vm1223_vm4 = vcmask 1042432  }
   0xf   : > { %3242 = vmatpush.bf16.msra.mxu1 %v3091_v0  ;;  %3243 = vmatpush.bf16.msra.mxu2 %v3091_v0  ;;  %s408_s13 = scalar_select %p407_p6, %s3426_s10, 15  ;;  %v3461_v3 = vld [vmem:[%s4279_s4] ss:$0 sm:$0xff]  ;;  %v3087_v21 = vld [vmem:[%s4278_s3 + $0x58] sm:$0xff]  ;;  %vm729_vm1 = vsmask.f32 3328 }
  0x10   : > { %3244 = vmatpush.bf16.msra.mxu3 %v3091_v0  ;;  %1021 = vmatpush.bf16.msra.mxu0 %v3091_v0  ;;  %s3436_s14 = sshll.u32 %s4299_s25, 5  ;;  %v3088_v7 = vld [vmem:[%s4278_s3 + $0x60] sm:$0xff]  ;;  %vm730_vm2 = vsmask.f32 7440  ;;  %v3086_v39 = vld [vmem:[%s4278_s3 + $0x50] sm:$0xff]  ;;  %v3085_v56 = vld [vmem:[%s4278_s3 + $0x48] sm:$0xff] }
  0x11   : > { %s2614_s16 = sshll.u32 %s408_s13, 1  ;;  %v3475_v10 = vld [vmem:[%s4280_s5] ss:$0 sm:$0xff]  ;;  %vm3549_vm3 = vmor %vm729_vm1, %vm730_vm2  ;;  %vm1224_vm5 = vcmask 1046532   ;;  %s4307_s24 = smov (!%p462_p11, %s3332_s24), 1 }
  0x12   : > { %s3446_s19 = sadd.s32 %s3436_s14, %s2614_s16  ;;  %vm3821_vm6 = vmor %vm1223_vm4, %vm1224_vm5 }
  0x13   : > { %3245 = vmatpush.bf16.msra.mxu1 %v3090_v1  ;;  %3246 = vmatpush.bf16.msra.mxu2 %v3090_v1  ;;  %s2616_s20 = sshll.u32 %s3446_s19, 2  ;;  %s2638_s19 = sshll.u32 %s4299_s25, 1 }
  0x14   : > { %3247 = vmatpush.bf16.msra.mxu3 %v3090_v1  ;;  %1022 = vmatpush.bf16.msra.mxu0 %v3090_v1  ;;  %s3456_s23 = scalar_lea.vmem %s4275_s0, %s2616_s20 }
  0x15   : > { %v3228_v4 = vld [vmem:[%s3456_s23 + $0x8] sm:$0xff]   ;;  %v3230_v5 = vld [vmem:[%s3456_s23 + $0x18] sm:$0xff]   ;;  %s418_s11 = scalar_select %p417_p7, %s3439_s15, 0  ;;  %v3500_v29 = vld [vmem:[%s3456_s23 + $0x10] sm:$0xff]  }
  0x16   : > { %v3232_v6 = vld [vmem:[%s3456_s23 + $0x28] sm:$0xff]   ;;  %v3154_v8 = vunpack.c.l.bf16 %v3228_v4  ;;  %v3155_v9 = vunpack.c.h.bf16 %v3228_v4  ;;  %v3162_v11 = vunpack.c.l.bf16 %v3230_v5  ;;  %v3163_v12 = vunpack.c.h.bf16 %v3230_v5  ;;  %s567_s18 = scalar_select %p566_p9, 1, 0 }
  0x17   : > { %3248 = vmatpush.bf16.msra.mxu1 %v3089_v2  ;;  %3249 = vmatpush.bf16.msra.mxu2 %v3089_v2  ;;  %v3170_v13 = vunpack.c.l.bf16 %v3232_v6  ;;  %v3171_v14 = vunpack.c.h.bf16 %v3232_v6  ;;  %s4301_s11 = smov (!%p2619_p8, %s418_s11), 15  ;;  %v3158_v33 = vunpack.c.l.bf16 %v3500_v29  ;;  %v3159_v38 = vunpack.c.h.bf16 %v3500_v29  ;;  %v3096_v29 = vld [vmem:[%s4278_s3 + $0xa0] sm:$0xff]  ;;  %s3075_s15 = sadd.s32 8, %s3426_s10 }
  0x18   : > { %3250 = vmatpush.bf16.msra.mxu3 %v3089_v2  ;;  %1023 = vmatpush.bf16.msra.mxu0 %v3089_v2  ;;  %v507_v15 = vmul.f32 %v3461_v3, %v3154_v8  ;;  %v508_v16 = vmul.f32 %v3461_v3, %v3155_v9  ;;  %v511_v17 = vmul.f32 %v3461_v3, %v3162_v11  ;;  %s568_s21 = scvt.s32.f32 %s567_s18  ;;  %s2624_s22 = sshll.u32 %s4301_s11, 1  ;;  %v3084_v11 = vld [vmem:[%s4278_s3 + $0x40] sm:$0xff] }
  0x19   : > { %v512_v18 = vmul.f32 %v3461_v3, %v3163_v12  ;;  %v515_v19 = vmul.f32 %v3461_v3, %v3170_v13  ;;  %v516_v20 = vmul.f32 %v3461_v3, %v3171_v14  ;;  %s425_s9 = sadd.s32 %s2624_s22, %s3436_s14  ;;  %p4122_p10 = scmp.lt.s32.totalorder %s3075_s15, 15 }
  0x1a   : > { %v526_v22 = vadd.f32 %v3475_v10, %v507_v15  ;;  %v527_v23 = vadd.f32 %v3475_v10, %v508_v16  ;;  %v530_v24 = vadd.f32 %v3475_v10, %v511_v17  ;;  %s2626_s11 = sshll.u32 %s425_s9, 2  ;;  %v3497_v28 = vstv %s568_s21 }
  0x1b   : > { %3251 = vmatpush.bf16.msra.mxu1 %v3088_v7  ;;  %3252 = vmatpush.bf16.msra.mxu2 %v3088_v7  ;;  %v531_v25 = vadd.f32 %v3475_v10, %v512_v18  ;;  %v534_v26 = vadd.f32 %v3475_v10, %v515_v19  ;;  %v535_v27 = vadd.f32 %v3475_v10, %v516_v20  ;;  %s427_s16 = scalar_lea.vmem %s4276_s1, %s2626_s11  ;;  %s4303_s15 = smov (!%p4122_p10, %s3075_s15), 15 }
  0x1c   : > { %3253 = vmatpush.bf16.msra.mxu3 %v3088_v7  ;;  %1024 = vmatpush.bf16.msra.mxu0 %v3088_v7  ;;  %v542_v30 = vmax.f32 %v526_v22, 0.0  ;;  %v543_v31 = vmax.f32 %v527_v23, 0.0  ;;  %v546_v32 = vmax.f32 %v530_v24, 0.0  ;;  %v3506_v37 = vld [vmem:[%s427_s16] sm:$0xff]   ;;  %s4305_s15 = smov (!%p4122_p10, %s4303_s15), 15 }
  0x1d   : > { %v547_v34 = vmax.f32 %v531_v25, 0.0  ;;  %v550_v35 = vmax.f32 %v534_v26, 0.0  ;;  %v551_v36 = vmax.f32 %v535_v27, 0.0  ;;  %v3182_v43 = vunpack.c.l.bf16 %v3506_v37  ;;  %v3083_v26 = vld [vmem:[%s4278_s3 + $0x38] sm:$0xff]  ;;  %s2631_s10 = sshll.u32 %s4305_s15, 1 }
  0x1e   : > { %v615_v40 = vrot.slane %v542_v30, 7  ;;  %v616_v41 = vrot.slane %v543_v31, 7  ;;  %v621_v42 = vrot.slane %v546_v32, 7  ;;  %v3183_v47 = vunpack.c.h.bf16 %v3506_v37  ;;  %v3107_v27 = vld [vmem:[%s4278_s3 + $0xf8] sm:$0xff]  ;;  %v3567_v30 = vld [vmem:[%s3456_s23 + $0x20] sm:$0xff]   ;;  %s442_s9 = sadd.s32 %s2631_s10, %s3436_s14 }
  0x1f   : > { %3254 = vmatpush.bf16.msra.mxu1 %v3087_v21  ;;  %3255 = vmatpush.bf16.msra.mxu2 %v3087_v21  ;;  %v622_v44 = vrot.slane %v547_v34, 7  ;;  %v627_v45 = vrot.slane %v550_v35, 7  ;;  %v628_v46 = vrot.slane %v551_v36, 7  ;;  %v510_v37 = vmul.f32 %v3461_v3, %v3159_v38  ;;  %s2633_s11 = sshll.u32 %s442_s9, 2 }
  0x20   : > { %3256 = vmatpush.bf16.msra.mxu3 %v3087_v21  ;;  %1025 = vmatpush.bf16.msra.mxu0 %v3087_v21  ;;  %v617_v48 = vsel %vm608_vm0, %v615_v40, %v616_v41  ;;  %v671_v49 = vsel %vm608_vm0, 0.0, %v615_v40  ;;  %v681_v50 = vsel %vm608_vm0, %v616_v41, 0.0  ;;  %v673_v51 = vsel %vm608_vm0, 0.0, %v621_v42  ;;  %v3099_v21 = vld [vmem:[%s4278_s3 + $0xb8] sm:$0xff]  ;;  %s444_s16 = scalar_lea.vmem %s4277_s2, %s2633_s11 }
  0x21   : > { %v3518_v52 = vpack.c.bf16 %v671_v49, %v671_v49  ;;  %v3520_v53 = vpack.c.bf16 %v617_v48, %v617_v48  ;;  %v3522_v54 = vpack.c.bf16 %v681_v50, %v681_v50  ;;  %v623_v55 = vsel %vm608_vm0, %v621_v42, %v622_v44  ;;  %v3115_v42 = vld [vmem:[%s4278_s3 + $0x138] sm:$0xff]  ;;  %v3098_v48 = vld [vmem:[%s4278_s3 + $0xb0] sm:$0xff]  ;;  %s583_s14 = scalar_select %p462_p11, 1, 0 }
  0x22   : > { %v683_v57 = vsel %vm608_vm0, %v622_v44, 0.0  ;;  %v3529_v58 = vpack.c.bf16 %v673_v51, %v673_v51  ;;  %v3531_v59 = vpack.c.bf16 %v623_v55, %v623_v55  ;;  %v629_v60 = vsel %vm608_vm0, %v627_v45, %v628_v46 }
  0x23   : > { %3257 = vmatpush.bf16.msra.mxu1 %v3086_v39  ;;  %3258 = vmatpush.bf16.msra.mxu2 %v3086_v39  ;;  %v781_v61 = vshrl.u32 %v3518_v52, 16  ;;  %v784_v62 = vshll.u32 %v3518_v52, 16  ;;  %v790_v63 = vshll.u32 %v3520_v53, 16  ;;  %v794_v0 = vshrl.u32 %v3520_v53, 16  ;;  %s584_s17 = scvt.s32.f32 %s583_s14 }
  0x24   : > { %3259 = vmatpush.bf16.msra.mxu3 %v3086_v39  ;;  %1026 = vmatpush.bf16.msra.mxu0 %v3086_v39  ;;  %v800_v1 = vshll.u32 %v3522_v54, 16  ;;  %v3539_v2 = vpack.c.bf16 %v683_v57, %v683_v57  ;;  %v829_v4 = vshrl.u32 %v3529_v58, 16  ;;  %v832_v5 = vshll.u32 %v3529_v58, 16  ;;  %v3106_v57 = vld [vmem:[%s4278_s3 + $0xf0] sm:$0xff] }
  0x25   : > { %v783_v6 = vrot.slane %v781_v61, 4  ;;  %v786_v7 = vrot.slane %v784_v62, 5  ;;  %v792_v8 = vrot.slane %v790_v63, 5  ;;  %v796_v9 = vrot.slane %v794_v0, 4  ;;  %v3082_v0 = vld [vmem:[%s4278_s3 + $0x30] sm:$0xff] }
  0x26   : > { %v802_v12 = vrot.slane %v800_v1, 5  ;;  %v831_v13 = vrot.slane %v829_v4, 4  ;;  %v834_v14 = vrot.slane %v832_v5, 5  ;;  %v838_v15 = vshll.u32 %v3531_v59, 16 }
  0x27   : > { %3260 = vmatpush.bf16.msra.mxu1 %v3085_v56  ;;  %3261 = vmatpush.bf16.msra.mxu2 %v3085_v56  ;;  %v787_v17 = vor.u32 %v786_v7, %v783_v6  ;;  %v797_v18 = vor.u32 %v796_v9, %v792_v8  ;;  %v842_v19 = vshrl.u32 %v3531_v59, 16  ;;  %v848_v20 = vshll.u32 %v3539_v2, 16  ;;  %v3114_v7 = vld [vmem:[%s4278_s3 + $0x130] sm:$0xff] }
  0x28   : > { %3262 = vmatpush.bf16.msra.mxu3 %v3085_v56  ;;  %1027 = vmatpush.bf16.msra.mxu0 %v3085_v56  ;;  %v835_v22 = vor.u32 %v834_v14, %v831_v13  ;;  %v840_v23 = vrot.slane %v838_v15, 5  ;;  %v675_v24 = vsel %vm608_vm0, 0.0, %v627_v45  ;;  %v685_v25 = vsel %vm608_vm0, %v628_v46, 0.0  ;;  %v3097_v13 = vld [vmem:[%s4278_s3 + $0xa8] sm:$0xff] }
  0x29   : > { %v788_v31 = vrot.slane %v787_v17, 4  ;;  %v798_v32 = vrot.slane %v797_v18, 4  ;;  %v844_v34 = vrot.slane %v842_v19, 4  ;;  %v850_v35 = vrot.slane %v848_v20, 5  ;;  %v3105_v19 = vld [vmem:[%s4278_s3 + $0xe8] sm:$0xff] }
  0x2a   : > { %v836_v36 = vrot.slane %v835_v22, 4  ;;  %v3569_v39 = vpack.c.bf16 %v675_v24, %v675_v24  ;;  %v3571_v40 = vpack.c.bf16 %v629_v60, %v629_v60  ;;  %v3573_v41 = vpack.c.bf16 %v685_v25, %v685_v25  ;;  %v3113_v25 = vld [vmem:[%s4278_s3 + $0x128] sm:$0xff] }
  0x2b   : > { %3263 = vmatpush.bf16.msra.mxu1 %v3084_v11  ;;  %3264 = vmatpush.bf16.msra.mxu2 %v3084_v11  ;;  %v793_v44 = vsel %vm3549_vm3, %v788_v31, %v792_v8  ;;  %v803_v45 = vsel %vm3549_vm3, %v798_v32, %v802_v12  ;;  %v845_v46 = vor.u32 %v844_v34, %v840_v23  ;;  %v3166_v49 = vunpack.c.l.bf16 %v3567_v30 }
  0x2c   : > { %3265 = vmatpush.bf16.msra.mxu3 %v3084_v11  ;;  %v945_v50 = vunpack.c.l.b16 %v793_v44  ;;  %v946_v51 = vunpack.c.l.b16 %v803_v45  ;;  %v841_v55 = vsel %vm3549_vm3, %v836_v36, %v840_v23  ;;  %v877_v56 = vshrl.u32 %v3569_v39, 16  ;;  %1028 = vmatpush.bf16.msra.mxu0 %v3084_v11  ;;  %v3080_v45 = vld [vmem:[%s4278_s3 + $0x20] sm:$0xff] }
  0x2d   : > { %v846_v60 = vrot.slane %v845_v46, 4  ;;  %v949_v61 = vunpack.c.l.b16 %v841_v55  ;;  %v880_v62 = vshll.u32 %v3569_v39, 16  ;;  %v886_v63 = vshll.u32 %v3571_v40, 16 }
  0x2e   : > { %v3597_v1 = vpack.c.b16 %v946_v51, %v945_v50  ;;  %v879_v4 = vrot.slane %v877_v56, 4  ;;  %v890_v5 = vshrl.u32 %v3571_v40, 16  ;;  %v896_v6 = vshll.u32 %v3573_v41, 16  ;;  %v3654_v50 = vld [vmem:[%s3456_s23 + $0x30] sm:$0xff]  }
  0x2f   : > { %1379 = vmatpush.bf16.msrb.mxu2 %v3099_v21  ;;  %1166 = vmatpush.bf16.msrb.mxu1 %v3083_v26  ;;  %v851_v8 = vsel %vm3549_vm3, %v846_v60, %v850_v35  ;;  %v882_v9 = vrot.slane %v880_v62, 5  ;;  %v888_v11 = vrot.slane %v886_v63, 5  ;;  %v560_v12 = vmul.f32 %v3461_v3, %v3182_v43  ;;  %v3081_v21 = vld [vmem:[%s4278_s3 + $0x28] sm:$0xff] }
  0x30   : > { %1517 = vmatpush.bf16.msrb.mxu3 %v3107_v27  ;;  %1676 = vmatpush.bf16.msrb.mxu0 %v3115_v42  ;;  %v950_v14 = vunpack.c.l.b16 %v851_v8  ;;  %v892_v15 = vrot.slane %v890_v5, 4  ;;  %v898_v17 = vrot.slane %v896_v6, 5  ;;  %v561_v18 = vmul.f32 %v3461_v3, %v3183_v47 }
  0x31   : > { %1039 = vmatmul.bf16.vlgmr.msra.gmra.mxu1 %v3597_v1  ;;  %v883_v20 = vor.u32 %v882_v9, %v879_v4  ;;  %v562_v43 = vadd.f32 %v3475_v10, %v560_v12  ;;  %v509_v22 = vmul.f32 %v3461_v3, %v3158_v33  ;;  %v3167_v26 = vunpack.c.h.bf16 %v3567_v30  ;;  %v3104_v30 = vld [vmem:[%s4278_s3 + $0xe0] sm:$0xff] }
  0x32   : > { %v3629_v47 = vpack.c.b16 %v950_v14, %v949_v61  ;;  %v893_v23 = vor.u32 %v892_v15, %v888_v11  ;;  %v563_v24 = vadd.f32 %v3475_v10, %v561_v18  ;;  %v529_v38 = vadd.f32 %v3475_v10, %v510_v37 }
  0x33   : > { %1380 = vmatpush.bf16.msrb.mxu2 %v3098_v48  ;;  %1167 = vmatpush.bf16.msrb.mxu1 %v3082_v0  ;;  %v884_v27 = vrot.slane %v883_v20, 4  ;;  %v564_v31 = vmax.f32 %v562_v43, 0.0  ;;  %v528_v33 = vadd.f32 %v3475_v10, %v509_v22  ;;  %v513_v35 = vmul.f32 %v3461_v3, %v3166_v49 }
  0x34   : > { %1518 = vmatpush.bf16.msrb.mxu3 %v3106_v57  ;;  %1677 = vmatpush.bf16.msrb.mxu0 %v3114_v7  ;;  %v894_v32 = vrot.slane %v893_v23, 4  ;;  %v565_v34 = vmax.f32 %v563_v24, 0.0  ;;  %v514_v36 = vmul.f32 %v3461_v3, %v3167_v26  ;;  %v545_v48 = vmax.f32 %v529_v38, 0.0 }
  0x35   : > { %1049 = vmatmul.bf16.vlgmr.msra.gmra.mxu2 %v3629_v47  ;;  %v889_v42 = vsel %vm3549_vm3, %v884_v27, %v888_v11  ;;  %v570_v44 = vmul.f32 %v3497_v28, %v564_v31  ;;  %v544_v46 = vmax.f32 %v528_v33, 0.0  ;;  %v532_v56 = vadd.f32 %v3475_v10, %v513_v35 }
  0x36   : > { %v899_v51 = vsel %vm3549_vm3, %v894_v32, %v898_v17  ;;  %v953_v49 = vunpack.c.l.b16 %v889_v42  ;;  %v571_v55 = vmul.f32 %v3497_v28, %v565_v34  ;;  %v619_v62 = vrot.slane %v545_v48, 7  ;;  %v3095_v48 = vld [vmem:[%s4278_s3 + $0x98] sm:$0xff] }
  0x37   : > { %1381 = vmatpush.bf16.msrb.mxu2 %v3097_v13  ;;  %1168 = vmatpush.bf16.msrb.mxu1 %v3081_v21  ;;  %v954_v57 = vunpack.c.l.b16 %v899_v51  ;;  %v609_v60 = vrot.slane %v570_v44, 7  ;;  %v618_v61 = vrot.slane %v544_v46, 7  ;;  %v533_v0 = vadd.f32 %v3475_v10, %v514_v36  ;;  %v3079_v51 = vld [vmem:[%s4278_s3 + $0x18] sm:$0xff] }
  0x38   : > { %1519 = vmatpush.bf16.msrb.mxu3 %v3105_v19  ;;  %1678 = vmatpush.bf16.msrb.mxu0 %v3113_v25  ;;  %v610_v63 = vrot.slane %v571_v55, 7  ;;  %v548_v4 = vmax.f32 %v532_v56, 0.0  ;;  %v3174_v5 = vunpack.c.l.bf16 %v3654_v50  ;;  %v682_v13 = vsel %vm608_vm0, %v619_v62, 0.0 }
  0x39   : > { %v3662_v6 = vpack.c.b16 %v954_v57, %v953_v49  ;;  %v669_v7 = vsel %vm608_vm0, 0.0, %v609_v60  ;;  %v620_v28 = vsel %vm608_vm0, %v618_v61, %v619_v62  ;;  %v672_v8 = vsel %vm608_vm0, 0.0, %v618_v61  ;;  %v3103_v49 = vld [vmem:[%s4278_s3 + $0xd8] sm:$0xff]  ;;  %v3112_v61 = vld [vmem:[%s4278_s3 + $0x120] sm:$0xff] }
  0x3a   : > { %v611_v9 = vsel %vm608_vm0, %v609_v60, %v610_v63  ;;  %v679_v11 = vsel %vm608_vm0, %v610_v63, 0.0  ;;  %v3669_v12 = vpack.c.bf16 %v669_v7, %v669_v7  ;;  %v3677_v17 = vpack.c.bf16 %v672_v8, %v672_v8  ;;  %v3094_v7 = vld [vmem:[%s4278_s3 + $0x90] sm:$0xff] }
  0x3b   : > { %1382 = vmatpush.bf16.msrb.mxu2 %v3096_v29  ;;  %1169 = vmatpush.bf16.msrb.mxu1 %v3080_v45  ;;  %v3673_v14 = vpack.c.bf16 %v611_v9, %v611_v9  ;;  %v3675_v15 = vpack.c.bf16 %v679_v11, %v679_v11  ;;  %v3679_v18 = vpack.c.bf16 %v620_v28, %v620_v28  ;;  %v549_v21 = vmax.f32 %v533_v0, 0.0 }
  0x3c   : > { %1520 = vmatpush.bf16.msrb.mxu3 %v3104_v30  ;;  %v733_v19 = vshrl.u32 %v3669_v12, 16  ;;  %v736_v20 = vshll.u32 %v3669_v12, 16  ;;  %v3683_v43 = vpack.c.bf16 %v682_v13, %v682_v13  ;;  %v805_v24 = vshrl.u32 %v3677_v17, 16  ;;  %1679 = vmatpush.bf16.msrb.mxu0 %v3112_v61 }
  0x3d   : > { %1059 = vmatmul.bf16.vlgmr.msra.gmra.mxu3 %v3662_v6  ;;  %v742_v22 = vshll.u32 %v3673_v14, 16  ;;  %v746_v37 = vshrl.u32 %v3673_v14, 16  ;;  %v752_v23 = vshll.u32 %v3675_v15, 16  ;;  %v808_v27 = vshll.u32 %v3677_v17, 16 }
  0x3e   : > { %v735_v25 = vrot.slane %v733_v19, 4  ;;  %v738_v26 = vrot.slane %v736_v20, 5  ;;  %v814_v31 = vshll.u32 %v3679_v18, 16  ;;  %v807_v32 = vrot.slane %v805_v24, 4 }
  0x3f   : > { %v744_v29 = vrot.slane %v742_v22, 5  ;;  %v748_v33 = vrot.slane %v746_v37, 4  ;;  %v754_v38 = vrot.slane %v752_v23, 5  ;;  %v810_v30 = vrot.slane %v808_v27, 5  ;;  %1383 = vmatpush.bf16.msrb.mxu2 %v3095_v48  ;;  %1170 = vmatpush.bf16.msrb.mxu1 %v3079_v51  ;;  %v3078_v22 = vld [vmem:[%s4278_s3 + $0x10] sm:$0xff]  ;;  %v3111_v27 = vld [vmem:[%s4278_s3 + $0x118] sm:$0xff] }
  0x40   : > { %v739_v34 = vor.u32 %v738_v26, %v735_v25  ;;  %v816_v35 = vrot.slane %v814_v31, 5  ;;  %v818_v36 = vshrl.u32 %v3679_v18, 16  ;;  %v824_v44 = vshll.u32 %v3683_v43, 16  ;;  %1521 = vmatpush.bf16.msrb.mxu3 %v3103_v49  ;;  %v3102_v37 = vld [vmem:[%s4278_s3 + $0xd0] sm:$0xff]  ;;  %1680 = vmatpush.bf16.msrb.mxu0 %v3111_v27 }
  0x41   : > { %v749_v42 = vor.u32 %v748_v33, %v744_v29  ;;  %v624_v45 = vrot.slane %v548_v4, 7  ;;  %v625_v46 = vrot.slane %v549_v21, 7  ;;  %v811_v56 = vor.u32 %v810_v30, %v807_v32  ;;  %v3093_v32 = vld [vmem:[%s4278_s3 + $0x88] sm:$0xff] }
  0x42   : > { %v740_v55 = vrot.slane %v739_v34, 4  ;;  %v820_v57 = vrot.slane %v818_v36, 4  ;;  %v3175_v60 = vunpack.c.h.bf16 %v3654_v50  ;;  %v826_v63 = vrot.slane %v824_v44, 5  ;;  %v3077_v34 = vld [vmem:[%s4278_s3 + $0x8] sm:$0xff]  ;;  %v3149_v44 = vld [vmem:[%s3456_s23] sm:$0xff]  }
  0x43   : > { %v750_v62 = vrot.slane %v749_v42, 4  ;;  %v626_v0 = vsel %vm608_vm0, %v624_v45, %v625_v46  ;;  %v674_v4 = vsel %vm608_vm0, 0.0, %v624_v45  ;;  %v812_v8 = vrot.slane %v811_v56, 4  ;;  %1384 = vmatpush.bf16.msrb.mxu2 %v3094_v7  ;;  %1171 = vmatpush.bf16.msrb.mxu1 %v3078_v22  ;;  %v3101_v45 = vld [vmem:[%s4278_s3 + $0xc8] sm:$0xff] }
  0x44   : > { %v745_v28 = vsel %vm3549_vm3, %v740_v55, %v744_v29  ;;  %v821_v9 = vor.u32 %v820_v57, %v816_v35  ;;  %v684_v11 = vsel %vm608_vm0, %v625_v46, 0.0  ;;  %v3716_v20 = vpack.c.bf16 %v674_v4, %v674_v4  ;;  %1522 = vmatpush.bf16.msrb.mxu3 %v3102_v37  ;;  %v3110_v46 = vld [vmem:[%s4278_s3 + $0x110] sm:$0xff] }
  0x45   : > { %v755_v13 = vsel %vm3549_vm3, %v750_v62, %v754_v38  ;;  %v941_v19 = vunpack.c.l.b16 %v745_v28  ;;  %v3718_v21 = vpack.c.bf16 %v626_v0, %v626_v0  ;;  %v817_v24 = vsel %vm3549_vm3, %v812_v8, %v816_v35  ;;  %v3092_v28 = vld [vmem:[%s4278_s3 + $0x80] sm:$0xff]  ;;  %1681 = vmatpush.bf16.msrb.mxu0 %v3110_v46 }
  0x46   : > { %v942_v23 = vunpack.c.l.b16 %v755_v13  ;;  %v822_v25 = vrot.slane %v821_v9, 4  ;;  %v3728_v26 = vpack.c.bf16 %v684_v11, %v684_v11  ;;  %v947_v31 = vunpack.c.l.b16 %v817_v24  ;;  %v3076_v8 = vld [vmem:[%s4278_s3] sm:$0xff]  ;;  %v3109_v11 = vld [vmem:[%s4278_s3 + $0x108] sm:$0xff] }
  0x47   : > { %v853_v29 = vshrl.u32 %v3716_v20, 16  ;;  %v856_v33 = vshll.u32 %v3716_v20, 16  ;;  %v862_v38 = vshll.u32 %v3718_v21, 16  ;;  %v866_v36 = vshrl.u32 %v3718_v21, 16  ;;  %1385 = vmatpush.bf16.msrb.mxu2 %v3093_v32  ;;  %1172 = vmatpush.bf16.msrb.mxu1 %v3077_v34  ;;  %v3100_v9 = vld [vmem:[%s4278_s3 + $0xc0] sm:$0xff] }
  0x48   : > { %v957_v30 = vpack.c.b16 %v942_v23, %v941_v19  ;;  %v827_v35 = vsel %vm3549_vm3, %v822_v25, %v826_v63  ;;  %v872_v42 = vshll.u32 %v3728_v26, 16  ;;  %v517_v61 = vmul.f32 %v3461_v3, %v3174_v5  ;;  %1523 = vmatpush.bf16.msrb.mxu3 %v3101_v45 }
  0x49   : > { %v948_v48 = vunpack.c.l.b16 %v827_v35  ;;  %v855_v51 = vrot.slane %v853_v29, 4  ;;  %v858_v49 = vrot.slane %v856_v33, 5  ;;  %v864_v55 = vrot.slane %v862_v38, 5  ;;  %1682 = vmatpush.bf16.msrb.mxu0 %v3109_v11 }
  0x4a   : > { %1029 = vmatmul.bf16.vlgmr.msra.gmra.mxu0 %v957_v30  ;;  %v868_v56 = vrot.slane %v866_v36, 4  ;;  %v874_v57 = vrot.slane %v872_v42, 5  ;;  %v518_v62 = vmul.f32 %v3461_v3, %v3175_v60  ;;  %v3150_v4 = vunpack.c.l.bf16 %v3149_v44 }
  0x4b   : > { %v3757_v63 = vpack.c.b16 %v948_v48, %v947_v31  ;;  %v859_v0 = vor.u32 %v858_v49, %v855_v51  ;;  %v3151_v7 = vunpack.c.h.bf16 %v3149_v44  ;;  %v536_v5 = vadd.f32 %v3475_v10, %v517_v61  ;;  %1386 = vmatpush.bf16.msrb.mxu2 %v3092_v28  ;;  %1173 = vmatpush.bf16.msrb.mxu1 %v3076_v8  ;;  %v3131_v48 = vld [vmem:[%s4278_s3 + $0x1b8] sm:$0xff]  ;;  %v3108_v51 = vld [vmem:[%s4278_s3 + $0x100] sm:$0xff] }
  0x4c   : > { %v869_v50 = vor.u32 %v868_v56, %v864_v55  ;;  %v537_v60 = vadd.f32 %v3475_v10, %v518_v62  ;;  %v1086_v13 = vunpack.c.l.b16 %v3669_v12  ;;  %v505_v22 = vmul.f32 %v3461_v3, %v3150_v4  ;;  %1524 = vmatpush.bf16.msrb.mxu3 %v3100_v9  ;;  %v3139_v49 = vld [vmem:[%s4278_s3 + $0x1f8] sm:$0xff] }
  0x4d   : > { %1044 = vmatmul.bf16.gmra.mxu1 %v3757_v63  ;;  %v860_v19 = vrot.slane %v859_v0, 4  ;;  %v506_v37 = vmul.f32 %v3461_v3, %v3151_v7  ;;  %v1087_v23 = vunpack.c.l.b16 %v3673_v14  ;;  %v552_v25 = vmax.f32 %v536_v5, 0.0  ;;  %1683 = vmatpush.bf16.msrb.mxu0 %v3108_v51 }
  0x4e   : > { %v870_v24 = vrot.slane %v869_v50, 4  ;;  %v553_v27 = vmax.f32 %v537_v60, 0.0  ;;  %v524_v29 = vadd.f32 %v3475_v10, %v505_v22  ;;  %v2720_v46 = vrot.slane %v3669_v12, 9  ;;  %v3123_v12 = vld [vmem:[%s4278_s3 + $0x178] sm:$0xff] }
  0x4f   : > { %v865_v31 = vsel %vm3549_vm3, %v860_v19, %v864_v55  ;;  %v525_v33 = vadd.f32 %v3475_v10, %v506_v37  ;;  %v630_v32 = vrot.slane %v552_v25, 7  ;;  %v1102_v42 = vpack.c.b16 %v1087_v23, %v1086_v13  ;;  %1956 = vmatpush.bf16.msra.mxu2 %v3131_v48  ;;  %1818 = vmatpush.bf16.msra.mxu1 %v3123_v12  ;;  %v3147_v23 = vld [vmem:[%s4278_s3 + $0x238] sm:$0xff] }
  0x50   : > { %v875_v38 = vsel %vm3549_vm3, %v870_v24, %v874_v57  ;;  %v951_v3 = vunpack.c.l.b16 %v865_v31  ;;  %v631_v34 = vrot.slane %v553_v27, 7  ;;  %v540_v35 = vmax.f32 %v524_v29, 0.0  ;;  %2115 = vmatpush.bf16.msra.mxu3 %v3139_v49 }
  0x51   : > { %v952_v30 = vunpack.c.l.b16 %v875_v38  ;;  %v541_v36 = vmax.f32 %v525_v33, 0.0  ;;  %v676_v45 = vsel %vm608_vm0, 0.0, %v630_v32  ;;  %v1228_v4 = vrot.slane %v3673_v14, 5  ;;  %2257 = vmatpush.bf16.msra.mxu0 %v3147_v23  ;;  %v3122_v23 = vld [vmem:[%s4278_s3 + $0x170] sm:$0xff] }
  0x52   : > { %v632_v44 = vsel %vm608_vm0, %v630_v32, %v631_v34  ;;  %v686_v10 = vsel %vm608_vm0, %v631_v34, 0.0  ;;  %v3799_v56 = vpack.c.bf16 %v676_v45, %v676_v45  ;;  %v612_v62 = vrot.slane %v540_v35, 7 }
  0x53   : > { %v3797_v55 = vpack.c.b16 %v952_v30, %v951_v3  ;;  %v3801_v57 = vpack.c.bf16 %v632_v44, %v632_v44  ;;  %v3803_v61 = vpack.c.bf16 %v686_v10, %v686_v10  ;;  %v613_v0 = vrot.slane %v541_v36, 7  ;;  %1819 = vmatpush.bf16.msra.mxu1 %v3122_v23  ;;  %v3128_v23 = vld [vmem:[%s4278_s3 + $0x1a0] sm:$0xff] }
  0x54   : > { %v1231_v7 = vrot.slane %v3675_v15, 5  ;;  %v901_v28 = vshrl.u32 %v3799_v56, 16  ;;  %v904_v8 = vshll.u32 %v3799_v56, 16  ;;  %v670_v14 = vsel %vm608_vm0, 0.0, %v612_v62 }
  0x55   : > { %1054 = vmatmul.bf16.gmra.mxu2 %v3797_v55  ;;  %v910_v50 = vshll.u32 %v3801_v57, 16  ;;  %v914_v5 = vshrl.u32 %v3801_v57, 16  ;;  %v920_v60 = vshll.u32 %v3803_v61, 16  ;;  %v614_v9 = vsel %vm608_vm0, %v612_v62, %v613_v0 }
  0x56   : > { %v680_v15 = vsel %vm608_vm0, %v613_v0, 0.0  ;;  %v903_v13 = vrot.slane %v901_v28, 4  ;;  %v906_v19 = vrot.slane %v904_v8, 5  ;;  %v691_v25 = vpack.c.bf16 %v670_v14, %v670_v14 }
  0x57   : > { %v912_v22 = vrot.slane %v910_v50, 5  ;;  %v916_v37 = vrot.slane %v914_v5, 4  ;;  %v922_v24 = vrot.slane %v920_v60, 5  ;;  %v692_v27 = vpack.c.bf16 %v614_v9, %v614_v9 }
  0x58   : > { %v722_v31 = vpack.c.bf16 %v680_v15, %v680_v15  ;;  %v907_v29 = vor.u32 %v906_v19, %v903_v13  ;;  %v1229_v38 = vsel %vm3821_vm6, %v2720_v46, %v1228_v4  ;;  %v1230_v3 = vrot.slane %v1228_v4, 4 }
  0x59   : > { %v917_v33 = vor.u32 %v916_v37, %v912_v22  ;;  %v757_v32 = vshrl.u32 %v691_v25, 16  ;;  %v760_v34 = vshll.u32 %v691_v25, 16  ;;  %v766_v30 = vshll.u32 %v692_v27, 16  ;;  %v3138_v37 = vld [vmem:[%s4278_s3 + $0x1f0] sm:$0xff] }
  0x5a   : > { %v770_v35 = vshrl.u32 %v692_v27, 16  ;;  %v908_v36 = vrot.slane %v907_v29, 4  ;;  %v776_v45 = vshll.u32 %v722_v31, 16  ;;  %v1232_v10 = vsel %vm3821_vm6, %v1230_v3, %v1231_v7  ;;  %2116 = vmatpush.bf16.msra.mxu3 %v3138_v37 }
  0x5b   : > { %v918_v44 = vrot.slane %v917_v33, 4  ;;  %v759_v48 = vrot.slane %v757_v32, 4  ;;  %v762_v51 = vrot.slane %v760_v34, 5  ;;  %v768_v49 = vrot.slane %v766_v30, 5 }
  0x5c   : > { %v772_v12 = vrot.slane %v770_v35, 4  ;;  %v913_v62 = vsel %vm3549_vm3, %v908_v36, %v912_v22  ;;  %v778_v0 = vrot.slane %v776_v45, 5  ;;  %v1299_v4 = vunpack.c.l.b16 %v1229_v38  ;;  %v3130_v22 = vld [vmem:[%s4278_s3 + $0x1b0] sm:$0xff] }
  0x5d   : > { %v923_v46 = vsel %vm3549_vm3, %v918_v44, %v922_v24  ;;  %1174 = vmatmul.bf16.vlgmr.msrb.gmra.mxu1 %v1102_v42  ;;  %v955_v28 = vunpack.c.l.b16 %v913_v62  ;;  %v763_v50 = vor.u32 %v762_v51, %v759_v48  ;;  %v1300_v60 = vunpack.c.l.b16 %v1232_v10  ;;  %1957 = vmatpush.bf16.msra.mxu2 %v3130_v22  ;;  %v3146_v35 = vld [vmem:[%s4278_s3 + $0x230] sm:$0xff]  ;;  %v3137_v62 = vld [vmem:[%s4278_s3 + $0x1e8] sm:$0xff] }
  0x5e   : > { %v956_v8 = vunpack.c.l.b16 %v923_v46  ;;  %v773_v5 = vor.u32 %v772_v12, %v768_v49  ;;  %v1235_v42 = vrot.slane %v692_v27, 5  ;;  %v2721_v38 = vrot.slane %v691_v25, 9  ;;  %2258 = vmatpush.bf16.msra.mxu0 %v3146_v35  ;;  %v3129_v12 = vld [vmem:[%s4278_s3 + $0x1a8] sm:$0xff]  ;;  %2117 = vmatpush.bf16.msra.mxu3 %v3137_v62  ;;  %v3134_v62 = vld [vmem:[%s4278_s3 + $0x1d0] sm:$0xff] }
  0x5f   : > { %v764_v7 = vrot.slane %v763_v50, 4  ;;  %v1315_v15 = vpack.c.b16 %v1300_v60, %v1299_v4  ;;  %v1238_v32 = vrot.slane %v722_v31, 5  ;;  %v1088_v34 = vunpack.c.l.b16 %v691_v25  ;;  %v3121_v46 = vld [vmem:[%s4278_s3 + $0x168] sm:$0xff] }
  0x60   : > { %v3836_v9 = vpack.c.b16 %v956_v8, %v955_v28  ;;  %v774_v14 = vrot.slane %v773_v5, 4  ;;  %v1237_v3 = vrot.slane %v1235_v42, 4  ;;  %v1089_v30 = vunpack.c.l.b16 %v692_v27  ;;  %1820 = vmatpush.bf16.msra.mxu1 %v3121_v46  ;;  %v3145_v5 = vld [vmem:[%s4278_s3 + $0x228] sm:$0xff]  ;;  %v3118_v46 = vld [vmem:[%s4278_s3 + $0x150] sm:$0xff] }
  0x61   : > { %v769_v13 = vsel %vm3549_vm3, %v764_v7, %v768_v49  ;;  %v1092_v36 = vunpack.c.l.b16 %v3677_v17  ;;  %v1093_v44 = vunpack.c.l.b16 %v3679_v18  ;;  %v1236_v45 = vsel %vm3821_vm6, %v2721_v38, %v1235_v42  ;;  %1958 = vmatpush.bf16.msra.mxu2 %v3129_v12  ;;  %v3126_v12 = vld [vmem:[%s4278_s3 + $0x190] sm:$0xff] }
  0x62   : > { %1064 = vmatmul.bf16.gmra.mxu3 %v3836_v9  ;;  %v779_v19 = vsel %vm3549_vm3, %v774_v14, %v778_v0  ;;  %v943_v24 = vunpack.c.l.b16 %v769_v13  ;;  %v1239_v10 = vsel %vm3821_vm6, %v1237_v3, %v1238_v32  ;;  %v1103_v31 = vpack.c.b16 %v1089_v30, %v1088_v34  ;;  %2259 = vmatpush.bf16.msra.mxu0 %v3145_v5  ;;  %v3127_v3 = vld [vmem:[%s4278_s3 + $0x198] sm:$0xff]  ;;  %v3142_v5 = vld [vmem:[%s4278_s3 + $0x210] sm:$0xff] }
  0x63   : > { %v944_v29 = vunpack.c.l.b16 %v779_v19  ;;  %v3861_v48 = vpack.c.b16 %v1093_v44, %v1092_v36  ;;  %v1301_v25 = vunpack.c.l.b16 %v1236_v45  ;;  %v1302_v27 = vunpack.c.l.b16 %v1239_v10  ;;  %v3135_v32 = vld [vmem:[%s4278_s3 + $0x1d8] sm:$0xff] }
  0x64   : > { %v1242_v49 = vrot.slane %v3520_v53, 5  ;;  %v1090_v0 = vunpack.c.l.b16 %v3518_v52  ;;  %v2722_v4 = vrot.slane %v3518_v52, 9  ;;  %v1245_v8 = vrot.slane %v3522_v54, 5  ;;  %v3119_v34 = vld [vmem:[%s4278_s3 + $0x158] sm:$0xff] }
  0x65   : > { %v958_v33 = vpack.c.b16 %v944_v29, %v943_v24  ;;  %1387 = vmatmul.bf16.vlgmr.msrb.gmra.mxu2 %v1315_v15  ;;  %v3863_v51 = vpack.c.b16 %v1302_v27, %v1301_v25  ;;  %v1091_v50 = vunpack.c.l.b16 %v3520_v53  ;;  %v2723_v60 = vrot.slane %v3677_v17, 9  ;;  %v3136_v24 = vld [vmem:[%s4278_s3 + $0x1e0] sm:$0xff]  ;;  %v3143_v10 = vld [vmem:[%s4278_s3 + $0x218] sm:$0xff] }
  0x66   : > { %v1244_v28 = vrot.slane %v1242_v49, 4  ;;  %v1249_v7 = vrot.slane %v3679_v18, 5  ;;  %v1252_v14 = vrot.slane %v3683_v43, 5  ;;  %v1243_v54 = vsel %vm3821_vm6, %v2722_v4, %v1242_v49  ;;  %v3120_v29 = vld [vmem:[%s4278_s3 + $0x160] sm:$0xff]  ;;  %1959 = vmatpush.bf16.msra.mxu2 %v3128_v23  ;;  %2118 = vmatpush.bf16.msra.mxu3 %v3136_v24 }
  0x67   : > { %1034 = vmatmul.bf16.gmra.mxu0 %v958_v33  ;;  %v3892_v19 = vpack.c.b16 %v1091_v50, %v1090_v0  ;;  %v1303_v43 = vunpack.c.l.b16 %v1243_v54  ;;  %1821 = vmatpush.bf16.msra.mxu1 %v3120_v29  ;;  %v1256_v38 = vrot.slane %v3531_v59, 5  ;;  %v2724_v30 = vrot.slane %v3529_v58, 9 }
  0x68   : > { %v1250_v52 = vsel %vm3821_vm6, %v2723_v60, %v1249_v7  ;;  %v1251_v15 = vrot.slane %v1249_v7, 4  ;;  %v1246_v53 = vsel %vm3821_vm6, %v1244_v28, %v1245_v8  ;;  %v1259_v36 = vrot.slane %v3539_v2, 5 }
  0x69   : > { %v1305_v13 = vunpack.c.l.b16 %v1250_v52  ;;  %v1304_v42 = vunpack.c.l.b16 %v1246_v53  ;;  %v1258_v35 = vrot.slane %v1256_v38, 4  ;;  %v1094_v44 = vunpack.c.l.b16 %v3529_v58 }
  0x6a   : > { %v1253_v17 = vsel %vm3821_vm6, %v1251_v15, %v1252_v14  ;;  %1960 = vmatpush.bf16.msra.mxu2 %v3127_v3  ;;  %2119 = vmatpush.bf16.msra.mxu3 %v3135_v32  ;;  %v1095_v45 = vunpack.c.l.b16 %v3531_v59  ;;  %v1263_v59 = vrot.slane %v3718_v21, 5  ;;  %v2725_v0 = vrot.slane %v3716_v20, 9 }
  0x6b   : > { %v1306_v18 = vunpack.c.l.b16 %v1253_v17  ;;  %v3899_v37 = vpack.c.b16 %v1304_v42, %v1303_v43  ;;  %1822 = vmatpush.bf16.msra.mxu1 %v3119_v34  ;;  %v1260_v25 = vsel %vm3821_vm6, %v1258_v35, %v1259_v36  ;;  %v1266_v28 = vrot.slane %v3728_v26, 5  ;;  %v3133_v17 = vld [vmem:[%s4278_s3 + $0x1c8] sm:$0xff]  ;;  %v3990_v43 = vld [vmem:[%s4279_s4] ss:$0 sm:$0xff] }
  0x6c   : > { %v3941_v27 = vpack.c.b16 %v1095_v45, %v1094_v44  ;;  %v1308_v49 = vunpack.c.l.b16 %v1260_v25  ;;  %v1265_v4 = vrot.slane %v1263_v59, 4  ;;  %v1096_v8 = vunpack.c.l.b16 %v3716_v20  ;;  %v3234_v20 = vld [vmem:[%s3456_s23 + $0x38] sm:$0xff]   ;;  %v3141_v34 = vld [vmem:[%s4278_s3 + $0x208] sm:$0xff]  ;;  %s4230_s23 = scalar_lea.vmem %s4281_s6, %s2616_s20  ;;  %s465_s20 = sadd.s32 %s2638_s19, %s4307_s24 }
  0x6d   : > { %1179 = vmatmul.bf16.gmra.mxu1 %v1103_v31  ;;  %v3897_v22 = vpack.c.b16 %v1306_v18, %v1305_v13  ;;  %v1097_v50 = vunpack.c.l.b16 %v3718_v21  ;;  %v1264_v60 = vsel %vm3821_vm6, %v2725_v0, %v1263_v59  ;;  %v3178_v15 = vunpack.c.l.bf16 %v3234_v20  ;;  %v3125_v13 = vld [vmem:[%s4278_s3 + $0x188] sm:$0xff]  ;;  %s2639_s22 = sshll.u32 %s465_s20, 1 }
  0x6e   : > { %1961 = vmatpush.bf16.msra.mxu2 %v3126_v12  ;;  %2120 = vmatpush.bf16.msra.mxu3 %v3134_v62  ;;  %v1267_v7 = vsel %vm3821_vm6, %v1265_v4, %v1266_v28  ;;  %v1309_v26 = vunpack.c.l.b16 %v1264_v60  ;;  %v3179_v21 = vunpack.c.h.bf16 %v3234_v20  ;;  %v1270_v53 = vrot.slane %v3571_v40, 5  ;;  %v3117_v18 = vld [vmem:[%s4278_s3 + $0x148] sm:$0xff]  ;;  %v3124_v62 = vld [vmem:[%s4278_s3 + $0x180] sm:$0xff]  ;;  %s467_s10 = scalar_lea.vmem %s4282_s7, %s2639_s22 }
  0x6f   : > { %1823 = vmatpush.bf16.msra.mxu1 %v3118_v46  ;;  %v3970_v14 = vpack.c.b16 %v1097_v50, %v1096_v8  ;;  %v1310_v52 = vunpack.c.l.b16 %v1267_v7  ;;  %v519_v42 = vmul.f32 %v3990_v43, %v3178_v15  ;;  %v2726_v29 = vrot.slane %v3569_v39, 9  ;;  %v3132_v4 = vld [vmem:[%s4278_s3 + $0x1c0] sm:$0xff] }
  0x70   : > { %v520_v23 = vmul.f32 %v3990_v43, %v3179_v21  ;;  %v1098_v3 = vunpack.c.l.b16 %v3569_v39  ;;  %v1099_v32 = vunpack.c.l.b16 %v3571_v40  ;;  %v1277_v12 = vrot.slane %v3801_v57, 5  ;;  %v3116_v8 = vld [vmem:[%s4278_s3 + $0x140] sm:$0xff] }
  0x71   : > { %v3974_v54 = vpack.c.b16 %v1310_v52, %v1309_v26  ;;  %v2727_v50 = vrot.slane %v3799_v56, 9  ;;  %v1280_v60 = vrot.slane %v3803_v61, 5  ;;  %v1100_v7 = vunpack.c.l.b16 %v3799_v56 }
  0x72   : > { %1525 = vmatmul.bf16.vlgmr.msrb.gmra.mxu3 %v1103_v31  ;;  %v1257_v31 = vsel %vm3821_vm6, %v2724_v30, %v1256_v38  ;;  %1962 = vmatpush.bf16.msra.mxu2 %v3125_v13  ;;  %v1273_v38 = vrot.slane %v3573_v41, 5  ;;  %v4008_v30 = vld [vmem:[%s4280_s5] ss:$0 sm:$0xff]  ;;  %v1271_v41 = vsel %vm3821_vm6, %v2726_v29, %v1270_v53  ;;  %v4016_v40 = vpack.c.b16 %v1099_v32, %v1098_v3 }
  0x73   : > { %v1307_v2 = vunpack.c.l.b16 %v1257_v31  ;;  %2121 = vmatpush.bf16.msra.mxu3 %v3133_v17  ;;  %1824 = vmatpush.bf16.msra.mxu1 %v3117_v18  ;;  %v538_v35 = vadd.f32 %v4008_v30, %v519_v42  ;;  %v539_v36 = vadd.f32 %v4008_v30, %v520_v23  ;;  %v1101_v26 = vunpack.c.l.b16 %v3801_v57  ;;  %v3140_v42 = vld [vmem:[%s4278_s3 + $0x200] sm:$0xff] }
  0x74   : > { %v1278_v21 = vsel %vm3821_vm6, %v2727_v50, %v1277_v12 }
  0x75   : > { %1392 = vmatmul.bf16.gmra.mxu2 %v3863_v51  ;;  %v3944_v58 = vpack.c.b16 %v1308_v49, %v1307_v2  ;;  %v554_v44 = vmax.f32 %v538_v35, 0.0  ;;  %v555_v45 = vmax.f32 %v539_v36, 0.0  ;;  %v1313_v23 = vunpack.c.l.b16 %v1278_v21 }
  0x76   : > { %1963 = vmatpush.bf16.msra.mxu2 %v3124_v62 }
  0x77   : > { %1684 = vmatmul.bf16.vlgmr.msrb.gmra.mxu0 %v958_v33  ;;  %v3144_v33 = vld [vmem:[%s4278_s3 + $0x220] sm:$0xff]  ;;  %v633_v2 = vrot.slane %v554_v44, 7  ;;  %v634_v49 = vrot.slane %v555_v45, 7  ;;  %2122 = vmatpush.bf16.msra.mxu3 %v3132_v4 }
  0x78   : > { %2260 = vmatpush.bf16.msra.mxu0 %v3144_v33  ;;  %v1272_v33 = vrot.slane %v1270_v53, 4  ;;  %1825 = vmatpush.bf16.msra.mxu1 %v3116_v8  ;;  %v4054_v53 = vpack.c.b16 %v1101_v26, %v1100_v7 }
  0x79   : > { %v635_v0 = vsel %vm608_vm0, %v633_v2, %v634_v49  ;;  %v677_v28 = vsel %vm608_vm0, 0.0, %v633_v2  ;;  %v687_v56 = vsel %vm608_vm0, %v634_v49, 0.0 }
  0x7a   : > { %v1274_v39 = vsel %vm3821_vm6, %v1272_v33, %v1273_v38  ;;  %v4044_v52 = vpack.c.bf16 %v635_v0, %v635_v0  ;;  %v4046_v20 = vpack.c.bf16 %v677_v28, %v677_v28  ;;  %v4067_v38 = vpack.c.bf16 %v687_v56, %v687_v56 }
  0x7b   : > { %v1312_v31 = vunpack.c.l.b16 %v1274_v39 }
  0x7c   : > { %2261 = vmatpush.bf16.msra.mxu0 %v3143_v10  ;;  %v1311_v10 = vunpack.c.l.b16 %v1271_v41  ;;  %v1593_v13 = vshll.u32 %v4044_v52, 16  ;;  %v1584_v57 = vshrl.u32 %v4046_v20, 16  ;;  %v1587_v17 = vshll.u32 %v4046_v20, 16 }
  0x7d   : > { %1184 = vmatmul.bf16.gmra.mxu1 %v3892_v19  ;;  %v1597_v18 = vshrl.u32 %v4044_v52, 16  ;;  %v1465_v4 = vunpack.c.l.b16 %v4046_v20  ;;  %v1466_v28 = vunpack.c.l.b16 %v4044_v52 }
  0x7e   : > { %v4021_v59 = vpack.c.b16 %v1312_v31, %v1311_v10  ;;  %v1586_v32 = vrot.slane %v1584_v57, 4  ;;  %v1595_v35 = vrot.slane %v1593_v13, 5  ;;  %v1603_v31 = vshll.u32 %v4067_v38, 16 }
  0x7f   : > { %v1599_v36 = vrot.slane %v1597_v18, 4  ;;  %v4090_v26 = vpack.c.b16 %v1466_v28, %v1465_v4 }
  0x80   : > { %2262 = vmatpush.bf16.msra.mxu0 %v3142_v5  ;;  %v1279_v5 = vrot.slane %v1277_v12, 4  ;;  %v1605_v62 = vrot.slane %v1603_v31, 5 }
  0x81   : > { %v1600_v10 = vor.u32 %v1599_v36, %v1595_v35 }
  0x82   : > { %1530 = vmatmul.bf16.gmra.mxu3 %v3892_v19  ;;  %v1281_v61 = vsel %vm3821_vm6, %v1279_v5, %v1280_v60 }
  0x83   : > { %v1314_v29 = vunpack.c.l.b16 %v1281_v61  ;;  %v1601_v12 = vrot.slane %v1600_v10, 4 }
  0x84   : > { %2263 = vmatpush.bf16.msra.mxu0 %v3141_v34  ;;  %v1589_v34 = vrot.slane %v1587_v17, 5 }
  0x85   : > { %1397 = vmatmul.bf16.gmra.mxu2 %v3899_v37  ;;  %v4071_v39 = vpack.c.b16 %v1314_v29, %v1313_v23  ;;  %v1606_v7 = vsel %vm3549_vm3, %v1601_v12, %v1605_v62 }
  0x86   : > { %v1590_v45 = vor.u32 %v1589_v34, %v1586_v32  ;;  %v1625_v61 = vunpack.c.l.b16 %v1606_v7 }
  0x87   : > { %1689 = vmatmul.bf16.gmra.mxu0 %v3597_v1 }
  0x88   : > { %2264 = vmatpush.bf16.msra.mxu0 %v3140_v42  ;;  %v1591_v49 = vrot.slane %v1590_v45, 4 }
  0x8a   : > { %v1596_v60 = vsel %vm3549_vm3, %v1591_v49, %v1595_v35 }
  0x8b   : > { %v1624_v21 = vunpack.c.l.b16 %v1596_v60 }
  0x8d   : > { %1189 = vmatmul.bf16.gmra.mxu1 %v3861_v48  ;;  %v4095_v57 = vpack.c.b16 %v1625_v61, %v1624_v21 }
  0x92   : > { %1535 = vmatmul.bf16.gmra.mxu3 %v3861_v48 }
  0x95   : > { %1402 = vmatmul.bf16.gmra.mxu2 %v3897_v22 }
  0x97   : > { %1694 = vmatmul.bf16.gmra.mxu0 %v3757_v63 }
  0x9d   : > { %1194 = vmatmul.bf16.gmra.mxu1 %v3941_v27 }
  0xa2   : > { %1540 = vmatmul.bf16.gmra.mxu3 %v3941_v27 }
  0xa5   : > { %1407 = vmatmul.bf16.gmra.mxu2 %v3944_v58 }
  0xa7   : > { %1699 = vmatmul.bf16.gmra.mxu0 %v3629_v47 }
  0xad   : > { %1199 = vmatmul.bf16.gmra.mxu1 %v3970_v14 }
  0xae   : > { %v3995_v24 = vpop.f32.mrf.mxu1 }
  0xb2   : > { %1545 = vmatmul.bf16.gmra.mxu3 %v3970_v14 }
  0xb5   : > { %1412 = vmatmul.bf16.gmra.mxu2 %v3974_v54 }
  0xb6   : > { %v4019_v25 = vpop.f32.mrf.mxu1 }
  0xb7   : > { %1704 = vmatmul.bf16.gmra.mxu0 %v3797_v55 }
  0xb8   : > { %v4028_v46 = vpop.f32.mrf.mxu2 }
  0xbd   : > { %1204 = vmatmul.bf16.gmra.mxu1 %v4016_v40 }
  0xc0   : > { %v4065_v33 = vpop.f32.mrf.mxu2  ;;  %v4069_v41 = vpop.f32.mrf.mxu3 }
  0xc2   : > { %1550 = vmatmul.bf16.gmra.mxu3 %v4016_v40 }
  0xc5   : > { %1417 = vmatmul.bf16.gmra.mxu2 %v4021_v59 }
  0xc7   : > { %1709 = vmatmul.bf16.gmra.mxu0 %v3662_v6  ;;  %v1030_v3 = vpop.f32.mrf.mxu0 }
  0xc8   : > { %v4083_v50 = vpop.f32.mrf.mxu3 }
  0xca   : > { %v4048_v15 = vpop.f32.mrf.mxu1 }
  0xcd   : > { %1209 = vmatmul.bf16.gmra.mxu1 %v4054_v53 }
  0xcf   : > { %v1032_v0 = vpop.f32.mrf.mxu0 }
  0xd2   : > { %1555 = vmatmul.bf16.gmra.mxu3 %v4054_v53  ;;  %v4074_v44 = vpop.f32.mrf.mxu1 }
  0xd5   : > { %1422 = vmatmul.bf16.gmra.mxu2 %v4071_v39 }
  0xd7   : > { %1714 = vmatmul.bf16.gmra.mxu0 %v3836_v9 }
  0xd8   : > { %v4079_v2 = vpop.f32.mrf.mxu2 }
  0xda   : > { %v1175_v8 = vpop.f32.mrf.mxu1 }
  0xdb   : > { %v1176_v5 = vadd.f32 %v1175_v8, %v1030_v3 }
  0xdd   : > { %1826 = vmatmul.bf16.vlgmr.msra.gmra.mxu1 %v3863_v51 }
  0xe0   : > { %v4092_v13 = vpop.f32.mrf.mxu2 }
  0xe2   : > { %1560 = vmatmul.bf16.gmra.mxu3 %v4090_v26  ;;  %v1177_v56 = vpop.f32.mrf.mxu1 }
  0xe3   : > { %v1178_v17 = vadd.f32 %v1177_v56, %v1032_v0 }
  0xe4   : > { %v1035_v18 = vpop.f32.mrf.mxu0 }
  0xe5   : > { %v4097_v42 = vpop.f32.mrf.mxu3  ;;  %1964 = vmatmul.bf16.vlgmr.msra.gmra.mxu2 %v3892_v19 }
  0xe7   : > { %1719 = vmatmul.bf16.gmra.mxu0 %v4095_v57 }
  0xe8   : > { %v1388_v51 = vpop.f32.mrf.mxu2 }
  0xe9   : > { %v1428_v23 = vadd.f32 %v1388_v51, %v1176_v5 }
  0xea   : > { %v1180_v29 = vpop.f32.mrf.mxu1 }
  0xeb   : > { %v1181_v3 = vadd.f32 %v1180_v29, %v1035_v18 }
  0xec   : > { %v1037_v32 = vpop.f32.mrf.mxu0 }
  0xed   : > { %v4101_v34 = vpop.f32.mrf.mxu3  ;;  %1831 = vmatmul.bf16.gmra.mxu1 %v3899_v37 }
  0xf0   : > { %v1390_v35 = vpop.f32.mrf.mxu2 }
  0xf1   : > { %v1429_v36 = vadd.f32 %v1390_v35, %v1178_v17 }
  0xf2   : > { %2123 = vmatmul.bf16.vlgmr.msra.gmra.mxu3 %v3597_v1  ;;  %v1182_v45 = vpop.f32.mrf.mxu1 }
  0xf3   : > { %v1183_v10 = vadd.f32 %v1182_v45, %v1037_v32 }
  0xf4   : > { %v1685_v31 = vpop.f32.mrf.mxu0 }
  0xf5   : > { %v1526_v49 = vpop.f32.mrf.mxu3  ;;  %1969 = vmatmul.bf16.gmra.mxu2 %v3861_v48 }
  0xf6   : > { %v1566_v19 = vadd.f32 %v1526_v49, %v1428_v23 }
  0xf7   : > { %2265 = vmatmul.bf16.vlgmr.msra.gmra.mxu0 %v3899_v37 }
  0xf8   : > { %v1393_v12 = vpop.f32.mrf.mxu2  ;;  %v4107_v62 = vadd.f32 %v1685_v31, %v1566_v19 }
  0xf9   : > { %v1430_v0 = vadd.f32 %v1393_v12, %v1181_v3 }
  0xfa   : > { %v1185_v4 = vpop.f32.mrf.mxu1 }
  0xfb   : > { %v1186_v17 = vadd.f32 %v1185_v4, %v3995_v24 }
  0xfc   : > { %v1687_v28 = vpop.f32.mrf.mxu0 }
  0xfd   : > { %v1528_v8 = vpop.f32.mrf.mxu3  ;;  %1836 = vmatmul.bf16.gmra.mxu1 %v3897_v22 }
  0xfe   : > { %v1567_v5 = vadd.f32 %v1528_v8, %v1429_v36 }
 0x100   : > { %v1395_v1 = vpop.f32.mrf.mxu2  ;;  %v4110_v60 = vadd.f32 %v1687_v28, %v1567_v5 }
 0x101   : > { %v1431_v7 = vadd.f32 %v1395_v1, %v1183_v10  ;;  %v3185_v1 = vld [vmem:[%s444_s16] sm:$0xff]  }
 0x102   : > { %2128 = vmatmul.bf16.gmra.mxu3 %v3757_v63  ;;  %v1187_v48 = vpop.f32.mrf.mxu1 }
 0x103   : > { %v1188_v37 = vadd.f32 %v1187_v48, %v4019_v25 }
 0x104   : > { %v1690_v21 = vpop.f32.mrf.mxu0 }
 0x105   : > { %v1531_v61 = vpop.f32.mrf.mxu3  ;;  %1974 = vmatmul.bf16.gmra.mxu2 %v3941_v27 }
 0x106   : > { %v1568_v56 = vadd.f32 %v1531_v61, %v1430_v0 }
 0x107   : > { %2270 = vmatmul.bf16.gmra.mxu0 %v3897_v22 }
 0x108   : > { %v1398_v18 = vpop.f32.mrf.mxu2  ;;  %v4117_v51 = vadd.f32 %v1690_v21, %v1568_v56 }
 0x109   : > { %v1432_v23 = vadd.f32 %v1398_v18, %v1186_v17 }
 0x10a   : > { %v1190_v29 = vpop.f32.mrf.mxu1 }
 0x10b   : > { %v1191_v63 = vadd.f32 %v1190_v29, %v4048_v15 }
 0x10c   : > { %v1692_v3 = vpop.f32.mrf.mxu0 }
 0x10d   : > { %v1533_v32 = vpop.f32.mrf.mxu3  ;;  %1841 = vmatmul.bf16.gmra.mxu1 %v3944_v58 }
 0x10e   : > { %v1569_v22 = vadd.f32 %v1533_v32, %v1431_v7 }
 0x110   : > { %v1400_v27 = vpop.f32.mrf.mxu2  ;;  %v4126_v24 = vadd.f32 %v1692_v3, %v1569_v22 }
 0x111   : > { %v1433_v25 = vadd.f32 %v1400_v27, %v1188_v37  ;;  %v3186_v37 = vunpack.c.l.bf16 %v3185_v1 }
 0x112   : > { %2133 = vmatmul.bf16.gmra.mxu3 %v3629_v47  ;;  %v1192_v15 = vpop.f32.mrf.mxu1 }
 0x113   : > { %v1193_v35 = vadd.f32 %v1192_v15, %v4074_v44  ;;  %v576_v18 = vmul.f32 %v3990_v43, %v3186_v37 }
 0x114   : > { %v1695_v36 = vpop.f32.mrf.mxu0 }
 0x115   : > { %v1536_v45 = vpop.f32.mrf.mxu3  ;;  %1979 = vmatmul.bf16.gmra.mxu2 %v3970_v14 }
 0x116   : > { %v1570_v10 = vadd.f32 %v1536_v45, %v1432_v23 }
 0x117   : > { %2275 = vmatmul.bf16.gmra.mxu0 %v3944_v58 }
 0x118   : > { %v1403_v31 = vpop.f32.mrf.mxu2  ;;  %v4136_v49 = vadd.f32 %v1695_v36, %v1570_v10  ;;  %v585_v36 = vstv %s584_s17 }
 0x119   : > { %v1434_v19 = vadd.f32 %v1403_v31, %v1191_v63  ;;  %v578_v63 = vadd.f32 %v4008_v30, %v576_v18 }
 0x11a   : > { %v1195_v12 = vpop.f32.mrf.mxu1 }
 0x11b   : > { %v1196_v48 = vadd.f32 %v1195_v12, %v4028_v46 }
 0x11c   : > { %v1697_v0 = vpop.f32.mrf.mxu0 }
 0x11d   : > { %v1538_v47 = vpop.f32.mrf.mxu3  ;;  %1846 = vmatmul.bf16.gmra.mxu1 %v3974_v54 }
 0x11e   : > { %v1571_v44 = vadd.f32 %v1538_v47, %v1433_v25  ;;  %v580_v25 = vmax.f32 %v578_v63, 0.0  ;;  %v1744_v47 = vrot.slane %v4044_v52, 5 }
 0x120   : > { %v1405_v14 = vpop.f32.mrf.mxu2  ;;  %v4140_v4 = vadd.f32 %v1697_v0, %v1571_v44 }
 0x121   : > { %v1435_v28 = vadd.f32 %v1405_v14, %v1193_v35 }
 0x122   : > { %2138 = vmatmul.bf16.gmra.mxu3 %v3797_v55  ;;  %v1197_v58 = vpop.f32.mrf.mxu1  ;;  %v3187_v55 = vunpack.c.h.bf16 %v3185_v1 }
 0x123   : > { %v1198_v46 = vadd.f32 %v1197_v58, %v4065_v33 }
 0x124   : > { %v1700_v8 = vpop.f32.mrf.mxu0  ;;  %v577_v29 = vmul.f32 %v3990_v43, %v3187_v55 }
 0x125   : > { %v1541_v5 = vpop.f32.mrf.mxu3  ;;  %1984 = vmatmul.bf16.gmra.mxu2 %v4016_v40 }
 0x126   : > { %v1572_v7 = vadd.f32 %v1541_v5, %v1434_v19  ;;  %v579_v32 = vadd.f32 %v4008_v30, %v577_v29  ;;  %v586_v30 = vmul.f32 %v585_v36, %v580_v25  ;;  %v1747_v5 = vrot.slane %v4067_v38, 5 }
 0x127   : > { %2280 = vmatmul.bf16.gmra.mxu0 %v3974_v54 }
 0x128   : > { %v1408_v21 = vpop.f32.mrf.mxu2  ;;  %v4150_v61 = vadd.f32 %v1700_v8, %v1572_v7  ;;  %v581_v35 = vmax.f32 %v579_v32, 0.0  ;;  %v636_v44 = vrot.slane %v586_v30, 7  ;;  %v1746_v8 = vrot.slane %v1744_v47, 4 }
 0x129   : > { %v1436_v56 = vadd.f32 %v1408_v21, %v1196_v48 }
 0x12a   : > { %v1200_v17 = vpop.f32.mrf.mxu1  ;;  %v587_v19 = vmul.f32 %v585_v36, %v581_v35  ;;  %v678_v1 = vsel %vm608_vm0, 0.0, %v636_v44 }
 0x12b   : > { %v1201_v10 = vadd.f32 %v1200_v17, %v4079_v2 }
 0x12c   : > { %v1702_v23 = vpop.f32.mrf.mxu0 }
 0x12d   : > { %v1543_v40 = vpop.f32.mrf.mxu3  ;;  %1851 = vmatmul.bf16.gmra.mxu1 %v4021_v59 }
 0x12e   : > { %v1573_v54 = vadd.f32 %v1543_v40, %v1435_v28  ;;  %v637_v28 = vrot.slane %v587_v19, 7 }
 0x130   : > { %v1410_v3 = vpop.f32.mrf.mxu2  ;;  %v4160_v27 = vadd.f32 %v1702_v23, %v1573_v54  ;;  %v638_v48 = vsel %vm608_vm0, %v636_v44, %v637_v28 }
 0x131   : > { %v1437_v22 = vadd.f32 %v1410_v3, %v1198_v46  ;;  %v4184_v38 = vpack.c.bf16 %v638_v48, %v638_v48 }
 0x132   : > { %2143 = vmatmul.bf16.gmra.mxu3 %v3662_v6  ;;  %v1202_v43 = vpop.f32.mrf.mxu1 }
 0x133   : > { %v1203_v2 = vadd.f32 %v1202_v43, %v4092_v13  ;;  %v1748_v13 = vsel %vm3821_vm6, %v1746_v8, %v1747_v5  ;;  %v2032_v63 = vshll.u32 %v4184_v38, 16  ;;  %v2036_v3 = vshrl.u32 %v4184_v38, 16 }
 0x134   : > { %v1705_v15 = vpop.f32.mrf.mxu0  ;;  %v1767_v29 = vunpack.c.l.b16 %v1748_v13  ;;  %v1905_v30 = vunpack.c.l.b16 %v4184_v38 }
 0x135   : > { %v1546_v45 = vpop.f32.mrf.mxu3  ;;  %1989 = vmatmul.bf16.gmra.mxu2 %v4054_v53 }
 0x136   : > { %v1574_v33 = vadd.f32 %v1546_v45, %v1436_v56  ;;  %v2034_v45 = vrot.slane %v2032_v63, 5 }
 0x137   : > { %2285 = vmatmul.bf16.gmra.mxu0 %v4021_v59  ;;  %v2872_v59 = vrot.slane %v4046_v20, 9  ;;  %v4180_v20 = vpack.c.bf16 %v678_v1, %v678_v1  ;;  %v2183_v1 = vrot.slane %v4184_v38, 5 }
 0x138   : > { %v1413_v31 = vpop.f32.mrf.mxu2  ;;  %v4166_v12 = vadd.f32 %v1705_v15, %v1574_v33  ;;  %v2038_v33 = vrot.slane %v2036_v3, 4 }
 0x139   : > { %v1438_v0 = vadd.f32 %v1413_v31, %v1201_v10  ;;  %v1745_v55 = vsel %vm3821_vm6, %v2872_v59, %v1744_v47  ;;  %v2023_v40 = vshrl.u32 %v4180_v20, 16  ;;  %v2026_v46 = vshll.u32 %v4180_v20, 16 }
 0x13a   : > { %v1205_v6 = vpop.f32.mrf.mxu1  ;;  %v1766_v18 = vunpack.c.l.b16 %v1745_v55  ;;  %v3017_v55 = vrot.slane %v4180_v20, 9  ;;  %v2185_v13 = vrot.slane %v2183_v1, 4 }
 0x13b   : > { %v1206_v54 = vadd.f32 %v1205_v6, %v4069_v41  ;;  %v2025_v35 = vrot.slane %v2023_v40, 4  ;;  %v2028_v36 = vrot.slane %v2026_v46, 5  ;;  %v1904_v41 = vunpack.c.l.b16 %v4180_v20 }
 0x13c   : > { %v1707_v14 = vpop.f32.mrf.mxu0  ;;  %v1768_v43 = vpack.c.b16 %v1767_v29, %v1766_v18  ;;  %v2039_v6 = vor.u32 %v2038_v33, %v2034_v45 }
 0x13d   : > { %v1548_v58 = vpop.f32.mrf.mxu3  ;;  %1856 = vmatmul.bf16.gmra.mxu1 %v4071_v39 }
 0x13e   : > { %v1575_v53 = vadd.f32 %v1548_v58, %v1437_v22  ;;  %v1906_v58 = vpack.c.b16 %v1905_v30, %v1904_v41 }
 0x140   : > { %v1415_v7 = vpop.f32.mrf.mxu2  ;;  %v4175_v37 = vadd.f32 %v1707_v14, %v1575_v53 }
 0x141   : > { %v1439_v52 = vadd.f32 %v1415_v7, %v1203_v2  ;;  %v2040_v2 = vrot.slane %v2039_v6, 4 }
 0x142   : > { %2148 = vmatmul.bf16.gmra.mxu3 %v3836_v9  ;;  %v1207_v21 = vpop.f32.mrf.mxu1  ;;  %v688_v9 = vsel %vm608_vm0, %v637_v28, 0.0 }
 0x143   : > { %v2021_v15 = vpack.c.bf16 %v688_v9, %v688_v9  ;;  %v1208_v19 = vadd.f32 %v1207_v21, %v4083_v50 }
 0x144   : > { %v1710_v56 = vpop.f32.mrf.mxu0 }
 0x145   : > { %v1551_v17 = vpop.f32.mrf.mxu3  ;;  %1994 = vmatmul.bf16.gmra.mxu2 %v4090_v26  ;;  %v2042_v47 = vshll.u32 %v2021_v15, 16 }
 0x146   : > { %v1576_v23 = vadd.f32 %v1551_v17, %v1438_v0  ;;  %v2029_v0 = vor.u32 %v2028_v36, %v2025_v35 }
 0x147   : > { %2290 = vmatmul.bf16.gmra.mxu0 %v4071_v39  ;;  %v2044_v8 = vrot.slane %v2042_v47, 5 }
 0x148   : > { %v1418_v32 = vpop.f32.mrf.mxu2  ;;  %v4194_v22 = vadd.f32 %v1710_v56, %v1576_v23  ;;  %v2030_v59 = vrot.slane %v2029_v0, 4  ;;  %v2186_v56 = vrot.slane %v2021_v15, 5 }
 0x149   : > { %v1440_v26 = vadd.f32 %v1418_v32, %v1206_v54  ;;  %v2045_v21 = vsel %vm3549_vm3, %v2040_v2, %v2044_v8 }
 0x14a   : > { %v1210_v25 = vpop.f32.mrf.mxu1  ;;  %v2064_v23 = vunpack.c.l.b16 %v2045_v21  ;;  %v2187_v40 = vsel %vm3821_vm6, %v2185_v13, %v2186_v56 }
 0x14b   : > { %v1211_v48 = vadd.f32 %v1210_v25, %v4097_v42  ;;  %v2184_v42 = vsel %vm3821_vm6, %v3017_v55, %v2183_v1  ;;  %v2206_v3 = vunpack.c.l.b16 %v2187_v40 }
 0x14c   : > { %v1712_v39 = vpop.f32.mrf.mxu0  ;;  %v2205_v63 = vunpack.c.l.b16 %v2184_v42 }
 0x14d   : > { %v1553_v10 = vpop.f32.mrf.mxu3  ;;  %1861 = vmatmul.bf16.gmra.mxu1 %v1768_v43 }
 0x14e   : > { %v1577_v31 = vadd.f32 %v1553_v10, %v1439_v52  ;;  %v2035_v52 = vsel %vm3549_vm3, %v2030_v59, %v2034_v45  ;;  %v2207_v15 = vpack.c.b16 %v2206_v3, %v2205_v63 }
 0x14f   : > { %v2063_v18 = vunpack.c.l.b16 %v2035_v52 }
 0x150   : > { %v1420_v44 = vpop.f32.mrf.mxu2  ;;  %v4199_v14 = vadd.f32 %v1712_v39, %v1577_v31 }
 0x151   : > { %v1441_v28 = vadd.f32 %v1420_v44, %v1208_v19  ;;  %v2065_v46 = vpack.c.b16 %v2064_v23, %v2063_v18 }
 0x152   : > { %2153 = vmatmul.bf16.gmra.mxu3 %v4095_v57  ;;  %v1212_v53 = vpop.f32.mrf.mxu1 }
 0x153   : > { %v1213_v20 = vadd.f32 %v1212_v53, %v4101_v34 }
 0x154   : > { %v1715_v5 = vpop.f32.mrf.mxu0 }
 0x155   : > { %v1556_v7 = vpop.f32.mrf.mxu3  ;;  %1999 = vmatmul.bf16.gmra.mxu2 %v1906_v58 }
 0x156   : > { %v1578_v50 = vadd.f32 %v1556_v7, %v1440_v26 }
 0x157   : > { %2295 = vmatmul.bf16.gmra.mxu0 %v1768_v43 }
 0x158   : > { %v1423_v57 = vpop.f32.mrf.mxu2  ;;  %v4209_v17 = vadd.f32 %v1715_v5, %v1578_v50 }
 0x159   : > { %v1442_v38 = vadd.f32 %v1423_v57, %v1211_v48 }
 0x15a   : > { %v1827_v29 = vpop.f32.mrf.mxu1 }
 0x15b   : > { %v1867_v0 = vadd.f32 %v1827_v29, %v4107_v62 }
 0x15c   : > { %v1717_v9 = vpop.f32.mrf.mxu0 }
 0x15d   : > { %v1558_v16 = vpop.f32.mrf.mxu3 }
 0x15e   : > { %v1579_v54 = vadd.f32 %v1558_v16, %v1441_v28 }
 0x160   : > { %v1425_v32 = vpop.f32.mrf.mxu2  ;;  %v4216_v26 = vadd.f32 %v1717_v9, %v1579_v54 }
 0x161   : > { %v1443_v43 = vadd.f32 %v1425_v32, %v1213_v20 }
 0x162   : > { %2158 = vmatmul.bf16.gmra.mxu3 %v2065_v46  ;;  %v1829_v25 = vpop.f32.mrf.mxu1 }
 0x163   : > { %v1868_v28 = vadd.f32 %v1829_v25, %v4110_v60 }
 0x164   : > { %v1720_v35 = vpop.f32.mrf.mxu0 }
 0x165   : > { %v1561_v36 = vpop.f32.mrf.mxu3 }
 0x166   : > { %v1580_v45 = vadd.f32 %v1561_v36, %v1442_v38 }
 0x167   : > { %2300 = vmatmul.bf16.gmra.mxu0 %v2207_v15 }
 0x168   : > { %v1965_v11 = vpop.f32.mrf.mxu2  ;;  %v4218_v33 = vadd.f32 %v1720_v35, %v1580_v45 }
 0x169   : > { %v2005_v44 = vadd.f32 %v1965_v11, %v1867_v0 }
 0x16a   : > { %v1832_v39 = vpop.f32.mrf.mxu1 }
 0x16b   : > { %v1869_v50 = vadd.f32 %v1832_v39, %v4117_v51 }
 0x16c   : > { %v1722_v10 = vpop.f32.mrf.mxu0 }
 0x16d   : > { %v1563_v41 = vpop.f32.mrf.mxu3 }
 0x16e   : > { %v1581_v34 = vadd.f32 %v1563_v41, %v1443_v43 }
 0x170   : > { %v1967_v30 = vpop.f32.mrf.mxu2  ;;  %v4220_v31 = vadd.f32 %v1722_v10, %v1581_v34 }
 0x171   : > { %v2006_v59 = vadd.f32 %v1967_v30, %v1868_v28 }
 0x172   : > { %v1834_v19 = vpop.f32.mrf.mxu1 }
 0x173   : > { %v1870_v29 = vadd.f32 %v1834_v19, %v4126_v24 }
 0x174   : > { %v2266_v6 = vpop.f32.mrf.mxu0 }
 0x175   : > { %v2124_v47 = vpop.f32.mrf.mxu3 }
 0x176   : > { %v2164_v53 = vadd.f32 %v2124_v47, %v2005_v44 }
 0x178   : > { %v1970_v58 = vpop.f32.mrf.mxu2  ;;  %v2306_v1 = vadd.f32 %v2266_v6, %v2164_v53 }
 0x179   : > { %v2007_v62 = vadd.f32 %v1970_v58, %v1869_v50 }
 0x17a   : > { %v1837_v2 = vpop.f32.mrf.mxu1  ;;  %v2376_v60 = vmul.f32 %v2306_v1, %v2306_v1 }
 0x17b   : > { %v1871_v43 = vadd.f32 %v1837_v2, %v4136_v49 }
 0x17c   : > { %v2268_v8 = vpop.f32.mrf.mxu0 }
 0x17d   : > { %v2126_v5 = vpop.f32.mrf.mxu3 }
 0x17e   : > { %v2165_v7 = vadd.f32 %v2126_v5, %v2006_v59 }
 0x180   : > { %v2307_v48 = vadd.f32 %v2268_v8, %v2165_v7  ;;  %v1972_v52 = vpop.f32.mrf.mxu2 }
 0x181   : > { %v2008_v16 = vadd.f32 %v1972_v52, %v1870_v29 }
 0x182   : > { %v3191_v21 = vpack.c.bf16 %v2307_v48, %v2306_v1  ;;  %v2354_v57 = vadd.f32 %v2307_v48, %v2306_v1  ;;  %v2377_v55 = vmul.f32 %v2307_v48, %v2307_v48  ;;  %v1839_v13 = vpop.f32.mrf.mxu1 }
 0x183   : > { %v1872_v30 = vadd.f32 %v1839_v13, %v4140_v4 }
 0x184   : > { %3192 = vst [vmem:[%s4230_s23] sm:$0xff] %v3191_v21   ;;  %v2392_v56 = vadd.f32 %v2377_v55, %v2376_v60  ;;  %v2271_v38 = vpop.f32.mrf.mxu0 }
 0x185   : > { %v2129_v18 = vpop.f32.mrf.mxu3 }
 0x186   : > { %v2166_v51 = vadd.f32 %v2129_v18, %v2007_v62 }
 0x188   : > { %v2308_v23 = vadd.f32 %v2271_v38, %v2166_v51  ;;  %v1975_v9 = vpop.f32.mrf.mxu2 }
 0x189   : > { %v2009_v45 = vadd.f32 %v1975_v9, %v1871_v43 }
 0x18a   : > { %v2355_v42 = vadd.f32 %v2354_v57, %v2308_v23  ;;  %v2378_v40 = vmul.f32 %v2308_v23, %v2308_v23  ;;  %v1842_v54 = vpop.f32.mrf.mxu1 }
 0x18b   : > { %v1873_v2 = vadd.f32 %v1842_v54, %v4150_v61 }
 0x18c   : > { %v2393_v46 = vadd.f32 %v2392_v56, %v2378_v40  ;;  %v2273_v20 = vpop.f32.mrf.mxu0 }
 0x18d   : > { %v2131_v63 = vpop.f32.mrf.mxu3 }
 0x18e   : > { %v2167_v3 = vadd.f32 %v2131_v63, %v2008_v16 }
 0x190   : > { %v2309_v32 = vadd.f32 %v2273_v20, %v2167_v3  ;;  %v1977_v25 = vpop.f32.mrf.mxu2 }
 0x191   : > { %v2010_v47 = vadd.f32 %v1977_v25, %v1872_v30 }
 0x192   : > { %v3196_v15 = vpack.c.bf16 %v2309_v32, %v2308_v23  ;;  %v2356_v35 = vadd.f32 %v2355_v42, %v2309_v32  ;;  %v2379_v36 = vmul.f32 %v2309_v32, %v2309_v32  ;;  %v1844_v39 = vpop.f32.mrf.mxu1 }
 0x193   : > { %v1874_v21 = vadd.f32 %v1844_v39, %v4160_v27 }
 0x194   : > { %3235 = vst [vmem:[%s4230_s23 + $0x8] sm:$0xff] %v3196_v15   ;;  %v2394_v24 = vadd.f32 %v2393_v46, %v2379_v36  ;;  %v2276_v11 = vpop.f32.mrf.mxu0 }
 0x195   : > { %v2134_v10 = vpop.f32.mrf.mxu3 }
 0x196   : > { %v2168_v41 = vadd.f32 %v2134_v10, %v2009_v45 }
 0x198   : > { %v2310_v34 = vadd.f32 %v2276_v11, %v2168_v41  ;;  %v1980_v19 = vpop.f32.mrf.mxu2 }
 0x199   : > { %v2011_v50 = vadd.f32 %v1980_v19, %v1873_v2 }
 0x19a   : > { %v2357_v0 = vadd.f32 %v2356_v35, %v2310_v34  ;;  %v2380_v6 = vmul.f32 %v2310_v34, %v2310_v34  ;;  %v1847_v53 = vpop.f32.mrf.mxu1 }
 0x19b   : > { %v1875_v9 = vadd.f32 %v1847_v53, %v4166_v12 }
 0x19c   : > { %v2395_v49 = vadd.f32 %v2394_v24, %v2380_v6  ;;  %v2278_v44 = vpop.f32.mrf.mxu0 }
 0x19d   : > { %v2136_v28 = vpop.f32.mrf.mxu3 }
 0x19e   : > { %v2169_v58 = vadd.f32 %v2136_v28, %v2010_v47 }
 0x1a0   : > { %v2311_v59 = vadd.f32 %v2278_v44, %v2169_v58  ;;  %v1982_v8 = vpop.f32.mrf.mxu2 }
 0x1a1   : > { %v2012_v38 = vadd.f32 %v1982_v8, %v1874_v21 }
 0x1a2   : > { %v3201_v5 = vpack.c.bf16 %v2311_v59, %v2310_v34  ;;  %v2358_v1 = vadd.f32 %v2357_v0, %v2311_v59  ;;  %v2381_v7 = vmul.f32 %v2311_v59, %v2311_v59  ;;  %v1849_v55 = vpop.f32.mrf.mxu1 }
 0x1a3   : > { %v1876_v25 = vadd.f32 %v1849_v55, %v4175_v37 }
 0x1a4   : > { %3236 = vst [vmem:[%s4230_s23 + $0x10] sm:$0xff] %v3201_v5   ;;  %v2396_v4 = vadd.f32 %v2395_v49, %v2381_v7  ;;  %v2281_v48 = vpop.f32.mrf.mxu0 }
 0x1a5   : > { %v2139_v52 = vpop.f32.mrf.mxu3 }
 0x1a6   : > { %v2170_v62 = vadd.f32 %v2139_v52, %v2011_v50 }
 0x1a8   : > { %v2312_v60 = vadd.f32 %v2281_v48, %v2170_v62  ;;  %v1985_v57 = vpop.f32.mrf.mxu2 }
 0x1a9   : > { %v2013_v46 = vadd.f32 %v1985_v57, %v1875_v9 }
 0x1aa   : > { %v2359_v13 = vadd.f32 %v2358_v1, %v2312_v60  ;;  %v2382_v56 = vmul.f32 %v2312_v60, %v2312_v60  ;;  %v1852_v20 = vpop.f32.mrf.mxu1 }
 0x1ab   : > { %v1877_v34 = vadd.f32 %v1852_v20, %v4194_v22 }
 0x1ac   : > { %v2397_v61 = vadd.f32 %v2396_v4, %v2382_v56  ;;  %v2283_v18 = vpop.f32.mrf.mxu0 }
 0x1ad   : > { %v2141_v51 = vpop.f32.mrf.mxu3 }
 0x1ae   : > { %v2171_v23 = vadd.f32 %v2141_v51, %v2012_v38 }
 0x1b0   : > { %v2313_v29 = vadd.f32 %v2283_v18, %v2171_v23  ;;  %v1987_v42 = vpop.f32.mrf.mxu2 }
 0x1b1   : > { %v2014_v45 = vadd.f32 %v1987_v42, %v1876_v25 }
 0x1b2   : > { %v3206_v40 = vpack.c.bf16 %v2313_v29, %v2312_v60  ;;  %v2360_v16 = vadd.f32 %v2359_v13, %v2313_v29  ;;  %v2383_v54 = vmul.f32 %v2313_v29, %v2313_v29  ;;  %v1854_v11 = vpop.f32.mrf.mxu1 }
 0x1b3   : > { %v1878_v59 = vadd.f32 %v1854_v11, %v4199_v14 }
 0x1b4   : > { %3237 = vst [vmem:[%s4230_s23 + $0x18] sm:$0xff] %v3206_v40   ;;  %v2398_v27 = vadd.f32 %v2397_v61, %v2383_v54  ;;  %v2286_v63 = vpop.f32.mrf.mxu0 }
 0x1b5   : > { %v2144_v3 = vpop.f32.mrf.mxu3 }
 0x1b6   : > { %v2172_v32 = vadd.f32 %v2144_v3, %v2013_v46 }
 0x1b8   : > { %v2314_v43 = vadd.f32 %v2286_v63, %v2172_v32  ;;  %v1990_v15 = vpop.f32.mrf.mxu2 }
 0x1b9   : > { %v2015_v47 = vadd.f32 %v1990_v15, %v1877_v34 }
 0x1ba   : > { %v2361_v35 = vadd.f32 %v2360_v16, %v2314_v43  ;;  %v2384_v36 = vmul.f32 %v2314_v43, %v2314_v43  ;;  %v1857_v58 = vpop.f32.mrf.mxu1 }
 0x1bb   : > { %v1879_v52 = vadd.f32 %v1857_v58, %v4209_v17 }
 0x1bc   : > { %v2399_v12 = vadd.f32 %v2398_v27, %v2384_v36  ;;  %v2288_v24 = vpop.f32.mrf.mxu0 }
 0x1bd   : > { %v2146_v39 = vpop.f32.mrf.mxu3 }
 0x1be   : > { %v2173_v10 = vadd.f32 %v2146_v39, %v2014_v45 }
 0x1c0   : > { %v2315_v41 = vadd.f32 %v2288_v24, %v2173_v10  ;;  %v1992_v30 = vpop.f32.mrf.mxu2 }
 0x1c1   : > { %v2016_v1 = vadd.f32 %v1992_v30, %v1878_v59 }
 0x1c2   : > { %v3211_v19 = vpack.c.bf16 %v2315_v41, %v2314_v43  ;;  %v2362_v0 = vadd.f32 %v2361_v35, %v2315_v41  ;;  %v2385_v6 = vmul.f32 %v2315_v41, %v2315_v41  ;;  %v1859_v62 = vpop.f32.mrf.mxu1 }
 0x1c3   : > { %v1880_v51 = vadd.f32 %v1859_v62, %v4216_v26 }
 0x1c4   : > { %3238 = vst [vmem:[%s4230_s23 + $0x20] sm:$0xff] %v3211_v19   ;;  %v2400_v37 = vadd.f32 %v2399_v12, %v2385_v6  ;;  %v2291_v49 = vpop.f32.mrf.mxu0 }
 0x1c5   : > { %v2149_v44 = vpop.f32.mrf.mxu3 }
 0x1c6   : > { %v2174_v28 = vadd.f32 %v2149_v44, %v2015_v47 }
 0x1c8   : > { %v2316_v53 = vadd.f32 %v2291_v49, %v2174_v28  ;;  %v1995_v2 = vpop.f32.mrf.mxu2 }
 0x1c9   : > { %v2017_v55 = vadd.f32 %v1995_v2, %v1879_v52 }
 0x1ca   : > { %v2363_v8 = vadd.f32 %v2362_v0, %v2316_v53  ;;  %v2386_v5 = vmul.f32 %v2316_v53, %v2316_v53  ;;  %v1862_v42 = vpop.f32.mrf.mxu1 }
 0x1cb   : > { %v1881_v27 = vadd.f32 %v1862_v42, %v4218_v33 }
 0x1cc   : > { %v2401_v22 = vadd.f32 %v2400_v37, %v2386_v5  ;;  %v2293_v7 = vpop.f32.mrf.mxu0 }
 0x1cd   : > { %v2151_v50 = vpop.f32.mrf.mxu3 }
 0x1ce   : > { %v2175_v4 = vadd.f32 %v2151_v50, %v2016_v1 }
 0x1d0   : > { %v2317_v48 = vadd.f32 %v2293_v7, %v2175_v4  ;;  %v1997_v13 = vpop.f32.mrf.mxu2 }
 0x1d1   : > { %v2018_v9 = vadd.f32 %v1997_v13, %v1880_v51 }
 0x1d2   : > { %v3216_v60 = vpack.c.bf16 %v2317_v48, %v2316_v53  ;;  %v2364_v21 = vadd.f32 %v2363_v8, %v2317_v48  ;;  %v2387_v57 = vmul.f32 %v2317_v48, %v2317_v48  ;;  %v1864_v26 = vpop.f32.mrf.mxu1 }
 0x1d3   : > { %v1882_v24 = vadd.f32 %v1864_v26, %v4220_v31 }
 0x1d4   : > { %3239 = vst [vmem:[%s4230_s23 + $0x28] sm:$0xff] %v3216_v60   ;;  %v2402_v14 = vadd.f32 %v2401_v22, %v2387_v57  ;;  %v2296_v56 = vpop.f32.mrf.mxu0 }
 0x1d5   : > { %v2154_v38 = vpop.f32.mrf.mxu3 }
 0x1d6   : > { %v2176_v61 = vadd.f32 %v2154_v38, %v2017_v55 }
 0x1d8   : > { %v2318_v18 = vadd.f32 %v2296_v56, %v2176_v61  ;;  %v2000_v54 = vpop.f32.mrf.mxu2 }
 0x1d9   : > { %v2019_v43 = vadd.f32 %v2000_v54, %v1881_v27 }
 0x1da   : > { %v2365_v23 = vadd.f32 %v2364_v21, %v2318_v18  ;;  %v2388_v29 = vmul.f32 %v2318_v18, %v2318_v18 }
 0x1dc   : > { %v2403_v17 = vadd.f32 %v2402_v14, %v2388_v29  ;;  %v2298_v40 = vpop.f32.mrf.mxu0 }
 0x1dd   : > { %v2156_v16 = vpop.f32.mrf.mxu3 }
 0x1de   : > { %v2177_v46 = vadd.f32 %v2156_v16, %v2018_v9 }
 0x1e0   : > { %v2319_v20 = vadd.f32 %v2298_v40, %v2177_v46  ;;  %v2002_v45 = vpop.f32.mrf.mxu2 }
 0x1e1   : > { %v2020_v39 = vadd.f32 %v2002_v45, %v1882_v24 }
 0x1e2   : > { %v3221_v63 = vpack.c.bf16 %v2319_v20, %v2318_v18  ;;  %v2366_v3 = vadd.f32 %v2365_v23, %v2319_v20  ;;  %v2389_v32 = vmul.f32 %v2319_v20, %v2319_v20 }
 0x1e4   : > { %3240 = vst [vmem:[%s4230_s23 + $0x30] sm:$0xff] %v3221_v63   ;;  %v2404_v25 = vadd.f32 %v2403_v17, %v2389_v32  ;;  %v2301_v15 = vpop.f32.mrf.mxu0 }
 0x1e5   : > { %v2159_v35 = vpop.f32.mrf.mxu3 }
 0x1e6   : > { %v2178_v36 = vadd.f32 %v2159_v35, %v2019_v43 }
 0x1e8   : > { %v2320_v12 = vadd.f32 %v2301_v15, %v2178_v36 }
 0x1ea   : > { %v2367_v11 = vadd.f32 %v2366_v3, %v2320_v12  ;;  %v2390_v33 = vmul.f32 %v2320_v12, %v2320_v12 }
 0x1ec   : > { %v2405_v10 = vadd.f32 %v2404_v25, %v2390_v33  ;;  %v2303_v30 = vpop.f32.mrf.mxu0 }
 0x1ed   : > { %v2161_v41 = vpop.f32.mrf.mxu3 }
 0x1ee   : > { %v2179_v34 = vadd.f32 %v2161_v41, %v2020_v39 }
 0x1f0   : > { %v2321_v19 = vadd.f32 %v2303_v30, %v2179_v34 }
 0x1f2   : > { %v3226_v0 = vpack.c.bf16 %v2321_v19, %v2320_v12  ;;  %v2368_v6 = vadd.f32 %v2367_v11, %v2321_v19  ;;  %v2391_v47 = vmul.f32 %v2321_v19, %v2321_v19 }
 0x1f4   : > { %3241 = vst [vmem:[%s4230_s23 + $0x38] sm:$0xff] %v3226_v0   ;;  %v2369_v37 = vrot.slane %v2368_v6, 4  ;;  %v2406_v49 = vadd.f32 %v2405_v10, %v2391_v47 }
 0x1f6   : > { %v2370_v44 = vadd.f32 %v2369_v37, %v2368_v6  ;;  %v2407_v28 = vrot.slane %v2406_v49, 4 }
 0x1f8   : > { %v2371_v31 = vrot.slane %v2370_v44, 2  ;;  %v2408_v58 = vadd.f32 %v2407_v28, %v2406_v49 }
 0x1fa   : > { %v2372_v53 = vadd.f32 %v2371_v31, %v2370_v44  ;;  %v2409_v59 = vrot.slane %v2408_v58, 2 }
 0x1fc   : > { %v2373_v2 = vrot.slane %v2372_v53, 1  ;;  %v2410_v8 = vadd.f32 %v2409_v59, %v2408_v58 }
 0x1fe   : > { %v2374_v5 = vadd.f32 %v2373_v2, %v2372_v53  ;;  %v2411_v1 = vrot.slane %v2410_v8, 1 }
 0x200   : > { %2375 = vst [vmem:[%s467_s10] sm:$0x1] %v2374_v5  ;;  %v2412_v22 = vadd.f32 %v2411_v1, %v2410_v8 }
 0x202   : > { %2413 = vst [vmem:[%s467_s10 + $0x1] sm:$0x1] %v2412_v22 }
 0x203 PF: > { %s18_s28 = sadd.s32 1, %s3348_s28   ;;  %s4288_s24 = smov %s3340_s26 }
 0x204   : > { %p15_p12 = scmp.ge.s32.totalorder %s18_s28, 6   ;;  %s4289_s25 = smov %s3344_s27 }
 0x205   : > { %s4290_s26 = smov %s4293_s29  ;;  %s4291_s27 = smov %s4297_s30 }
 0x206   :  { %17 = sbr.rel (!%p15_p12) target bundleno = 3 (0x3), region = 100 }

</bundles_post_ra>
